<compile_context>
chip_gen: v7x
topology: tpu7x:2x2x1
jax: 0.10.0
libtpu: 0.0.40
codegen_flags: <defaults>
</compile_context>

<pallas_src>
import functools

import jax
import jax.numpy as jnp
from jax import lax
from jax.experimental import pallas as pl
from jax.experimental.pallas import tpu as pltpu


def _round_up(x, m):
    return (x + m - 1) // m * m


# -----------------------------------------------------------------------------
# Fused kernel: 1x1-conv projections + flash position-attention + residual
# -----------------------------------------------------------------------------
def _pam_kernel(x_ref, wq_ref, wk_ref, wv_ref, bq_ref, bk_ref, bv_ref,
                gamma_ref, o_ref, k_sc, v_sc, m_sc, l_sc, acc_sc,
                *, tq, tk, n_valid, n_pad):
    qi = pl.program_id(1)
    n_kv_chunks = n_pad // tk

    # ---- once per batch: project K and V into persistent VMEM scratch -------
    @pl.when(qi == 0)
    def _():
        @pl.loop(0, n_kv_chunks)
        def _(c):
            off = pl.multiple_of(c * tk, tk)
            xs = x_ref[0, pl.ds(off, tk), :]                      # (tk, Cp) bf16
            k = jnp.dot(xs, wk_ref[...], preferred_element_type=jnp.float32)
            v = jnp.dot(xs, wv_ref[...], preferred_element_type=jnp.float32)
            k_sc[pl.ds(off, tk), :] = (k + bk_ref[...]).astype(k_sc.dtype)
            v_sc[pl.ds(off, tk), :] = (v + bv_ref[...]).astype(v_sc.dtype)

    # ---- per q tile: project q, online softmax over the resident K/V --------
    q_off = pl.multiple_of(qi * tq, tq)
    x_q = x_ref[0, pl.ds(q_off, tq), :]                           # (tq, Cp) bf16
    q = jnp.dot(x_q, wq_ref[...], preferred_element_type=jnp.float32) + bq_ref[...]
    q = q.astype(jnp.bfloat16)                                    # (tq, C8p)

    m_sc[...] = jnp.full_like(m_sc, -1e30)
    l_sc[...] = jnp.zeros_like(l_sc)
    acc_sc[...] = jnp.zeros_like(acc_sc)

    @pl.loop(0, n_kv_chunks)
    def _(c):
        off = pl.multiple_of(c * tk, tk)
        k = k_sc[pl.ds(off, tk), :]                               # (tk, C8p) bf16
        v = v_sc[pl.ds(off, tk), :]                               # (tk, Cp)  bf16

        # energy tile (tq, tk): q . k^T, f32 MXU accumulation
        s = lax.dot_general(q, k, (((1,), (1,)), ((), ())),
                            preferred_element_type=jnp.float32)
        if n_pad != n_valid:                                      # static: mask padded keys
            col = off + lax.broadcasted_iota(jnp.int32, (tq, tk), 1)
            s = jnp.where(col < n_valid, s, -1e30)

        m_prev = m_sc[...]
        m_new = jnp.maximum(m_prev, s.max(axis=-1, keepdims=True))
        alpha = jnp.exp(m_prev - m_new)
        p = jnp.exp(s - m_new)
        l_sc[...] = alpha * l_sc[...] + p.sum(axis=-1, keepdims=True)
        acc_sc[...] = alpha * acc_sc[...] + jnp.dot(
            p.astype(v.dtype), v, preferred_element_type=jnp.float32)
        m_sc[...] = m_new

    attn_out = acc_sc[...] * pl.reciprocal(l_sc[...], approx=True)
    o_ref[0] = (gamma_ref[0, 0] * attn_out
                + x_q.astype(jnp.float32)).astype(o_ref.dtype)    # fused residual


def pam_fused(x_pad, wq, wk, wv, bq, bk, bv, gamma, *, n_valid, tq, tk):
    B, Np, Cp = x_pad.shape
    C8p = wq.shape[1]

    full2d = lambda a: pl.BlockSpec(a.shape, lambda b, qi: (0, 0))
    kernel = functools.partial(_pam_kernel, tq=tq, tk=tk, n_valid=n_valid, n_pad=Np)

    # Explicit VMEM budget (review: scoped default is 16/32 MiB; v7x physical is
    # 64 MiB).  Sized from the actual footprint, floor 32 MiB, capped.
    vmem_bytes = (
        2 * Np * Cp * 2                                    # x block (double-buffered bf16)
        + 2 * tq * Cp * 2                                  # out block (double-buffered bf16)
        + 2 * ((2 * Cp * C8p + Cp * Cp) * 2                # weights (double-buffered bf16)
               + (2 * C8p + Cp) * 4)                       # biases (f32)
        + Np * (C8p + Cp) * 2                              # resident K/V scratch (bf16)
        + tq * Cp * 4 + 2 * tq * 4                         # acc + m/l scratch (f32)
        + 3 * tq * tk * 4                                  # score/exp temporaries (slack)
        + (4 << 20)                                        # headroom
    )
    vmem_limit = int(min(max(32 << 20, vmem_bytes), 100 << 20))

    return pl.pallas_call(
        kernel,
        grid_spec=pltpu.PrefetchScalarGridSpec(
            num_scalar_prefetch=0,
            grid=(B, Np // tq),
            in_specs=[
                pl.BlockSpec((1, Np, Cp), lambda b, qi: (b, 0, 0)),  # x: per-batch resident
                full2d(wq), full2d(wk), full2d(wv),
                full2d(bq), full2d(bk), full2d(bv),
                pl.BlockSpec(memory_space=pltpu.MemorySpace.SMEM),   # gamma (1,1)
            ],
            out_specs=pl.BlockSpec((1, tq, Cp), lambda b, qi: (b, qi, 0)),
            scratch_shapes=[
                pltpu.VMEM((Np, C8p), jnp.bfloat16),   # resident K (per batch)
                pltpu.VMEM((Np, Cp), jnp.bfloat16),    # resident V (per batch)
                pltpu.VMEM((tq, 1), jnp.float32),      # running max
                pltpu.VMEM((tq, 1), jnp.float32),      # running denom
                pltpu.VMEM((tq, Cp), jnp.float32),     # output accumulator
            ],
        ),
        out_shape=jax.ShapeDtypeStruct((B, Np, Cp), jnp.bfloat16),
        compiler_params=pltpu.CompilerParams(
            dimension_semantics=("parallel", "arbitrary"),
            vmem_limit_bytes=vmem_limit,
        ),
    )(x_pad, wq, wk, wv, bq, bk, bv, gamma)


# -----------------------------------------------------------------------------
# PAM_Module forward (NCHW in / NCHW out, PyTorch convention)
# -----------------------------------------------------------------------------
def init_params(key, in_dim):
    c8 = in_dim // 8
    ks = jax.random.split(key, 6)

    def conv1x1(k_, cout, cin):
        return 0.1 * jax.random.normal(k_, (cout, cin, 1, 1), jnp.float32)

    return {
        "wq": conv1x1(ks[0], c8, in_dim),
        "bq": 0.01 * jax.random.normal(ks[1], (c8,), jnp.float32),
        "wk": conv1x1(ks[2], c8, in_dim),
        "bk": 0.01 * jax.random.normal(ks[3], (c8,), jnp.float32),
        "wv": conv1x1(ks[4], in_dim, in_dim),
        "bv": 0.01 * jax.random.normal(ks[5], (in_dim,), jnp.float32),
        # PyTorch initializes gamma = 0 (output == x); use a nonzero value so
        # the attention branch is actually exercised by the smoke test.
        "gamma": jnp.array([0.5], jnp.float32),
    }


def pam_module_forward(x_nchw, params):
    x = x_nchw.astype(jnp.float32)
    B, C, H, W = x.shape
    N = H * W
    C8 = params["wq"].shape[0]
    C8p = _round_up(C8, 128)        # lane-dense q/k width (VMEM only, never HBM)
    Cp = _round_up(C, 128)          # lane-dense v / output / residual width

    # Sequence tiling: pad N up to a tq multiple; padded keys masked in-kernel.
    tq = min(256, _round_up(N, 8))
    Np = _round_up(N, tq)
    tk = min(256, Np)               # divides Np by construction

    # NCHW -> (B, N, C); pixel index h*W + w matches torch .view(B, -1, H*W)
    x_pix = jnp.transpose(x, (0, 2, 3, 1)).reshape(B, N, C)
    x_pad = jnp.pad(x_pix, ((0, 0), (0, Np - N), (0, Cp - C))).astype(jnp.bfloat16)

    def w2d(w, out_pad):            # (Cout, Cin, 1, 1) -> (Cp, out_pad), zero-padded
        m = jnp.transpose(w[:, :, 0, 0], (1, 0))
        m = jnp.pad(m, ((0, Cp - m.shape[0]), (0, out_pad - m.shape[1])))
        return m.astype(jnp.bfloat16)

    def b2d(b, out_pad):
        return jnp.pad(b, (0, out_pad - b.shape[0])).reshape(1, out_pad).astype(jnp.float32)

    out = pam_fused(
        x_pad,
        w2d(params["wq"], C8p), w2d(params["wk"], C8p), w2d(params["wv"], Cp),
        b2d(params["bq"], C8p), b2d(params["bk"], C8p), b2d(params["bv"], Cp),
        params["gamma"].reshape(1, 1).astype(jnp.float32),
        n_valid=N, tq=tq, tk=tk)

    out = out[:, :N, :C].astype(jnp.float32).reshape(B, H, W, C)
    return jnp.transpose(out, (0, 3, 1, 2)).astype(x_nchw.dtype)


# -----------------------------------------------------------------------------
# pure-JAX reference (for correctness check)
# -----------------------------------------------------------------------------
def pam_reference(x, params):
    B, C, H, W = x.shape
    N = H * W
    xf = jnp.transpose(x, (0, 2, 3, 1)).reshape(B, N, C)
    q = jnp.einsum("bnc,dc->bnd", xf, params["wq"][:, :, 0, 0]) + params["bq"]
    k = jnp.einsum("bnc,dc->bnd", xf, params["wk"][:, :, 0, 0]) + params["bk"]
    v = jnp.einsum("bnc,dc->bnd", xf, params["wv"][:, :, 0, 0]) + params["bv"]
    energy = jnp.einsum("bnd,bmd->bnm", q, k)
    attn = jax.nn.softmax(energy, axis=-1)
    out = jnp.einsum("bnm,bmc->bnc", attn, v)
    out = params["gamma"][0] * out + xf
    return jnp.transpose(out.reshape(B, H, W, C), (0, 3, 1, 2))


# -----------------------------------------------------------------------------
if __name__ == "__main__":
    B, C, H, W = 2, 32, 16, 16          # in_dim=32 -> query/key dim 4, N=256

    key = jax.random.PRNGKey(0)
    k_x, k_p = jax.random.split(key)
    x = jax.random.normal(k_x, (B, C, H, W), jnp.float32)
    params = init_params(k_p, C)

    fwd = jax.jit(pam_module_forward)
    out = jax.block_until_ready(fwd(x, params))

    assert out.shape == (B, C, H, W), out.shape
    assert bool(jnp.all(jnp.isfinite(out)))

    ref = pam_reference(x, params)
    err = float(jnp.max(jnp.abs(out - ref)))
    assert err < 1e-1, f"max abs err {err}"   # bf16 matmul / bf16 output tolerance

    print("KERNEL_OK")
</pallas_src>

<mosaic_0001>
module attributes {stable_mosaic.version = 11 : i64} {
  func.func @_pam_kernel(%arg0: i32, %arg1: i32, %arg2: memref<1x256x128xbf16, #tpu.memory_space<vmem>>, %arg3: memref<128x128xbf16, #tpu.memory_space<vmem>>, %arg4: memref<128x128xbf16, #tpu.memory_space<vmem>>, %arg5: memref<128x128xbf16, #tpu.memory_space<vmem>>, %arg6: memref<1x128xf32, #tpu.memory_space<vmem>>, %arg7: memref<1x128xf32, #tpu.memory_space<vmem>>, %arg8: memref<1x128xf32, #tpu.memory_space<vmem>>, %arg9: memref<1x1xf32, #tpu.memory_space<smem>>, %arg10: memref<1x256x128xbf16, #tpu.memory_space<vmem>>, %arg11: memref<256x128xbf16, #tpu.memory_space<vmem>>, %arg12: memref<256x128xbf16, #tpu.memory_space<vmem>>, %arg13: memref<256x1xf32, #tpu.memory_space<vmem>>, %arg14: memref<256x1xf32, #tpu.memory_space<vmem>>, %arg15: memref<256x128xf32, #tpu.memory_space<vmem>>) attributes {dimension_semantics = [#tpu.dimension_semantics<parallel>, #tpu.dimension_semantics<arbitrary>], iteration_bounds = array<i64: 2, 1>, scalar_prefetch = 0 : i64, scratch_operands = 5 : i64, tpu.core_type = #tpu.core_type<tc>, window_params = [{transform_indices = @transform_0, window_bounds = array<i64: 1, 256, 128>}, {pipeline_mode = #tpu.pipeline_mode<synchronous>, transform_indices = @transform_1, window_bounds = array<i64: 128, 128>}, {pipeline_mode = #tpu.pipeline_mode<synchronous>, transform_indices = @transform_2, window_bounds = array<i64: 128, 128>}, {pipeline_mode = #tpu.pipeline_mode<synchronous>, transform_indices = @transform_3, window_bounds = array<i64: 128, 128>}, {pipeline_mode = #tpu.pipeline_mode<synchronous>, transform_indices = @transform_4, window_bounds = array<i64: 1, 128>}, {pipeline_mode = #tpu.pipeline_mode<synchronous>, transform_indices = @transform_5, window_bounds = array<i64: 1, 128>}, {pipeline_mode = #tpu.pipeline_mode<synchronous>, transform_indices = @transform_6, window_bounds = array<i64: 1, 128>}, {transform_indices = @transform_7, window_bounds = array<i64: 1, 1>}, {transform_indices = @transform_8, window_bounds = array<i64: 1, 256, 128>}]} {
    %c0_i32 = arith.constant 0 : i32
    %0 = arith.cmpi eq, %arg1, %c0_i32 : i32
    %1 = arith.extui %0 : i1 to i32
    %c0_i32_0 = arith.constant 0 : i32
    %2 = arith.cmpi ne, %1, %c0_i32_0 : i32
    scf.if %2 {
      %c0_i32_46 = arith.constant 0 : i32
      %c1_i32_47 = arith.constant 1 : i32
      %66 = arith.muli %c0_i32_46, %c1_i32_47 : i32
      %c0_i32_48 = arith.constant 0 : i32
      %67 = arith.addi %c0_i32_48, %66 : i32
      %c256_i32_49 = arith.constant 256 : i32
      %68 = arith.muli %67, %c256_i32_49 : i32
      %69 = tpu.assume_multiple %68, 256 : i32
      %c0_50 = arith.constant 0 : index
      %70 = arith.index_cast %69 : i32 to index
      %c0_51 = arith.constant 0 : index
      %71 = vector.load %arg2[%c0_50, %70, %c0_51] : memref<1x256x128xbf16, #tpu.memory_space<vmem>>, vector<1x256x128xbf16>
      %72 = vector.shape_cast %71 : vector<1x256x128xbf16> to vector<256x128xbf16>
      %c0_52 = arith.constant 0 : index
      %c0_53 = arith.constant 0 : index
      %73 = vector.load %arg4[%c0_52, %c0_53] : memref<128x128xbf16, #tpu.memory_space<vmem>>, vector<128x128xbf16>
      %cst_54 = arith.constant dense<0.000000e+00> : vector<256x128xf32>
      %74 = tpu.matmul %72, %73, %cst_54 {dimension_numbers = #tpu.dot_dimension_numbers<[1], [0], [0], [1], [0, 0, 1, 1], [], []>} : vector<256x128xbf16>, vector<128x128xbf16>, vector<256x128xf32> -> vector<256x128xf32>
      %c0_55 = arith.constant 0 : index
      %c0_56 = arith.constant 0 : index
      %75 = vector.load %arg5[%c0_55, %c0_56] : memref<128x128xbf16, #tpu.memory_space<vmem>>, vector<128x128xbf16>
      %cst_57 = arith.constant dense<0.000000e+00> : vector<256x128xf32>
      %76 = tpu.matmul %72, %75, %cst_57 {dimension_numbers = #tpu.dot_dimension_numbers<[1], [0], [0], [1], [0, 0, 1, 1], [], []>} : vector<256x128xbf16>, vector<128x128xbf16>, vector<256x128xf32> -> vector<256x128xf32>
      %c0_58 = arith.constant 0 : index
      %c0_59 = arith.constant 0 : index
      %77 = vector.load %arg7[%c0_58, %c0_59] : memref<1x128xf32, #tpu.memory_space<vmem>>, vector<1x128xf32>
      %78 = vector.broadcast %77 : vector<1x128xf32> to vector<256x128xf32>
      %79 = arith.addf %74, %78 : vector<256x128xf32>
      %80 = arith.truncf %79 : vector<256x128xf32> to vector<256x128xbf16>
      %81 = arith.index_cast %69 : i32 to index
      %c0_60 = arith.constant 0 : index
      %82 = vector.load %arg11[%81, %c0_60] : memref<256x128xbf16, #tpu.memory_space<vmem>>, vector<256x128xbf16>
      tpu.vector_store %arg11[%81, %c0_60], %80 {strides = array<i32>} : memref<256x128xbf16, #tpu.memory_space<vmem>>, vector<256x128xbf16>,
      %c0_61 = arith.constant 0 : index
      %c0_62 = arith.constant 0 : index
      %83 = vector.load %arg8[%c0_61, %c0_62] : memref<1x128xf32, #tpu.memory_space<vmem>>, vector<1x128xf32>
      %84 = vector.broadcast %83 : vector<1x128xf32> to vector<256x128xf32>
      %85 = arith.addf %76, %84 : vector<256x128xf32>
      %86 = arith.truncf %85 : vector<256x128xf32> to vector<256x128xbf16>
      %87 = arith.index_cast %69 : i32 to index
      %c0_63 = arith.constant 0 : index
      %88 = vector.load %arg12[%87, %c0_63] : memref<256x128xbf16, #tpu.memory_space<vmem>>, vector<256x128xbf16>
      tpu.vector_store %arg12[%87, %c0_63], %86 {strides = array<i32>} : memref<256x128xbf16, #tpu.memory_space<vmem>>, vector<256x128xbf16>,
      %c1_i32_64 = arith.constant 1 : i32
    } else {
    }
    %c256_i32 = arith.constant 256 : i32
    %3 = arith.muli %arg1, %c256_i32 : i32
    %4 = tpu.assume_multiple %3, 256 : i32
    %c0 = arith.constant 0 : index
    %5 = arith.index_cast %4 : i32 to index
    %c0_1 = arith.constant 0 : index
    %6 = vector.load %arg2[%c0, %5, %c0_1] : memref<1x256x128xbf16, #tpu.memory_space<vmem>>, vector<1x256x128xbf16>
    %7 = vector.shape_cast %6 : vector<1x256x128xbf16> to vector<256x128xbf16>
    %c0_2 = arith.constant 0 : index
    %c0_3 = arith.constant 0 : index
    %8 = vector.load %arg3[%c0_2, %c0_3] : memref<128x128xbf16, #tpu.memory_space<vmem>>, vector<128x128xbf16>
    %cst = arith.constant dense<0.000000e+00> : vector<256x128xf32>
    %9 = tpu.matmul %7, %8, %cst {dimension_numbers = #tpu.dot_dimension_numbers<[1], [0], [0], [1], [0, 0, 1, 1], [], []>} : vector<256x128xbf16>, vector<128x128xbf16>, vector<256x128xf32> -> vector<256x128xf32>
    %c0_4 = arith.constant 0 : index
    %c0_5 = arith.constant 0 : index
    %10 = vector.load %arg6[%c0_4, %c0_5] : memref<1x128xf32, #tpu.memory_space<vmem>>, vector<1x128xf32>
    %11 = vector.broadcast %10 : vector<1x128xf32> to vector<256x128xf32>
    %12 = arith.addf %9, %11 : vector<256x128xf32>
    %13 = arith.truncf %12 : vector<256x128xf32> to vector<256x128xbf16>
    %cst_6 = arith.constant -1.000000e+30 : f32
    %14 = vector.broadcast %cst_6 : f32 to vector<256x1xf32>
    %c0_7 = arith.constant 0 : index
    %c0_8 = arith.constant 0 : index
    %15 = vector.load %arg13[%c0_7, %c0_8] : memref<256x1xf32, #tpu.memory_space<vmem>>, vector<256x1xf32>
    tpu.vector_store %arg13[%c0_7, %c0_8], %14 {strides = array<i32>} : memref<256x1xf32, #tpu.memory_space<vmem>>, vector<256x1xf32>,
    %cst_9 = arith.constant 0.000000e+00 : f32
    %16 = vector.broadcast %cst_9 : f32 to vector<256x1xf32>
    %c0_10 = arith.constant 0 : index
    %c0_11 = arith.constant 0 : index
    %17 = vector.load %arg14[%c0_10, %c0_11] : memref<256x1xf32, #tpu.memory_space<vmem>>, vector<256x1xf32>
    tpu.vector_store %arg14[%c0_10, %c0_11], %16 {strides = array<i32>} : memref<256x1xf32, #tpu.memory_space<vmem>>, vector<256x1xf32>,
    %cst_12 = arith.constant 0.000000e+00 : f32
    %18 = vector.broadcast %cst_12 : f32 to vector<256x128xf32>
    %c0_13 = arith.constant 0 : index
    %c0_14 = arith.constant 0 : index
    %19 = vector.load %arg15[%c0_13, %c0_14] : memref<256x128xf32, #tpu.memory_space<vmem>>, vector<256x128xf32>
    tpu.vector_store %arg15[%c0_13, %c0_14], %18 {strides = array<i32>} : memref<256x128xf32, #tpu.memory_space<vmem>>, vector<256x128xf32>,
    %c0_i32_15 = arith.constant 0 : i32
    %c1_i32 = arith.constant 1 : i32
    %20 = arith.muli %c0_i32_15, %c1_i32 : i32
    %c0_i32_16 = arith.constant 0 : i32
    %21 = arith.addi %c0_i32_16, %20 : i32
    %c256_i32_17 = arith.constant 256 : i32
    %22 = arith.muli %21, %c256_i32_17 : i32
    %23 = tpu.assume_multiple %22, 256 : i32
    %24 = arith.index_cast %23 : i32 to index
    %c0_18 = arith.constant 0 : index
    %25 = vector.load %arg11[%24, %c0_18] : memref<256x128xbf16, #tpu.memory_space<vmem>>, vector<256x128xbf16>
    %26 = arith.index_cast %23 : i32 to index
    %c0_19 = arith.constant 0 : index
    %27 = vector.load %arg12[%26, %c0_19] : memref<256x128xbf16, #tpu.memory_space<vmem>>, vector<256x128xbf16>
    %cst_20 = arith.constant dense<0.000000e+00> : vector<256x256xf32>
    %28 = tpu.matmul %13, %25, %cst_20 {dimension_numbers = #tpu.dot_dimension_numbers<[1], [1], [0], [0], [0, 0, 1, 0], [], []>} : vector<256x128xbf16>, vector<256x128xbf16>, vector<256x256xf32> -> vector<256x256xf32>
    %c0_21 = arith.constant 0 : index
    %c0_22 = arith.constant 0 : index
    %29 = vector.load %arg13[%c0_21, %c0_22] : memref<256x1xf32, #tpu.memory_space<vmem>>, vector<256x1xf32>
    %cst_23 = arith.constant dense<0xFF800000> : vector<256xf32>
    %30 = vector.multi_reduction <maximumf>, %28, %cst_23 [1] : vector<256x256xf32> to vector<256xf32>
    %31 = vector.shape_cast %30 : vector<256xf32> to vector<256x1xf32>
    %32 = arith.maximumf %29, %31 : vector<256x1xf32>
    %33 = arith.subf %29, %32 : vector<256x1xf32>
    %34 = math.exp %33 : vector<256x1xf32>
    %35 = vector.broadcast %32 : vector<256x1xf32> to vector<256x256xf32>
    %36 = arith.subf %28, %35 : vector<256x256xf32>
    %37 = math.exp %36 : vector<256x256xf32>
    %c0_24 = arith.constant 0 : index
    %c0_25 = arith.constant 0 : index
    %38 = vector.load %arg14[%c0_24, %c0_25] : memref<256x1xf32, #tpu.memory_space<vmem>>, vector<256x1xf32>
    %39 = arith.mulf %34, %38 : vector<256x1xf32>
    %cst_26 = arith.constant dense<0.000000e+00> : vector<256xf32>
    %40 = vector.multi_reduction <add>, %37, %cst_26 [1] : vector<256x256xf32> to vector<256xf32>
    %41 = vector.shape_cast %40 : vector<256xf32> to vector<256x1xf32>
    %42 = arith.addf %39, %41 : vector<256x1xf32>
    %c0_27 = arith.constant 0 : index
    %c0_28 = arith.constant 0 : index
    %43 = vector.load %arg14[%c0_27, %c0_28] : memref<256x1xf32, #tpu.memory_space<vmem>>, vector<256x1xf32>
    tpu.vector_store %arg14[%c0_27, %c0_28], %42 {strides = array<i32>} : memref<256x1xf32, #tpu.memory_space<vmem>>, vector<256x1xf32>,
    %c0_29 = arith.constant 0 : index
    %c0_30 = arith.constant 0 : index
    %44 = vector.load %arg15[%c0_29, %c0_30] : memref<256x128xf32, #tpu.memory_space<vmem>>, vector<256x128xf32>
    %45 = vector.broadcast %34 : vector<256x1xf32> to vector<256x128xf32>
    %46 = arith.mulf %45, %44 : vector<256x128xf32>
    %47 = arith.truncf %37 : vector<256x256xf32> to vector<256x256xbf16>
    %cst_31 = arith.constant dense<0.000000e+00> : vector<256x128xf32>
    %48 = tpu.matmul %47, %27, %cst_31 {dimension_numbers = #tpu.dot_dimension_numbers<[1], [0], [0], [1], [0, 0, 1, 1], [], []>} : vector<256x256xbf16>, vector<256x128xbf16>, vector<256x128xf32> -> vector<256x128xf32>
    %49 = arith.addf %46, %48 : vector<256x128xf32>
    %c0_32 = arith.constant 0 : index
    %c0_33 = arith.constant 0 : index
    %50 = vector.load %arg15[%c0_32, %c0_33] : memref<256x128xf32, #tpu.memory_space<vmem>>, vector<256x128xf32>
    tpu.vector_store %arg15[%c0_32, %c0_33], %49 {strides = array<i32>} : memref<256x128xf32, #tpu.memory_space<vmem>>, vector<256x128xf32>,
    %c0_34 = arith.constant 0 : index
    %c0_35 = arith.constant 0 : index
    %51 = vector.load %arg13[%c0_34, %c0_35] : memref<256x1xf32, #tpu.memory_space<vmem>>, vector<256x1xf32>
    tpu.vector_store %arg13[%c0_34, %c0_35], %32 {strides = array<i32>} : memref<256x1xf32, #tpu.memory_space<vmem>>, vector<256x1xf32>,
    %c1_i32_36 = arith.constant 1 : i32
    %c0_37 = arith.constant 0 : index
    %c0_38 = arith.constant 0 : index
    %52 = vector.load %arg15[%c0_37, %c0_38] : memref<256x128xf32, #tpu.memory_space<vmem>>, vector<256x128xf32>
    %c0_39 = arith.constant 0 : index
    %c0_40 = arith.constant 0 : index
    %53 = vector.load %arg14[%c0_39, %c0_40] : memref<256x1xf32, #tpu.memory_space<vmem>>, vector<256x1xf32>
    %54 = tpu.reciprocal %53 {approx = true} : vector<256x1xf32> -> vector<256x1xf32>
    %55 = vector.broadcast %54 : vector<256x1xf32> to vector<256x128xf32>
    %56 = arith.mulf %52, %55 : vector<256x128xf32>
    %c0_41 = arith.constant 0 : index
    %c0_42 = arith.constant 0 : index
    %57 = memref.load %arg9[%c0_41, %c0_42] : memref<1x1xf32, #tpu.memory_space<smem>>
    %58 = vector.broadcast %57 : f32 to vector<256x128xf32>
    %59 = arith.mulf %58, %56 : vector<256x128xf32>
    %60 = arith.extf %7 : vector<256x128xbf16> to vector<256x128xf32>
    %61 = arith.addf %59, %60 : vector<256x128xf32>
    %62 = arith.truncf %61 : vector<256x128xf32> to vector<256x128xbf16>
    %c0_43 = arith.constant 0 : index
    %c0_44 = arith.constant 0 : index
    %c0_45 = arith.constant 0 : index
    %63 = vector.load %arg10[%c0_43, %c0_44, %c0_45] : memref<1x256x128xbf16, #tpu.memory_space<vmem>>, vector<1x256x128xbf16>
    %64 = vector.shape_cast %63 : vector<1x256x128xbf16> to vector<256x128xbf16>
    %65 = vector.shape_cast %62 : vector<256x128xbf16> to vector<1x256x128xbf16>
    tpu.vector_store %arg10[%c0_43, %c0_44, %c0_45], %65 {strides = array<i32>} : memref<1x256x128xbf16, #tpu.memory_space<vmem>>, vector<1x256x128xbf16>,
    return
  }
  func.func @transform_0(%arg0: i32, %arg1: i32) -> (i32, i32, i32) {
    %c0_i32 = arith.constant 0 : i32
    %c0_i32_0 = arith.constant 0 : i32
    %c0_i32_1 = arith.constant 0 : i32
    return %arg0, %c0_i32, %c0_i32_0 : i32, i32, i32
  }
  func.func @transform_1(%arg0: i32, %arg1: i32) -> (i32, i32) {
    %c0_i32 = arith.constant 0 : i32
    %c0_i32_0 = arith.constant 0 : i32
    %c0_i32_1 = arith.constant 0 : i32
    return %c0_i32, %c0_i32_0 : i32, i32
  }
  func.func @transform_2(%arg0: i32, %arg1: i32) -> (i32, i32) {
    %c0_i32 = arith.constant 0 : i32
    %c0_i32_0 = arith.constant 0 : i32
    %c0_i32_1 = arith.constant 0 : i32
    return %c0_i32, %c0_i32_0 : i32, i32
  }
  func.func @transform_3(%arg0: i32, %arg1: i32) -> (i32, i32) {
    %c0_i32 = arith.constant 0 : i32
    %c0_i32_0 = arith.constant 0 : i32
    %c0_i32_1 = arith.constant 0 : i32
    return %c0_i32, %c0_i32_0 : i32, i32
  }
  func.func @transform_4(%arg0: i32, %arg1: i32) -> (i32, i32) {
    %c0_i32 = arith.constant 0 : i32
    %c0_i32_0 = arith.constant 0 : i32
    %c0_i32_1 = arith.constant 0 : i32
    return %c0_i32, %c0_i32_0 : i32, i32
  }
  func.func @transform_5(%arg0: i32, %arg1: i32) -> (i32, i32) {
    %c0_i32 = arith.constant 0 : i32
    %c0_i32_0 = arith.constant 0 : i32
    %c0_i32_1 = arith.constant 0 : i32
    return %c0_i32, %c0_i32_0 : i32, i32
  }
  func.func @transform_6(%arg0: i32, %arg1: i32) -> (i32, i32) {
    %c0_i32 = arith.constant 0 : i32
    %c0_i32_0 = arith.constant 0 : i32
    %c0_i32_1 = arith.constant 0 : i32
    return %c0_i32, %c0_i32_0 : i32, i32
  }
  func.func @transform_7(%arg0: i32, %arg1: i32) -> (i32, i32) {
    %c0_i32 = arith.constant 0 : i32
    %c0_i32_0 = arith.constant 0 : i32
    %c0_i32_1 = arith.constant 0 : i32
    return %c0_i32, %c0_i32_0 : i32, i32
  }
  func.func @transform_8(%arg0: i32, %arg1: i32) -> (i32, i32, i32) {
    %c0_i32 = arith.constant 0 : i32
    %c0_i32_0 = arith.constant 0 : i32
    return %arg0, %arg1, %c0_i32 : i32, i32, i32
  }
}

</mosaic_0001>

<bundles_post_ra>
// kernel: pam_module_forward.1
= control target key start
LH: loop header
LB: loop body
LE: loop exit
PB: predicated region body
PF: predicated region fallthrough
CT: control target
= control target key end

     0   :  { %s4739_s29 = smov 0   ;;  %s4741_s30 = smov 0   ;;  %s6395_s0 = inlined_call_operand.vmem [shape: bf16[2,256,128], index: 0, kind: input, shape index: {}]   ;;  %s6396_s1 = inlined_call_operand.vmem [shape: bf16[128,128], index: 1, kind: input, shape index: {}]   ;;  %s6397_s2 = inlined_call_operand.vmem [shape: bf16[128,128], index: 2, kind: input, shape index: {}]   ;;  %s6398_s3 = inlined_call_operand.vmem [shape: bf16[128,128], index: 3, kind: input, shape index: {}]   ;;  %s6399_s4 = inlined_call_operand.vmem [shape: f32[1,128], index: 4, kind: input, shape index: {}]   ;;  %s6400_s5 = inlined_call_operand.vmem [shape: f32[1,128], index: 5, kind: input, shape index: {}]   ;;  %s6401_s6 = inlined_call_operand.vmem [shape: f32[1,128], index: 6, kind: input, shape index: {}]   ;;  %s6402_s7 = inlined_call_operand.<no memory space> [shape: f32[1,1], index: 7, kind: input, shape index: {}]   ;;  %s6403_s8 = inlined_call_operand.vmem [shape: bf16[2,256,128], index: 8, kind: output, shape index: {}]  }
   0x1   :  { %13 = sst [smem:[#allocation7]] %s6402_s7  ;;  %s4743_s9 = smov 0  }
   0x2 LB: > { %s31_s7 = sadd.s32 1, %s4682_s30  ;;  %p3672_p0 = scmp.ge.s32.totalorder %s4686_s9, 1  ;;  %s4686_s9 = sphi %s4743_s9, %s19_s9   ;;  %s4682_s30 = sphi %s4741_s30, %s6665_s30   ;;  %s4678_s29 = sphi %s4739_s29, %s6664_s29  }
   0x3   : > { %p33_p1 = scmp.ge.s32.totalorder %s31_s7, 2  ;;  %p277_p2 = scmp.lt.s32.totalorder %s4686_s9, 3 }
   0x5   : > { %s6667_s7 = smov (%p33_p1, %s31_s7), 0  ;;  %p278_p3 = pnand %p3672_p0, %p277_p2 }
   0x7   : > { %281 = sbr.rel (%p278_p3) target bundleno = 1269 (0x4f5), region = 52 }
   0xe   : > { %v4320_v0 = vld [vmem:[%s6397_s2] sm:$0xff]   ;;  %p315_p4 = scmp.lt.s32.totalorder %s4678_s29, 1  ;;  %v4321_v1 = vld [vmem:[%s6397_s2 + $0x8] sm:$0xff]   ;;  %v4322_v2 = vld [vmem:[%s6397_s2 + $0x10] sm:$0xff]   ;;  %vm1372_vm0 = vcmask 7168   ;;  %s3327_s15 = sld [smem:[#allocation7]] }
   0xf   : > { %4131 = vmatprep.subr.bf16.mxu0 %v4320_v0  ;;  %4275 = vmatprep.subr.bf16.mxu1 %v4320_v0  ;;  %v4323_v3 = vld [vmem:[%s6397_s2 + $0x18] sm:$0xff]   ;;  %v4324_v6 = vld [vmem:[%s6397_s2 + $0x20] sm:$0xff]   ;;  %v4325_v7 = vld [vmem:[%s6397_s2 + $0x28] sm:$0xff]  }
  0x10   : > { %s6669_s29 = smov (!%p315_p4, %s4678_s29), 1  ;;  %4132 = vmatpush3.bf16.msra.mxu0 %v4320_v0  ;;  %4283 = vmatpush3.bf16.msra.mxu1 %v4320_v0  ;;  %v4326_v8 = vld [vmem:[%s6397_s2 + $0x30] sm:$0xff]   ;;  %v4327_v9 = vld [vmem:[%s6397_s2 + $0x38] sm:$0xff]   ;;  %v4339_v11 = vld [vmem:[%s6396_s1] sm:$0xff]  }
  0x11   : > { %4133 = vmatprep.subr.bf16.mxu0 %v4321_v1  ;;  %4276 = vmatprep.subr.bf16.mxu1 %v4321_v1  ;;  %s3770_s16 = sshll.u32 %s6669_s29, 7  ;;  %v4341_v15 = vld [vmem:[%s6396_s1 + $0x8] sm:$0xff]   ;;  %v4342_v16 = vld [vmem:[%s6396_s1 + $0x10] sm:$0xff]   ;;  %v4364_v18 = vld [vmem:[%s6398_s3] sm:$0xff]  }
  0x12   : > { %s4774_s19 = scalar_lea.vmem %s6395_s0, %s3770_s16  ;;  %v4365_v19 = vld [vmem:[%s6398_s3 + $0x8] sm:$0xff]   ;;  %v4343_v23 = vld [vmem:[%s6396_s1 + $0x18] sm:$0xff]   ;;  %v4366_v24 = vld [vmem:[%s6398_s3 + $0x10] sm:$0xff]   ;;  %s6295_s20 = scalar_lea.vmem %s6403_s8, %s3770_s16 }
  0x13   : > { %v4780_v4 = vld [vmem:[%s4774_s19] sm:$0xff]   ;;  %v4800_v10 = vld [vmem:[%s4774_s19 + $0x8] sm:$0xff]   ;;  %v4809_v13 = vld [vmem:[%s4774_s19 + $0x50] sm:$0xff]  }
  0x14   : > { %4134 = vmatpush3.bf16.msra.mxu0 %v4321_v1  ;;  %4284 = vmatpush3.bf16.msra.mxu1 %v4321_v1  ;;  %v4783_v5 = vld [vmem:[%s4774_s19 + $0x40] sm:$0xff]   ;;  %v4806_v12 = vld [vmem:[%s4774_s19 + $0x48] sm:$0xff]   ;;  %v4812_v14 = vld [vmem:[%s4774_s19 + $0x10] sm:$0xff]  }
  0x15   : > { %4135 = vmatprep.subr.bf16.mxu0 %v4322_v2  ;;  %4277 = vmatprep.subr.bf16.mxu1 %v4322_v2  ;;  %v4825_v17 = vld [vmem:[%s4774_s19 + $0x58] sm:$0xff]   ;;  %v4837_v21 = vld [vmem:[%s4774_s19 + $0x60] sm:$0xff]   ;;  %v4859_v27 = vld [vmem:[%s4774_s19 + $0x68] sm:$0xff]  }
  0x16   : > { %4147 = vmatprep.mubr.bf16.mxu0 %v4780_v4  ;;  %4163 = vmatprep.mubr.bf16.mxu1 %v4783_v5  ;;  %v4834_v20 = vld [vmem:[%s4774_s19 + $0x18] sm:$0xff]   ;;  %v4840_v22 = vld [vmem:[%s4774_s19 + $0x20] sm:$0xff]   ;;  %v4340_v28 = vld [vmem:[%s4774_s19 + $0x28] sm:$0xff]  }
  0x17   : > { %v4347_v25 = vld [vmem:[%s6396_s1 + $0x20] sm:$0xff]   ;;  %v4369_v26 = vld [vmem:[%s6398_s3 + $0x18] sm:$0xff]   ;;  %v4863_v29 = vld [vmem:[%s4774_s19 + $0x70] sm:$0xff]  }
  0x18   : > { %4136 = vmatpush3.bf16.msra.mxu0 %v4322_v2  ;;  %4285 = vmatpush3.bf16.msra.mxu1 %v4322_v2  ;;  %v4345_v30 = vld [vmem:[%s4774_s19 + $0x30] sm:$0xff]   ;;  %v4349_v31 = vld [vmem:[%s6396_s1 + $0x28] sm:$0xff]   ;;  %v4370_v32 = vld [vmem:[%s6398_s3 + $0x20] sm:$0xff]  }
  0x19   : > { %4137 = vmatprep.subr.bf16.mxu0 %v4323_v3  ;;  %4278 = vmatprep.subr.bf16.mxu1 %v4323_v3  ;;  %v996_v33 = vld [vmem:[%s4774_s19] sm:$0xff]   ;;  %v4350_v34 = vld [vmem:[%s6396_s1 + $0x30] sm:$0xff]   ;;  %v4371_v35 = vld [vmem:[%s6398_s3 + $0x28] sm:$0xff]  }
  0x1a   : > { %v4882_v36 = vld [vmem:[%s4774_s19 + $0x78] sm:$0xff]   ;;  %v4372_v39 = vld [vmem:[%s6398_s3 + $0x30] sm:$0xff]   ;;  %v998_v40 = vld [vmem:[%s4774_s19 + $0x8] sm:$0xff]  }
  0x1b   : > { %v4348_v37 = vld [vmem:[%s4774_s19 + $0x38] sm:$0xff]   ;;  %v1000_v41 = vld [vmem:[%s4774_s19 + $0x10] sm:$0xff]   ;;  %v1004_v44 = vld [vmem:[%s4774_s19 + $0x20] sm:$0xff]  }
  0x1c   : > { %4138 = vmatpush3.bf16.msra.mxu0 %v4323_v3  ;;  %4286 = vmatpush3.bf16.msra.mxu1 %v4323_v3  ;;  %v4351_v38 = vld [vmem:[%s6396_s1 + $0x38] sm:$0xff]   ;;  %v1006_v45 = vld [vmem:[%s4774_s19 + $0x28] sm:$0xff]   ;;  %v1008_v46 = vld [vmem:[%s4774_s19 + $0x30] sm:$0xff]  }
  0x1d   : > { %4139 = vmatprep.subr.bf16.mxu0 %v4324_v6  ;;  %4279 = vmatprep.subr.bf16.mxu1 %v4324_v6  ;;  %v4375_v42 = vld [vmem:[%s6398_s3 + $0x38] sm:$0xff]   ;;  %v1012_v48 = vld [vmem:[%s4774_s19 + $0x40] sm:$0xff]   ;;  %v1014_v49 = vld [vmem:[%s4774_s19 + $0x48] sm:$0xff]  }
  0x1e   : > { %v1002_v43 = vld [vmem:[%s4774_s19 + $0x18] sm:$0xff]   ;;  %v1016_v50 = vld [vmem:[%s4774_s19 + $0x50] sm:$0xff]   ;;  %v1020_v52 = vld [vmem:[%s4774_s19 + $0x60] sm:$0xff]  }
  0x1f   : > { %v1010_v47 = vld [vmem:[%s4774_s19 + $0x38] sm:$0xff]   ;;  %v1022_v53 = vld [vmem:[%s4774_s19 + $0x68] sm:$0xff]   ;;  %v1024_v54 = vld [vmem:[%s4774_s19 + $0x70] sm:$0xff]  }
  0x20   : > { %4140 = vmatpush3.bf16.msra.mxu0 %v4324_v6  ;;  %4287 = vmatpush3.bf16.msra.mxu1 %v4324_v6  ;;  %v1018_v51 = vld [vmem:[%s4774_s19 + $0x58] sm:$0xff]   ;;  %v4926_v56 = vld [vmem:[%s6400_s5] ss:$0 sm:$0xff] }
  0x21   : > { %4141 = vmatprep.subr.bf16.mxu0 %v4325_v7  ;;  %4280 = vmatprep.subr.bf16.mxu1 %v4325_v7  ;;  %v1026_v55 = vld [vmem:[%s4774_s19 + $0x78] sm:$0xff]  }
  0x24   : > { %4142 = vmatpush3.bf16.msra.mxu0 %v4325_v7  ;;  %4288 = vmatpush3.bf16.msra.mxu1 %v4325_v7 }
  0x25   : > { %4143 = vmatprep.subr.bf16.mxu0 %v4326_v8  ;;  %4281 = vmatprep.subr.bf16.mxu1 %v4326_v8 }
  0x28   : > { %4144 = vmatpush3.bf16.msra.mxu0 %v4326_v8  ;;  %4289 = vmatpush3.bf16.msra.mxu1 %v4326_v8 }
  0x29   : > { %4145 = vmatprep.subr.bf16.mxu0 %v4327_v9  ;;  %4282 = vmatprep.subr.bf16.mxu1 %v4327_v9 }
  0x2c   : > { %4146 = vmatpush3.bf16.msra.mxu0 %v4327_v9  ;;  %4290 = vmatpush3.bf16.msra.mxu1 %v4327_v9 }
  0x2d   : > { %4227 = vmatprep.subr.bf16.mxu0 %v4339_v11  ;;  %4179 = vmatprep.subr.bf16.mxu1 %v4364_v18 }
  0x2f   : > { %4148 = vmatmul.mubr.bf16.vlgmr.msra.gmra.mrb[0].mxu0 %v4800_v10  ;;  %4164 = vmatmul.mubr.bf16.vlgmr.msra.gmra.mrb[0].mxu1 %v4806_v12 }
  0x30   : > { %4167 = vmatprep.mubr.bf16.mxu1 %v4809_v13  ;;  %4151 = vmatprep.mubr.bf16.mxu0 %v4812_v14 }
  0x31   : > { %4228 = vmatpush3.bf16.msra.mxu0 %v4339_v11  ;;  %4180 = vmatpush3.bf16.msra.mxu1 %v4364_v18 }
  0x32   : > { %4229 = vmatprep.subr.bf16.mxu0 %v4341_v15  ;;  %4181 = vmatprep.subr.bf16.mxu1 %v4365_v19 }
  0x35   : > { %4230 = vmatpush3.bf16.msra.mxu0 %v4341_v15  ;;  %4182 = vmatpush3.bf16.msra.mxu1 %v4365_v19 }
  0x36   : > { %4231 = vmatprep.subr.bf16.mxu0 %v4342_v16  ;;  %4183 = vmatprep.subr.bf16.mxu1 %v4366_v24 }
  0x37   : > { %4168 = vmatmul.mubr.bf16.gmra.mrb[4].mxu1 %v4825_v17  ;;  %4152 = vmatmul.mubr.bf16.gmra.mrb[4].mxu0 %v4834_v20 }
  0x38   : > { %4171 = vmatprep.mubr.bf16.mxu1 %v4837_v21  ;;  %4155 = vmatprep.mubr.bf16.mxu0 %v4840_v22 }
  0x39   : > { %4232 = vmatpush3.bf16.msra.mxu0 %v4342_v16  ;;  %4184 = vmatpush3.bf16.msra.mxu1 %v4366_v24 }
  0x3a   : > { %4233 = vmatprep.subr.bf16.mxu0 %v4343_v23  ;;  %4185 = vmatprep.subr.bf16.mxu1 %v4369_v26 }
  0x3d   : > { %4234 = vmatpush3.bf16.msra.mxu0 %v4343_v23  ;;  %4186 = vmatpush3.bf16.msra.mxu1 %v4369_v26 }
  0x3e   : > { %4235 = vmatprep.subr.bf16.mxu0 %v4347_v25  ;;  %4187 = vmatprep.subr.bf16.mxu1 %v4370_v32 }
  0x3f   : > { %4172 = vmatmul.mubr.bf16.gmra.mrb[8].mxu1 %v4859_v27  ;;  %4156 = vmatmul.mubr.bf16.gmra.mrb[8].mxu0 %v4340_v28 }
  0x40   : > { %4175 = vmatprep.mubr.bf16.mxu1 %v4863_v29  ;;  %4159 = vmatprep.mubr.bf16.mxu0 %v4345_v30 }
  0x41   : > { %4236 = vmatpush3.bf16.msra.mxu0 %v4347_v25  ;;  %4188 = vmatpush3.bf16.msra.mxu1 %v4370_v32 }
  0x42   : > { %4237 = vmatprep.subr.bf16.mxu0 %v4349_v31  ;;  %4189 = vmatprep.subr.bf16.mxu1 %v4371_v35 }
  0x45   : > { %4238 = vmatpush3.bf16.msra.mxu0 %v4349_v31  ;;  %4190 = vmatpush3.bf16.msra.mxu1 %v4371_v35 }
  0x46   : > { %4239 = vmatprep.subr.bf16.mxu0 %v4350_v34  ;;  %4191 = vmatprep.subr.bf16.mxu1 %v4372_v39 }
  0x47   : > { %4176 = vmatmul.mubr.bf16.gmra.mrb[12].mxu1 %v4882_v36  ;;  %4160 = vmatmul.mubr.bf16.gmra.mrb[12].mxu0 %v4348_v37 }
  0x48   : > { %4243 = vmatprep.mubr.bf16.mxu0 %v996_v33  ;;  %4195 = vmatprep.mubr.bf16.mxu1 %v4780_v4 }
  0x49   : > { %4240 = vmatpush3.bf16.msra.mxu0 %v4350_v34  ;;  %4192 = vmatpush3.bf16.msra.mxu1 %v4372_v39 }
  0x4a   : > { %4241 = vmatprep.subr.bf16.mxu0 %v4351_v38  ;;  %4193 = vmatprep.subr.bf16.mxu1 %v4375_v42 }
  0x4d   : > { %4242 = vmatpush3.bf16.msra.mxu0 %v4351_v38  ;;  %4194 = vmatpush3.bf16.msra.mxu1 %v4375_v42 }
  0x50   : > { %4244 = vmatmul.mubr.bf16.vlgmr.msra.gmra.mrb[16].mxu0 %v998_v40  ;;  %4196 = vmatmul.mubr.bf16.vlgmr.msra.gmra.mrb[16].mxu1 %v4800_v10 }
  0x51   : > { %4247 = vmatprep.mubr.bf16.mxu0 %v1000_v41  ;;  %4199 = vmatprep.mubr.bf16.mxu1 %v4812_v14 }
  0x58   : > { %4248 = vmatmul.mubr.bf16.gmra.mrb[20].mxu0 %v1002_v43  ;;  %4200 = vmatmul.mubr.bf16.gmra.mrb[20].mxu1 %v4834_v20 }
  0x59   : > { %4251 = vmatprep.mubr.bf16.mxu0 %v1004_v44  ;;  %4203 = vmatprep.mubr.bf16.mxu1 %v4840_v22 }
  0x60   : > { %4252 = vmatmul.mubr.bf16.gmra.mrb[24].mxu0 %v1006_v45  ;;  %4204 = vmatmul.mubr.bf16.gmra.mrb[24].mxu1 %v4340_v28 }
  0x61   : > { %4255 = vmatprep.mubr.bf16.mxu0 %v1008_v46  ;;  %4207 = vmatprep.mubr.bf16.mxu1 %v4345_v30 }
  0x68   : > { %4256 = vmatmul.mubr.bf16.gmra.mrb[28].mxu0 %v1010_v47  ;;  %4208 = vmatmul.mubr.bf16.gmra.mrb[28].mxu1 %v4348_v37 }
  0x69   : > { %4259 = vmatprep.mubr.bf16.mxu0 %v1012_v48  ;;  %4211 = vmatprep.mubr.bf16.mxu1 %v4783_v5 }
  0x70   : > { %4260 = vmatmul.mubr.bf16.gmra.mrb[32].mxu0 %v1014_v49  ;;  %4212 = vmatmul.mubr.bf16.gmra.mrb[32].mxu1 %v4806_v12 }
  0x71   : > { %4263 = vmatprep.mubr.bf16.mxu0 %v1016_v50  ;;  %4215 = vmatprep.mubr.bf16.mxu1 %v4809_v13 }
  0x78   : > { %4264 = vmatmul.mubr.bf16.gmra.mrb[36].mxu0 %v1018_v51  ;;  %4216 = vmatmul.mubr.bf16.gmra.mrb[36].mxu1 %v4825_v17 }
  0x79   : > { %4267 = vmatprep.mubr.bf16.mxu0 %v1020_v52  ;;  %4219 = vmatprep.mubr.bf16.mxu1 %v4837_v21 }
  0x80   : > { %4268 = vmatmul.mubr.bf16.gmra.mrb[40].mxu0 %v1022_v53  ;;  %4220 = vmatmul.mubr.bf16.gmra.mrb[40].mxu1 %v4859_v27 }
  0x81   : > { %4271 = vmatprep.mubr.bf16.mxu0 %v1024_v54  ;;  %4223 = vmatprep.mubr.bf16.mxu1 %v4863_v29 }
  0x88   : > { %4272 = vmatmul.mubr.bf16.gmra.mrb[44].mxu0 %v1026_v55  ;;  %4224 = vmatmul.mubr.bf16.gmra.mrb[44].mxu1 %v4882_v36 }
 0x102   : > { %v4149_v57 = vpop.f32.mrb[0].mxu0  ;;  %v4165_v58 = vpop.f32.mrb[0].mxu1 }
 0x103   : > { %v593_v59 = vadd.f32 %v4149_v57, %v4926_v56  ;;  %v584_v60 = vpop.f32.mrb[1].mxu0  ;;  %v648_v61 = vpop.f32.mrb[1].mxu1  ;;  %v657_v0 = vadd.f32 %v4165_v58, %v4926_v56 }
 0x104   : > { %v4150_v62 = vpop.f32.mrb[2].mxu0  ;;  %v4166_v63 = vpop.f32.mrb[2].mxu1  ;;  %v585_v5 = vadd.f32 %v4926_v56, %v584_v60  ;;  %v649_v6 = vadd.f32 %v4926_v56, %v648_v61 }
 0x105   : > { %v596_v1 = vadd.f32 %v4150_v62, %v4926_v56  ;;  %v660_v2 = vadd.f32 %v4166_v63, %v4926_v56  ;;  %v587_v3 = vpop.f32.mrb[3].mxu0  ;;  %v651_v4 = vpop.f32.mrb[3].mxu1 }
 0x106   : > { %v588_v7 = vadd.f32 %v4926_v56, %v587_v3  ;;  %v652_v8 = vadd.f32 %v4926_v56, %v651_v4 }
 0x107   : > { %v712_v9 = vpack.c.bf16 %v596_v1, %v593_v59  ;;  %v720_v10 = vpack.c.bf16 %v660_v2, %v657_v0 }
 0x108   : > { %v711_v11 = vpack.c.bf16 %v588_v7, %v585_v5  ;;  %v719_v12 = vpack.c.bf16 %v652_v8, %v649_v6 }
 0x10a   : > { %3971 = vmatprep.subr.bf16.mxu1 %v719_v12  ;;  %v4169_v13 = vpop.f32.mrb[4].mxu1  ;;  %v4153_v14 = vpop.f32.mrb[4].mxu0 }
 0x10b   : > { %3972 = vmatpush3.bf16.xpose.msra.mxu1 %v711_v11  ;;  %v673_v15 = vadd.f32 %v4169_v13, %v4926_v56  ;;  %v4938_v16 = vadd.f32 %v4153_v14, %v4926_v56  ;;  %v664_v17 = vpop.f32.mrb[5].mxu1  ;;  %v600_v18 = vpop.f32.mrb[5].mxu0 }
 0x10c   : > { %3973 = vmatprep.subr.bf16.mxu1 %v720_v10  ;;  %v665_v19 = vadd.f32 %v4926_v56, %v664_v17  ;;  %v601_v20 = vadd.f32 %v4926_v56, %v600_v18  ;;  %v4170_v21 = vpop.f32.mrb[6].mxu1  ;;  %v4154_v22 = vpop.f32.mrb[6].mxu0  ;;  %v4972_v10 = vld [vmem:[%s6399_s4] ss:$0 sm:$0xff] }
 0x10d   : > { %v676_v23 = vadd.f32 %v4170_v21, %v4926_v56  ;;  %v612_v24 = vadd.f32 %v4154_v22, %v4926_v56  ;;  %v667_v25 = vpop.f32.mrb[7].mxu1  ;;  %v603_v26 = vpop.f32.mrb[7].mxu0 }
 0x10e   : > { %v668_v27 = vadd.f32 %v4926_v56, %v667_v25  ;;  %v604_v28 = vadd.f32 %v4926_v56, %v603_v26 }
 0x10f   : > { %v722_v29 = vpack.c.bf16 %v676_v23, %v673_v15  ;;  %v714_v30 = vpack.c.bf16 %v612_v24, %v4938_v16 }
 0x110   : > { %v721_v31 = vpack.c.bf16 %v668_v27, %v665_v19  ;;  %v713_v32 = vpack.c.bf16 %v604_v28, %v601_v20 }
 0x112   : > { %v4173_v33 = vpop.f32.mrb[8].mxu1  ;;  %v4157_v34 = vpop.f32.mrb[8].mxu0 }
 0x113   : > { %3974 = vmatpush3.bf16.xpose.msra.mxu1 %v712_v9  ;;  %v689_v35 = vadd.f32 %v4173_v33, %v4926_v56  ;;  %v4949_v36 = vadd.f32 %v4157_v34, %v4926_v56  ;;  %v680_v37 = vpop.f32.mrb[9].mxu1  ;;  %v616_v38 = vpop.f32.mrb[9].mxu0 }
 0x114   : > { %3975 = vmatprep.subr.bf16.mxu1 %v721_v31  ;;  %v681_v39 = vadd.f32 %v4926_v56, %v680_v37  ;;  %v617_v40 = vadd.f32 %v4926_v56, %v616_v38  ;;  %v4174_v41 = vpop.f32.mrb[10].mxu1  ;;  %v4158_v42 = vpop.f32.mrb[10].mxu0 }
 0x115   : > { %v692_v43 = vadd.f32 %v4174_v41, %v4926_v56  ;;  %v628_v44 = vadd.f32 %v4158_v42, %v4926_v56  ;;  %v683_v45 = vpop.f32.mrb[11].mxu1  ;;  %v619_v46 = vpop.f32.mrb[11].mxu0 }
 0x116   : > { %v684_v47 = vadd.f32 %v4926_v56, %v683_v45  ;;  %v620_v48 = vadd.f32 %v4926_v56, %v619_v46 }
 0x117   : > { %v724_v49 = vpack.c.bf16 %v692_v43, %v689_v35  ;;  %v716_v50 = vpack.c.bf16 %v628_v44, %v4949_v36 }
 0x118   : > { %v723_v51 = vpack.c.bf16 %v684_v47, %v681_v39  ;;  %v715_v52 = vpack.c.bf16 %v620_v48, %v617_v40 }
 0x11a   : > { %v4177_v53 = vpop.f32.mrb[12].mxu1  ;;  %v4161_v54 = vpop.f32.mrb[12].mxu0 }
 0x11b   : > { %3976 = vmatpush3.bf16.xpose.msra.mxu1 %v713_v32  ;;  %v705_v55 = vadd.f32 %v4177_v53, %v4926_v56  ;;  %v4960_v57 = vadd.f32 %v4161_v54, %v4926_v56  ;;  %v696_v58 = vpop.f32.mrb[13].mxu1  ;;  %v632_v59 = vpop.f32.mrb[13].mxu0 }
 0x11c   : > { %3977 = vmatprep.subr.bf16.mxu1 %v722_v29  ;;  %v697_v60 = vadd.f32 %v4926_v56, %v696_v58  ;;  %v633_v61 = vadd.f32 %v4926_v56, %v632_v59  ;;  %v4178_v62 = vpop.f32.mrb[14].mxu1  ;;  %v4162_v63 = vpop.f32.mrb[14].mxu0 }
 0x11d   : > { %v708_v0 = vadd.f32 %v4178_v62, %v4926_v56  ;;  %v644_v1 = vadd.f32 %v4162_v63, %v4926_v56  ;;  %v699_v2 = vpop.f32.mrb[15].mxu1  ;;  %v635_v3 = vpop.f32.mrb[15].mxu0 }
 0x11e   : > { %v700_v4 = vadd.f32 %v4926_v56, %v699_v2  ;;  %v636_v5 = vadd.f32 %v4926_v56, %v635_v3 }
 0x11f   : > { %v726_v6 = vpack.c.bf16 %v708_v0, %v705_v55  ;;  %v718_v7 = vpack.c.bf16 %v644_v1, %v4960_v57 }
 0x120   : > { %v725_v8 = vpack.c.bf16 %v700_v4, %v697_v60  ;;  %v717_v9 = vpack.c.bf16 %v636_v5, %v633_v61 }
 0x123   : > { %3978 = vmatpush3.bf16.xpose.msra.mxu1 %v714_v30  ;;  %v4245_v11 = vpop.f32.mrb[16].mxu0 }
 0x124   : > { %3979 = vmatprep.subr.bf16.mxu1 %v723_v51  ;;  %v1238_v12 = vadd.f32 %v4245_v11, %v4972_v10  ;;  %v1229_v13 = vpop.f32.mrb[17].mxu0  ;;  %v5010_v51 = vld [vmem:[%s6401_s6] ss:$0 sm:$0xff] }
 0x125   : > { %v1230_v14 = vadd.f32 %v4972_v10, %v1229_v13  ;;  %v4246_v15 = vpop.f32.mrb[18].mxu0 }
 0x126   : > { %v1241_v56 = vadd.f32 %v4246_v15, %v4972_v10  ;;  %v1232_v16 = vpop.f32.mrb[19].mxu0 }
 0x127   : > { %v1233_v17 = vadd.f32 %v4972_v10, %v1232_v16 }
 0x128   : > { %v4978_v18 = vpack.c.bf16 %v1241_v56, %v1238_v12 }
 0x129   : > { %v4980_v19 = vpack.c.bf16 %v1233_v17, %v1230_v14 }
 0x12b   : > { %3980 = vmatpush3.bf16.xpose.msra.mxu1 %v715_v52  ;;  %3987 = vmatprep.mubr.bf16.mxu1 %v4980_v19  ;;  %v4249_v20 = vpop.f32.mrb[20].mxu0 }
 0x12c   : > { %3981 = vmatprep.subr.bf16.mxu1 %v724_v49  ;;  %v1254_v21 = vadd.f32 %v4249_v20, %v4972_v10  ;;  %v1245_v22 = vpop.f32.mrb[21].mxu0 }
 0x12d   : > { %v1246_v23 = vadd.f32 %v4972_v10, %v1245_v22  ;;  %v4250_v24 = vpop.f32.mrb[22].mxu0 }
 0x12e   : > { %v1257_v25 = vadd.f32 %v4250_v24, %v4972_v10  ;;  %v1248_v26 = vpop.f32.mrb[23].mxu0 }
 0x12f   : > { %v1249_v27 = vadd.f32 %v4972_v10, %v1248_v26 }
 0x130   : > { %v4987_v28 = vpack.c.bf16 %v1257_v25, %v1254_v21 }
 0x131   : > { %v4989_v29 = vpack.c.bf16 %v1249_v27, %v1246_v23 }
 0x133   : > { %3982 = vmatpush3.bf16.xpose.msra.mxu1 %v716_v50  ;;  %v4253_v30 = vpop.f32.mrb[24].mxu0  ;;  %v4197_v50 = vpop.f32.mrb[16].mxu1 }
 0x134   : > { %3983 = vmatprep.subr.bf16.mxu1 %v725_v8  ;;  %v1270_v31 = vadd.f32 %v4253_v30, %v4972_v10  ;;  %v1261_v32 = vpop.f32.mrb[25].mxu0  ;;  %v5013_v53 = vadd.f32 %v4197_v50, %v5010_v51  ;;  %v832_v54 = vpop.f32.mrb[17].mxu1 }
 0x135   : > { %v1262_v33 = vadd.f32 %v4972_v10, %v1261_v32  ;;  %v4254_v34 = vpop.f32.mrb[26].mxu0  ;;  %v5017_v58 = vadd.f32 %v5010_v51, %v832_v54  ;;  %v4198_v59 = vpop.f32.mrb[18].mxu1 }
 0x136   : > { %v1273_v35 = vadd.f32 %v4254_v34, %v4972_v10  ;;  %v1264_v36 = vpop.f32.mrb[27].mxu0  ;;  %v5021_v62 = vadd.f32 %v4198_v59, %v5010_v51  ;;  %v835_v63 = vpop.f32.mrb[19].mxu1 }
 0x137   : > { %v1265_v37 = vadd.f32 %v4972_v10, %v1264_v36  ;;  %v5025_v2 = vadd.f32 %v5010_v51, %v835_v63  ;;  %v4201_v3 = vpop.f32.mrb[20].mxu1 }
 0x138   : > { %v4995_v38 = vpack.c.bf16 %v1273_v35, %v1270_v31  ;;  %v960_v5 = vpack.c.bf16 %v5021_v62, %v5013_v53 }
 0x139   : > { %v4997_v39 = vpack.c.bf16 %v1265_v37, %v1262_v33 }
 0x13b   : > { %3984 = vmatpush3.bf16.xpose.msra.mxu1 %v717_v9  ;;  %v4257_v40 = vpop.f32.mrb[28].mxu0  ;;  %v959_v9 = vpack.c.bf16 %v5025_v2, %v5017_v58 }
 0x13c   : > { %3985 = vmatprep.subr.bf16.mxu1 %v726_v6  ;;  %v1286_v41 = vadd.f32 %v4257_v40, %v4972_v10  ;;  %v1277_v42 = vpop.f32.mrb[29].mxu0  ;;  %v5031_v6 = vadd.f32 %v4201_v3, %v5010_v51 }
 0x13d   : > { %v1278_v43 = vadd.f32 %v4972_v10, %v1277_v42  ;;  %v4258_v44 = vpop.f32.mrb[30].mxu0 }
 0x13e   : > { %v1289_v45 = vadd.f32 %v4258_v44, %v4972_v10  ;;  %v1280_v46 = vpop.f32.mrb[31].mxu0 }
 0x13f   : > { %v1281_v47 = vadd.f32 %v4972_v10, %v1280_v46 }
 0x140   : > { %v5003_v48 = vpack.c.bf16 %v1289_v45, %v1286_v41 }
 0x141   : > { %v5005_v49 = vpack.c.bf16 %v1281_v47, %v1278_v43 }
 0x143   : > { %3986 = vmatpush3.bf16.xpose.msra.mxu1 %v718_v7  ;;  %v4261_v52 = vpop.f32.mrb[32].mxu0  ;;  %v848_v7 = vpop.f32.mrb[21].mxu1 }
 0x144   : > { %v1302_v55 = vadd.f32 %v4261_v52, %v4972_v10  ;;  %v1293_v57 = vpop.f32.mrb[33].mxu0  ;;  %v5038_v11 = vadd.f32 %v5010_v51, %v848_v7  ;;  %v4202_v12 = vpop.f32.mrb[22].mxu1 }
 0x145   : > { %v1294_v60 = vadd.f32 %v4972_v10, %v1293_v57  ;;  %v4262_v61 = vpop.f32.mrb[34].mxu0  ;;  %v5043_v14 = vadd.f32 %v4202_v12, %v5010_v51  ;;  %v851_v15 = vpop.f32.mrb[23].mxu1 }
 0x146   : > { %v1305_v0 = vadd.f32 %v4262_v61, %v4972_v10  ;;  %v1296_v1 = vpop.f32.mrb[35].mxu0  ;;  %v5047_v56 = vadd.f32 %v5010_v51, %v851_v15  ;;  %v4205_v16 = vpop.f32.mrb[24].mxu1 }
 0x147   : > { %v1297_v4 = vadd.f32 %v4972_v10, %v1296_v1  ;;  %v962_v20 = vpack.c.bf16 %v5043_v14, %v5031_v6  ;;  %v5053_v21 = vadd.f32 %v4205_v16, %v5010_v51  ;;  %v864_v22 = vpop.f32.mrb[25].mxu1 }
 0x148   : > { %v5033_v8 = vpack.c.bf16 %v1305_v0, %v1302_v55  ;;  %v5059_v25 = vadd.f32 %v5010_v51, %v864_v22  ;;  %v4206_v26 = vpop.f32.mrb[26].mxu1 }
 0x149   : > { %v5040_v13 = vpack.c.bf16 %v1297_v4, %v1294_v60  ;;  %v5063_v31 = vadd.f32 %v4206_v26, %v5010_v51  ;;  %v867_v32 = vpop.f32.mrb[27].mxu1 }
 0x14a   : > { %3988 = vmatmul.mubr.bf16.vlgmr.msra.gmra.mrb[48].mxu1 %v4980_v19  ;;  %v961_v19 = vpack.c.bf16 %v5047_v56, %v5038_v11  ;;  %v5067_v35 = vadd.f32 %v5010_v51, %v867_v32  ;;  %v4209_v36 = vpop.f32.mrb[28].mxu1 }
 0x14b   : > { %3989 = vmatprep.mubr.bf16.mxu1 %v4978_v18  ;;  %v4265_v17 = vpop.f32.mrb[36].mxu0  ;;  %v964_v40 = vpack.c.bf16 %v5063_v31, %v5053_v21  ;;  %v5073_v41 = vadd.f32 %v4209_v36, %v5010_v51  ;;  %v880_v42 = vpop.f32.mrb[29].mxu1 }
 0x14c   : > { %v1318_v23 = vadd.f32 %v4265_v17, %v4972_v10  ;;  %v1309_v24 = vpop.f32.mrb[37].mxu0  ;;  %v963_v44 = vpack.c.bf16 %v5067_v35, %v5059_v25  ;;  %v5080_v45 = vadd.f32 %v5010_v51, %v880_v42  ;;  %v4210_v46 = vpop.f32.mrb[30].mxu1 }
 0x14d   : > { %v1310_v27 = vadd.f32 %v4972_v10, %v1309_v24  ;;  %v4266_v30 = vpop.f32.mrb[38].mxu0  ;;  %v5085_v50 = vadd.f32 %v4210_v46, %v5010_v51  ;;  %v883_v52 = vpop.f32.mrb[31].mxu1 }
 0x14e   : > { %v1321_v33 = vadd.f32 %v4266_v30, %v4972_v10  ;;  %v1312_v34 = vpop.f32.mrb[39].mxu0  ;;  %v5089_v54 = vadd.f32 %v5010_v51, %v883_v52  ;;  %v4213_v55 = vpop.f32.mrb[32].mxu1 }
 0x14f   : > { %v1313_v37 = vadd.f32 %v4972_v10, %v1312_v34  ;;  %v966_v59 = vpack.c.bf16 %v5085_v50, %v5073_v41  ;;  %v905_v60 = vadd.f32 %v4213_v55, %v5010_v51  ;;  %v896_v61 = vpop.f32.mrb[33].mxu1 }
 0x150   : > { %v5075_v43 = vpack.c.bf16 %v1321_v33, %v1318_v23  ;;  %v965_v1 = vpack.c.bf16 %v5089_v54, %v5080_v45  ;;  %v4214_v3 = vpop.f32.mrb[34].mxu1 }
 0x151   : > { %v5082_v47 = vpack.c.bf16 %v1313_v37, %v1310_v27  ;;  %v908_v12 = vadd.f32 %v4214_v3, %v5010_v51  ;;  %v899_v15 = vpop.f32.mrb[35].mxu1 }
 0x152   : > { %3990 = vmatmul.mubr.bf16.gmra.mrb[52].mxu1 %v4978_v18  ;;  %v897_v18 = vadd.f32 %v5010_v51, %v896_v61  ;;  %v900_v22 = vadd.f32 %v5010_v51, %v899_v15  ;;  %v4217_v23 = vpop.f32.mrb[36].mxu1 }
 0x153   : > { %3991 = vmatprep.mubr.bf16.mxu1 %v4989_v29  ;;  %v4269_v57 = vpop.f32.mrb[40].mxu0  ;;  %v968_v26 = vpack.c.bf16 %v908_v12, %v905_v60  ;;  %v921_v27 = vadd.f32 %v4217_v23, %v5010_v51  ;;  %v912_v30 = vpop.f32.mrb[37].mxu1 }
 0x154   : > { %v1334_v63 = vadd.f32 %v4269_v57, %v4972_v10  ;;  %v1325_v0 = vpop.f32.mrb[41].mxu0  ;;  %v967_v33 = vpack.c.bf16 %v900_v22, %v897_v18  ;;  %v913_v34 = vadd.f32 %v5010_v51, %v912_v30  ;;  %v4218_v36 = vpop.f32.mrb[38].mxu1 }
 0x155   : > { %v1326_v4 = vadd.f32 %v4972_v10, %v1325_v0  ;;  %v4270_v7 = vpop.f32.mrb[42].mxu0  ;;  %v924_v42 = vadd.f32 %v4218_v36, %v5010_v51  ;;  %v915_v46 = vpop.f32.mrb[39].mxu1 }
 0x156   : > { %v1337_v16 = vadd.f32 %v4270_v7, %v4972_v10  ;;  %v1328_v17 = vpop.f32.mrb[43].mxu0  ;;  %4019 = vmatprep.subr.bf16.mxu0 %v967_v33  ;;  %v916_v52 = vadd.f32 %v5010_v51, %v915_v46  ;;  %v4221_v55 = vpop.f32.mrb[40].mxu1 }
 0x157   : > { %v1329_v24 = vadd.f32 %v4972_v10, %v1328_v17  ;;  %4020 = vmatpush3.bf16.msra.mxu0 %v959_v9  ;;  %v970_v60 = vpack.c.bf16 %v924_v42, %v921_v27  ;;  %v937_v61 = vadd.f32 %v4221_v55, %v5010_v51 }
 0x158   : > { %v5105_v32 = vpack.c.bf16 %v1337_v16, %v1334_v63  ;;  %v928_v63 = vpop.f32.mrb[41].mxu1  ;;  %v969_v3 = vpack.c.bf16 %v916_v52, %v913_v34  ;;  %4021 = vmatprep.subr.bf16.mxu0 %v968_v26 }
 0x159   : > { %v5108_v37 = vpack.c.bf16 %v1329_v24, %v1326_v4  ;;  %v4222_v4 = vpop.f32.mrb[42].mxu1 }
 0x15a   : > { %3992 = vmatmul.mubr.bf16.gmra.mrb[56].mxu1 %v4989_v29  ;;  %v929_v29 = vadd.f32 %v5010_v51, %v928_v63  ;;  %v940_v15 = vadd.f32 %v4222_v4, %v5010_v51  ;;  %v931_v16 = vpop.f32.mrb[43].mxu1 }
 0x15b   : > { %3993 = vmatprep.mubr.bf16.mxu1 %v4987_v28  ;;  %v4273_v57 = vpop.f32.mrb[44].mxu0  ;;  %v932_v9 = vadd.f32 %v5010_v51, %v931_v16  ;;  %4022 = vmatpush3.bf16.msra.mxu0 %v960_v5  ;;  %v4225_v23 = vpop.f32.mrb[44].mxu1 }
 0x15c   : > { %v1350_v0 = vadd.f32 %v4273_v57, %v4972_v10  ;;  %v1341_v18 = vpop.f32.mrb[45].mxu0  ;;  %v972_v22 = vpack.c.bf16 %v940_v15, %v937_v61  ;;  %4023 = vmatprep.subr.bf16.mxu0 %v969_v3  ;;  %v953_v27 = vadd.f32 %v4225_v23, %v5010_v51  ;;  %v944_v30 = vpop.f32.mrb[45].mxu1 }
 0x15d   : > { %v1342_v7 = vadd.f32 %v4972_v10, %v1341_v18  ;;  %v4274_v12 = vpop.f32.mrb[46].mxu0  ;;  %v971_v26 = vpack.c.bf16 %v932_v9, %v929_v29  ;;  %v945_v34 = vadd.f32 %v5010_v51, %v944_v30  ;;  %v4226_v36 = vpop.f32.mrb[46].mxu1 }
 0x15e   : > { %v1353_v58 = vadd.f32 %v4274_v12, %v4972_v10  ;;  %v1344_v2 = vpop.f32.mrb[47].mxu0  ;;  %v947_v42 = vpop.f32.mrb[47].mxu1 }
 0x15f   : > { %v1345_v17 = vadd.f32 %v4972_v10, %v1344_v2  ;;  %v956_v10 = vadd.f32 %v4226_v36, %v5010_v51  ;;  %4024 = vmatpush3.bf16.msra.mxu0 %v961_v19  ;;  %v948_v53 = vadd.f32 %v5010_v51, %v947_v42 }
 0x160   : > { %v1371_v24 = vpack.c.bf16 %v1353_v58, %v1350_v0  ;;  %4025 = vmatprep.subr.bf16.mxu0 %v970_v60 }
 0x161   : > { %v1370_v33 = vpack.c.bf16 %v1345_v17, %v1342_v7  ;;  %v974_v62 = vpack.c.bf16 %v956_v10, %v953_v27  ;;  %v973_v5 = vpack.c.bf16 %v948_v53, %v945_v34 }
 0x162   : > { %3994 = vmatmul.mubr.bf16.gmra.mrb[60].mxu1 %v4987_v28  ;;  %v4688_v28 = vmov -1e+30  }
 0x163   : > { %3995 = vmatprep.mubr.bf16.mxu1 %v4997_v39  ;;  %4026 = vmatpush3.bf16.msra.mxu0 %v962_v20  ;;  %1373 = vst.msk [vmem:[#allocation4] sm:$0xff] %vm1372_vm0, %v4688_v28  ;;  %1374 = vst.msk [vmem:[#allocation4 + $0x8] sm:$0xff] %vm1372_vm0, %v4688_v28 }
 0x164   : > { %4027 = vmatprep.subr.bf16.mxu0 %v971_v26  ;;  %1375 = vst.msk [vmem:[#allocation4 + $0x10] sm:$0xff] %vm1372_vm0, %v4688_v28  ;;  %1376 = vst.msk [vmem:[#allocation4 + $0x18] sm:$0xff] %vm1372_vm0, %v4688_v28 }
 0x165   : > { %1377 = vst.msk [vmem:[#allocation4 + $0x20] sm:$0xff] %vm1372_vm0, %v4688_v28  ;;  %1378 = vst.msk [vmem:[#allocation4 + $0x28] sm:$0xff] %vm1372_vm0, %v4688_v28 }
 0x166   : > { %1379 = vst.msk [vmem:[#allocation4 + $0x30] sm:$0xff] %vm1372_vm0, %v4688_v28  ;;  %1380 = vst.msk [vmem:[#allocation4 + $0x38] sm:$0xff] %vm1372_vm0, %v4688_v28 }
 0x167   : > { %4028 = vmatpush3.bf16.msra.mxu0 %v963_v44  ;;  %1381 = vst.msk [vmem:[#allocation4 + $0x40] sm:$0xff] %vm1372_vm0, %v4688_v28  ;;  %1382 = vst.msk [vmem:[#allocation4 + $0x48] sm:$0xff] %vm1372_vm0, %v4688_v28 }
 0x168   : > { %4029 = vmatprep.subr.bf16.mxu0 %v972_v22  ;;  %1383 = vst.msk [vmem:[#allocation4 + $0x50] sm:$0xff] %vm1372_vm0, %v4688_v28  ;;  %1384 = vst.msk [vmem:[#allocation4 + $0x58] sm:$0xff] %vm1372_vm0, %v4688_v28 }
 0x169   : > { %1385 = vst.msk [vmem:[#allocation4 + $0x60] sm:$0xff] %vm1372_vm0, %v4688_v28  ;;  %1386 = vst.msk [vmem:[#allocation4 + $0x68] sm:$0xff] %vm1372_vm0, %v4688_v28 }
 0x16a   : > { %3996 = vmatmul.mubr.bf16.gmra.mrb[64].mxu1 %v4997_v39  ;;  %1387 = vst.msk [vmem:[#allocation4 + $0x70] sm:$0xff] %vm1372_vm0, %v4688_v28  ;;  %1388 = vst.msk [vmem:[#allocation4 + $0x78] sm:$0xff] %vm1372_vm0, %v4688_v28 }
 0x16b   : > { %3997 = vmatprep.mubr.bf16.mxu1 %v4995_v38  ;;  %4030 = vmatpush3.bf16.msra.mxu0 %v964_v40  ;;  %1389 = vst.msk [vmem:[#allocation4 + $0x80] sm:$0xff] %vm1372_vm0, %v4688_v28  ;;  %1390 = vst.msk [vmem:[#allocation4 + $0x88] sm:$0xff] %vm1372_vm0, %v4688_v28  ;;  %v4689_v40 = vmov 0  }
 0x16c   : > { %4031 = vmatprep.subr.bf16.mxu0 %v973_v5  ;;  %1391 = vst.msk [vmem:[#allocation4 + $0x90] sm:$0xff] %vm1372_vm0, %v4688_v28  ;;  %1392 = vst.msk [vmem:[#allocation4 + $0x98] sm:$0xff] %vm1372_vm0, %v4688_v28  ;;  %4318 = vset.pattern.permute.xlu0 %v4689_v40 }
 0x16d   : > { %1393 = vst.msk [vmem:[#allocation4 + $0xa0] sm:$0xff] %vm1372_vm0, %v4688_v28  ;;  %1394 = vst.msk [vmem:[#allocation4 + $0xa8] sm:$0xff] %vm1372_vm0, %v4688_v28  ;;  %4319 = vset.pattern.permute.xlu1 %v4689_v40 }
 0x16e   : > { %1395 = vst.msk [vmem:[#allocation4 + $0xb0] sm:$0xff] %vm1372_vm0, %v4688_v28  ;;  %1396 = vst.msk [vmem:[#allocation4 + $0xb8] sm:$0xff] %vm1372_vm0, %v4688_v28 }
 0x16f   : > { %4032 = vmatpush3.bf16.msra.mxu0 %v965_v1  ;;  %1397 = vst.msk [vmem:[#allocation4 + $0xc0] sm:$0xff] %vm1372_vm0, %v4688_v28  ;;  %1398 = vst.msk [vmem:[#allocation4 + $0xc8] sm:$0xff] %vm1372_vm0, %v4688_v28 }
 0x170   : > { %4033 = vmatprep.subr.bf16.mxu0 %v974_v62  ;;  %1399 = vst.msk [vmem:[#allocation4 + $0xd0] sm:$0xff] %vm1372_vm0, %v4688_v28  ;;  %1400 = vst.msk [vmem:[#allocation4 + $0xd8] sm:$0xff] %vm1372_vm0, %v4688_v28 }
 0x171   : > { %1401 = vst.msk [vmem:[#allocation4 + $0xe0] sm:$0xff] %vm1372_vm0, %v4688_v28  ;;  %1402 = vst.msk [vmem:[#allocation4 + $0xe8] sm:$0xff] %vm1372_vm0, %v4688_v28 }
 0x172   : > { %3998 = vmatmul.mubr.bf16.gmra.mrb[68].mxu1 %v4995_v38  ;;  %1403 = vst.msk [vmem:[#allocation4 + $0xf0] sm:$0xff] %vm1372_vm0, %v4688_v28  ;;  %1404 = vst.msk [vmem:[#allocation4 + $0xf8] sm:$0xff] %vm1372_vm0, %v4688_v28 }
 0x173   : > { %3999 = vmatprep.mubr.bf16.mxu1 %v5005_v49  ;;  %4034 = vmatpush3.bf16.msra.mxu0 %v966_v59  ;;  %v4690_v59 = vmov 0.0  }
 0x174   : > { %1406 = vst.msk [vmem:[#allocation5 + $0x8] sm:$0xff] %vm1372_vm0, %v4690_v59  ;;  %1405 = vst.msk [vmem:[#allocation5] sm:$0xff] %vm1372_vm0, %v4690_v59 }
 0x175   : > { %1407 = vst.msk [vmem:[#allocation5 + $0x10] sm:$0xff] %vm1372_vm0, %v4690_v59  ;;  %1408 = vst.msk [vmem:[#allocation5 + $0x18] sm:$0xff] %vm1372_vm0, %v4690_v59 }
 0x176   : > { %1409 = vst.msk [vmem:[#allocation5 + $0x20] sm:$0xff] %vm1372_vm0, %v4690_v59  ;;  %1410 = vst.msk [vmem:[#allocation5 + $0x28] sm:$0xff] %vm1372_vm0, %v4690_v59 }
 0x177   : > { %1411 = vst.msk [vmem:[#allocation5 + $0x30] sm:$0xff] %vm1372_vm0, %v4690_v59  ;;  %1412 = vst.msk [vmem:[#allocation5 + $0x38] sm:$0xff] %vm1372_vm0, %v4690_v59 }
 0x178   : > { %1413 = vst.msk [vmem:[#allocation5 + $0x40] sm:$0xff] %vm1372_vm0, %v4690_v59  ;;  %1414 = vst.msk [vmem:[#allocation5 + $0x48] sm:$0xff] %vm1372_vm0, %v4690_v59 }
 0x179   : > { %1415 = vst.msk [vmem:[#allocation5 + $0x50] sm:$0xff] %vm1372_vm0, %v4690_v59  ;;  %1416 = vst.msk [vmem:[#allocation5 + $0x58] sm:$0xff] %vm1372_vm0, %v4690_v59 }
 0x17a   : > { %4000 = vmatmul.mubr.bf16.gmra.mrb[72].mxu1 %v5005_v49  ;;  %1417 = vst.msk [vmem:[#allocation5 + $0x60] sm:$0xff] %vm1372_vm0, %v4690_v59  ;;  %1418 = vst.msk [vmem:[#allocation5 + $0x68] sm:$0xff] %vm1372_vm0, %v4690_v59 }
 0x17b   : > { %4001 = vmatprep.mubr.bf16.mxu1 %v5003_v48  ;;  %1419 = vst.msk [vmem:[#allocation5 + $0x70] sm:$0xff] %vm1372_vm0, %v4690_v59  ;;  %1420 = vst.msk [vmem:[#allocation5 + $0x78] sm:$0xff] %vm1372_vm0, %v4690_v59 }
 0x17c   : > { %1421 = vst.msk [vmem:[#allocation5 + $0x80] sm:$0xff] %vm1372_vm0, %v4690_v59  ;;  %1422 = vst.msk [vmem:[#allocation5 + $0x88] sm:$0xff] %vm1372_vm0, %v4690_v59 }
 0x17d   : > { %1423 = vst.msk [vmem:[#allocation5 + $0x90] sm:$0xff] %vm1372_vm0, %v4690_v59  ;;  %1424 = vst.msk [vmem:[#allocation5 + $0x98] sm:$0xff] %vm1372_vm0, %v4690_v59 }
 0x17e   : > { %1425 = vst.msk [vmem:[#allocation5 + $0xa0] sm:$0xff] %vm1372_vm0, %v4690_v59  ;;  %1426 = vst.msk [vmem:[#allocation5 + $0xa8] sm:$0xff] %vm1372_vm0, %v4690_v59 }
 0x17f   : > { %1427 = vst.msk [vmem:[#allocation5 + $0xb0] sm:$0xff] %vm1372_vm0, %v4690_v59  ;;  %1428 = vst.msk [vmem:[#allocation5 + $0xb8] sm:$0xff] %vm1372_vm0, %v4690_v59 }
 0x180   : > { %1429 = vst.msk [vmem:[#allocation5 + $0xc0] sm:$0xff] %vm1372_vm0, %v4690_v59  ;;  %1430 = vst.msk [vmem:[#allocation5 + $0xc8] sm:$0xff] %vm1372_vm0, %v4690_v59 }
 0x181   : > { %1431 = vst.msk [vmem:[#allocation5 + $0xd0] sm:$0xff] %vm1372_vm0, %v4690_v59  ;;  %1432 = vst.msk [vmem:[#allocation5 + $0xd8] sm:$0xff] %vm1372_vm0, %v4690_v59 }
 0x182   : > { %4002 = vmatmul.mubr.bf16.gmra.mrb[76].mxu1 %v5003_v48  ;;  %1433 = vst.msk [vmem:[#allocation5 + $0xe0] sm:$0xff] %vm1372_vm0, %v4690_v59  ;;  %1434 = vst.msk [vmem:[#allocation5 + $0xe8] sm:$0xff] %vm1372_vm0, %v4690_v59 }
 0x183   : > { %4003 = vmatprep.mubr.bf16.mxu1 %v5040_v13  ;;  %1435 = vst.msk [vmem:[#allocation5 + $0xf0] sm:$0xff] %vm1372_vm0, %v4690_v59  ;;  %1436 = vst.msk [vmem:[#allocation5 + $0xf8] sm:$0xff] %vm1372_vm0, %v4690_v59 }
 0x18a   : > { %4004 = vmatmul.mubr.bf16.gmra.mrb[80].mxu1 %v5040_v13 }
 0x18b   : > { %4005 = vmatprep.mubr.bf16.mxu1 %v5033_v8 }
 0x192   : > { %4006 = vmatmul.mubr.bf16.gmra.mrb[84].mxu1 %v5033_v8 }
 0x193   : > { %4007 = vmatprep.mubr.bf16.mxu1 %v5082_v47 }
 0x19a   : > { %4008 = vmatmul.mubr.bf16.gmra.mrb[88].mxu1 %v5082_v47 }
 0x19b   : > { %4009 = vmatprep.mubr.bf16.mxu1 %v5075_v43 }
 0x1a2   : > { %4010 = vmatmul.mubr.bf16.gmra.mrb[92].mxu1 %v5075_v43 }
 0x1a3   : > { %4011 = vmatprep.mubr.bf16.mxu1 %v5108_v37 }
 0x1aa   : > { %4012 = vmatmul.mubr.bf16.gmra.mrb[96].mxu1 %v5108_v37 }
 0x1ab   : > { %4013 = vmatprep.mubr.bf16.mxu1 %v5105_v32 }
 0x1b2   : > { %4014 = vmatmul.mubr.bf16.gmra.mrb[100].mxu1 %v5105_v32 }
 0x1b3   : > { %4015 = vmatprep.mubr.bf16.mxu1 %v1370_v33 }
 0x1ba   : > { %4016 = vmatmul.mubr.bf16.gmra.mrb[104].mxu1 %v1370_v33 }
 0x1bb   : > { %4017 = vmatprep.mubr.bf16.mxu1 %v1371_v24 }
 0x1c2   : > { %4018 = vmatmul.mubr.bf16.gmra.mrb[108].mxu1 %v1371_v24 }
 0x21d   : > { %v5203_v38 = vpop.f32.mrb[48].mxu1 }
 0x21e   : > { %v5205_v39 = vpop.f32.mrb[49].mxu1 }
 0x21f   : > { %v5207_v48 = vpop.f32.mrb[50].mxu1  ;;  %v1726_v49 = vmax.f32 %v5203_v38, %v5205_v39 }
 0x220   : > { %v5211_v51 = vpop.f32.mrb[51].mxu1 }
 0x221   : > { %1727 = vmax.xlane.f32.xlu0 %v1726_v49  ;;  %v1729_v6 = vmax.f32 %v5207_v48, %v5211_v51 }
 0x225   : > { %1730 = vmax.xlane.f32.xlu0 %v1729_v6  ;;  %v5215_v8 = vpop.f32.mrb[52].mxu1 }
 0x226   : > { %v5217_v11 = vpop.f32.mrb[53].mxu1 }
 0x227   : > { %v5219_v13 = vpop.f32.mrb[54].mxu1  ;;  %v1732_v14 = vmax.f32 %v5215_v8, %v5217_v11 }
 0x228   : > { %v5223_v56 = vpop.f32.mrb[55].mxu1 }
 0x229   : > { %1733 = vmax.xlane.f32.xlu1 %v1732_v14  ;;  %v1735_v20 = vmax.f32 %v5219_v13, %v5223_v56 }
 0x22d   : > { %1736 = vmax.xlane.f32.xlu1 %v1735_v20  ;;  %v5227_v21 = vpop.f32.mrb[56].mxu1 }
 0x22e   : > { %v5229_v19 = vpop.f32.mrb[57].mxu1 }
 0x22f   : > { %v5231_v25 = vpop.f32.mrb[58].mxu1  ;;  %v1738_v31 = vmax.f32 %v5227_v21, %v5229_v19 }
 0x230   : > { %6477 = vst [vmem:[#allocation8_spill] sm:$0xff] %v5231_v25  ;;  %v5235_v35 = vpop.f32.mrb[59].mxu1 }
 0x231   : > { %6478 = vst [vmem:[#allocation9_spill] sm:$0xff] %v5235_v35  ;;  %1739 = vmax.xlane.f32.xlu0 %v1738_v31  ;;  %v1741_v41 = vmax.f32 %v5231_v25, %v5235_v35 }
 0x233   : > { %1742 = vmax.xlane.f32.xlu1 %v1741_v41 }
 0x235   : > { %v5239_v43 = vpop.f32.mrb[60].mxu1 }
 0x236   : > { %6479 = vst [vmem:[#allocation10_spill] sm:$0xff] %v5239_v43  ;;  %v5241_v44 = vpop.f32.mrb[61].mxu1 }
 0x237   : > { %6480 = vst [vmem:[#allocation11_spill] sm:$0xff] %v5241_v44  ;;  %v5243_v45 = vpop.f32.mrb[62].mxu1  ;;  %v1744_v47 = vmax.f32 %v5239_v43, %v5241_v44  ;;  %v5669_v44 = vld [vmem:[#allocation4 + $0xc8] sm:$0xff]  ;;  %v5683_v43 = vld [vmem:[#allocation4 + $0xd0] sm:$0xff] }
 0x238   : > { %6481 = vst [vmem:[#allocation12_spill] sm:$0xff] %v5243_v45  ;;  %v5247_v50 = vpop.f32.mrb[63].mxu1  ;;  %6536 = vst [vmem:[#allocation67_spill] sm:$0xff] %v5669_v44 }
 0x239   : > { %6482 = vst [vmem:[#allocation13_spill] sm:$0xff] %v5247_v50  ;;  %1745 = vmax.xlane.f32.xlu0 %v1744_v47  ;;  %v1747_v54 = vmax.f32 %v5243_v45, %v5247_v50  ;;  %6539 = vst [vmem:[#allocation70_spill] sm:$0xff] %v5683_v43 }
 0x23b   : > { %1748 = vmax.xlane.f32.xlu1 %v1747_v54 }
 0x23d   : > { %v5283_v1 = vpop.f32.mrb[64].mxu1 }
 0x23e   : > { %6483 = vst [vmem:[#allocation14_spill] sm:$0xff] %v5283_v1  ;;  %v5285_v32 = vpop.f32.mrb[65].mxu1 }
 0x23f   : > { %6484 = vst [vmem:[#allocation15_spill] sm:$0xff] %v5285_v32  ;;  %v5287_v37 = vpop.f32.mrb[66].mxu1  ;;  %v1750_v46 = vmax.f32 %v5283_v1, %v5285_v32  ;;  %v5649_v32 = vld [vmem:[#allocation4 + $0xb8] sm:$0xff] }
 0x240   : > { %6485 = vst [vmem:[#allocation16_spill] sm:$0xff] %v5287_v37  ;;  %v5291_v52 = vpop.f32.mrb[67].mxu1  ;;  %6532 = vst [vmem:[#allocation63_spill] sm:$0xff] %v5649_v32 }
 0x241   : > { %6486 = vst [vmem:[#allocation17_spill] sm:$0xff] %v5291_v52  ;;  %1751 = vmax.xlane.f32.xlu0 %v1750_v46  ;;  %v1753_v55 = vmax.f32 %v5287_v37, %v5291_v52 }
 0x243   : > { %1754 = vmax.xlane.f32.xlu1 %v1753_v55 }
 0x245   : > { %v5295_v57 = vpop.f32.mrb[68].mxu1 }
 0x246   : > { %6487 = vst [vmem:[#allocation18_spill] sm:$0xff] %v5295_v57  ;;  %v5297_v60 = vpop.f32.mrb[69].mxu1 }
 0x247   : > { %6488 = vst [vmem:[#allocation19_spill] sm:$0xff] %v5297_v60  ;;  %v5299_v61 = vpop.f32.mrb[70].mxu1  ;;  %v1756_v63 = vmax.f32 %v5295_v57, %v5297_v60  ;;  %v5629_v60 = vld [vmem:[#allocation4 + $0xa8] sm:$0xff] }
 0x248   : > { %6489 = vst [vmem:[#allocation20_spill] sm:$0xff] %v5299_v61  ;;  %v5303_v0 = vpop.f32.mrb[71].mxu1 }
 0x249   : > { %6490 = vst [vmem:[#allocation21_spill] sm:$0xff] %v5303_v0  ;;  %1757 = vmax.xlane.f32.xlu0 %v1756_v63  ;;  %v1759_v18 = vmax.f32 %v5299_v61, %v5303_v0 }
 0x24b   : > { %1760 = vmax.xlane.f32.xlu1 %v1759_v18 }
 0x24d   : > { %v5307_v3 = vpop.f32.mrb[72].mxu1 }
 0x24e   : > { %6491 = vst [vmem:[#allocation22_spill] sm:$0xff] %v5307_v3  ;;  %v5309_v29 = vpop.f32.mrb[73].mxu1 }
 0x24f   : > { %6492 = vst [vmem:[#allocation23_spill] sm:$0xff] %v5309_v29  ;;  %v5311_v4 = vpop.f32.mrb[74].mxu1  ;;  %v1762_v7 = vmax.f32 %v5307_v3, %v5309_v29  ;;  %v5609_v29 = vld [vmem:[#allocation4 + $0x98] sm:$0xff] }
 0x250   : > { %6493 = vst [vmem:[#allocation24_spill] sm:$0xff] %v5311_v4  ;;  %v5315_v12 = vpop.f32.mrb[75].mxu1 }
 0x251   : > { %6494 = vst [vmem:[#allocation25_spill] sm:$0xff] %v5315_v12  ;;  %1763 = vmax.xlane.f32.xlu0 %v1762_v7  ;;  %v1765_v15 = vmax.f32 %v5311_v4, %v5315_v12 }
 0x253   : > { %1766 = vmax.xlane.f32.xlu1 %v1765_v15 }
 0x255   : > { %v5319_v16 = vpop.f32.mrb[76].mxu1 }
 0x256   : > { %6495 = vst [vmem:[#allocation26_spill] sm:$0xff] %v5319_v16  ;;  %v5321_v58 = vpop.f32.mrb[77].mxu1 }
 0x257   : > { %6496 = vst [vmem:[#allocation27_spill] sm:$0xff] %v5321_v58  ;;  %v5323_v2 = vpop.f32.mrb[78].mxu1  ;;  %v1768_v9 = vmax.f32 %v5319_v16, %v5321_v58  ;;  %v5589_v58 = vld [vmem:[#allocation4 + $0x88] sm:$0xff] }
 0x258   : > { %6497 = vst [vmem:[#allocation28_spill] sm:$0xff] %v5323_v2  ;;  %v5327_v17 = vpop.f32.mrb[79].mxu1 }
 0x259   : > { %6498 = vst [vmem:[#allocation29_spill] sm:$0xff] %v5327_v17  ;;  %1769 = vmax.xlane.f32.xlu0 %v1768_v9  ;;  %v1771_v22 = vmax.f32 %v5323_v2, %v5327_v17 }
 0x25b   : > { %1772 = vmax.xlane.f32.xlu1 %v1771_v22 }
 0x25d   : > { %v5331_v23 = vpop.f32.mrb[80].mxu1 }
 0x25e   : > { %6499 = vst [vmem:[#allocation30_spill] sm:$0xff] %v5331_v23  ;;  %v5333_v24 = vpop.f32.mrb[81].mxu1 }
 0x25f   : > { %6500 = vst [vmem:[#allocation31_spill] sm:$0xff] %v5333_v24  ;;  %v5335_v26 = vpop.f32.mrb[82].mxu1  ;;  %v1774_v27 = vmax.f32 %v5331_v23, %v5333_v24  ;;  %v5569_v24 = vld [vmem:[#allocation4 + $0x78] sm:$0xff] }
 0x260   : > { %6501 = vst [vmem:[#allocation32_spill] sm:$0xff] %v5335_v26  ;;  %v5339_v30 = vpop.f32.mrb[83].mxu1 }
 0x261   : > { %6502 = vst [vmem:[#allocation33_spill] sm:$0xff] %v5339_v30  ;;  %1775 = vmax.xlane.f32.xlu0 %v1774_v27  ;;  %v1777_v33 = vmax.f32 %v5335_v26, %v5339_v30 }
 0x263   : > { %1778 = vmax.xlane.f32.xlu1 %v1777_v33 }
 0x265   : > { %v5343_v34 = vpop.f32.mrb[84].mxu1 }
 0x266   : > { %6503 = vst [vmem:[#allocation34_spill] sm:$0xff] %v5343_v34  ;;  %v5345_v36 = vpop.f32.mrb[85].mxu1 }
 0x267   : > { %6504 = vst [vmem:[#allocation35_spill] sm:$0xff] %v5345_v36  ;;  %v5347_v10 = vpop.f32.mrb[86].mxu1  ;;  %v1780_v42 = vmax.f32 %v5343_v34, %v5345_v36  ;;  %v5549_v36 = vld [vmem:[#allocation4 + $0x68] sm:$0xff] }
 0x268   : > { %6505 = vst [vmem:[#allocation36_spill] sm:$0xff] %v5347_v10  ;;  %v5351_v53 = vpop.f32.mrb[87].mxu1 }
 0x269   : > { %6506 = vst [vmem:[#allocation37_spill] sm:$0xff] %v5351_v53  ;;  %1781 = vmax.xlane.f32.xlu0 %v1780_v42  ;;  %v1783_v62 = vmax.f32 %v5347_v10, %v5351_v53 }
 0x26b   : > { %1784 = vmax.xlane.f32.xlu1 %v1783_v62 }
 0x26d   : > { %v5355_v5 = vpop.f32.mrb[88].mxu1 }
 0x26e   : > { %6507 = vst [vmem:[#allocation38_spill] sm:$0xff] %v5355_v5  ;;  %v5357_v28 = vpop.f32.mrb[89].mxu1 }
 0x26f   : > { %6508 = vst [vmem:[#allocation39_spill] sm:$0xff] %v5357_v28  ;;  %v5359_v49 = vpop.f32.mrb[90].mxu1  ;;  %v1786_v6 = vmax.f32 %v5355_v5, %v5357_v28  ;;  %v5529_v28 = vld [vmem:[#allocation4 + $0x58] sm:$0xff] }
 0x270   : > { %6509 = vst [vmem:[#allocation40_spill] sm:$0xff] %v5359_v49  ;;  %v5363_v14 = vpop.f32.mrb[91].mxu1 }
 0x271   : > { %6510 = vst [vmem:[#allocation41_spill] sm:$0xff] %v5363_v14  ;;  %1787 = vmax.xlane.f32.xlu0 %v1786_v6  ;;  %v1789_v20 = vmax.f32 %v5359_v49, %v5363_v14 }
 0x273   : > { %1790 = vmax.xlane.f32.xlu1 %v1789_v20 }
 0x275   : > { %v5367_v31 = vpop.f32.mrb[92].mxu1 }
 0x276   : > { %6511 = vst [vmem:[#allocation42_spill] sm:$0xff] %v5367_v31  ;;  %v5369_v40 = vpop.f32.mrb[93].mxu1 }
 0x277   : > { %6512 = vst [vmem:[#allocation43_spill] sm:$0xff] %v5369_v40  ;;  %v5371_v41 = vpop.f32.mrb[94].mxu1  ;;  %v1792_v47 = vmax.f32 %v5367_v31, %v5369_v40  ;;  %v5509_v40 = vld [vmem:[#allocation4 + $0x48] sm:$0xff] }
 0x278   : > { %6513 = vst [vmem:[#allocation44_spill] sm:$0xff] %v5371_v41  ;;  %v5375_v54 = vpop.f32.mrb[95].mxu1 }
 0x279   : > { %6514 = vst [vmem:[#allocation45_spill] sm:$0xff] %v5375_v54  ;;  %1793 = vmax.xlane.f32.xlu0 %v1792_v47  ;;  %v1795_v59 = vmax.f32 %v5371_v41, %v5375_v54 }
 0x27b   : > { %1796 = vmax.xlane.f32.xlu1 %v1795_v59 }
 0x27d   : > { %v5379_v46 = vpop.f32.mrb[96].mxu1 }
 0x27e   : > { %6515 = vst [vmem:[#allocation46_spill] sm:$0xff] %v5379_v46  ;;  %v5381_v55 = vpop.f32.mrb[97].mxu1 }
 0x27f   : > { %6516 = vst [vmem:[#allocation47_spill] sm:$0xff] %v5381_v55  ;;  %v5383_v63 = vpop.f32.mrb[98].mxu1  ;;  %v1798_v18 = vmax.f32 %v5379_v46, %v5381_v55 }
 0x280   : > { %6517 = vst [vmem:[#allocation48_spill] sm:$0xff] %v5383_v63  ;;  %v5387_v7 = vpop.f32.mrb[99].mxu1 }
 0x281   : > { %6518 = vst [vmem:[#allocation49_spill] sm:$0xff] %v5387_v7  ;;  %1799 = vmax.xlane.f32.xlu0 %v1798_v18  ;;  %v1801_v15 = vmax.f32 %v5383_v63, %v5387_v7  ;;  %v5469_v7 = vld [vmem:[#allocation4 + $0x28] sm:$0xff] }
 0x283   : > { %1802 = vmax.xlane.f32.xlu1 %v1801_v15 }
 0x285   : > { %v5391_v9 = vpop.f32.mrb[100].mxu1 }
 0x286   : > { %6519 = vst [vmem:[#allocation50_spill] sm:$0xff] %v5391_v9  ;;  %v5393_v22 = vpop.f32.mrb[101].mxu1 }
 0x287   : > { %6520 = vst [vmem:[#allocation51_spill] sm:$0xff] %v5393_v22  ;;  %v5395_v27 = vpop.f32.mrb[102].mxu1  ;;  %v1804_v33 = vmax.f32 %v5391_v9, %v5393_v22  ;;  %v5462_v9 = vld [vmem:[#allocation4 + $0x20] sm:$0xff] }
 0x288   : > { %6521 = vst [vmem:[#allocation52_spill] sm:$0xff] %v5395_v27  ;;  %v5399_v42 = vpop.f32.mrb[103].mxu1 }
 0x289   : > { %6522 = vst [vmem:[#allocation53_spill] sm:$0xff] %v5399_v42  ;;  %1805 = vmax.xlane.f32.xlu0 %v1804_v33  ;;  %v1807_v62 = vmax.f32 %v5395_v27, %v5399_v42 }
 0x28b   : > { %1808 = vmax.xlane.f32.xlu1 %v1807_v62 }
 0x28d   : > { %v5403_v6 = vpop.f32.mrb[104].mxu1 }
 0x28e   : > { %6523 = vst [vmem:[#allocation54_spill] sm:$0xff] %v5403_v6  ;;  %v5405_v20 = vpop.f32.mrb[105].mxu1 }
 0x28f   : > { %6524 = vst [vmem:[#allocation55_spill] sm:$0xff] %v5405_v20  ;;  %v5407_v47 = vpop.f32.mrb[106].mxu1  ;;  %v1810_v59 = vmax.f32 %v5403_v6, %v5405_v20 }
 0x290   : > { %6525 = vst [vmem:[#allocation56_spill] sm:$0xff] %v5407_v47  ;;  %v5411_v18 = vpop.f32.mrb[107].mxu1 }
 0x291   : > { %6526 = vst [vmem:[#allocation57_spill] sm:$0xff] %v5411_v18  ;;  %1811 = vmax.xlane.f32.xlu0 %v1810_v59  ;;  %v1813_v15 = vmax.f32 %v5407_v47, %v5411_v18  ;;  %v5427_v59 = vld [vmem:[#allocation4] sm:$0xff]  ;;  %v5432_v47 = vld [vmem:[#allocation4 + $0x8] sm:$0xff] }
 0x293   : > { %1814 = vmax.xlane.f32.xlu1 %v1813_v15 }
 0x295   : > { %v5415_v33 = vpop.f32.mrb[108].mxu1 }
 0x296   : > { %6527 = vst [vmem:[#allocation58_spill] sm:$0xff] %v5415_v33  ;;  %v5417_v42 = vpop.f32.mrb[109].mxu1 }
 0x297   : > { %6528 = vst [vmem:[#allocation59_spill] sm:$0xff] %v5417_v42  ;;  %v5419_v62 = vpop.f32.mrb[110].mxu1  ;;  %v1816_v27 = vmax.f32 %v5415_v33, %v5417_v42 }
 0x298   : > { %6529 = vst [vmem:[#allocation60_spill] sm:$0xff] %v5419_v62  ;;  %v5423_v22 = vpop.f32.mrb[111].mxu1 }
 0x299   : > { %6530 = vst [vmem:[#allocation61_spill] sm:$0xff] %v5423_v22  ;;  %v1819_v20 = vmax.f32 %v5419_v62, %v5423_v22  ;;  %1817 = vmax.xlane.f32.xlu0 %v1816_v27  ;;  %v5452_v62 = vld [vmem:[#allocation4 + $0x18] sm:$0xff] }
 0x29b   : > { %1820 = vmax.xlane.f32.xlu1 %v1819_v20  ;;  %v5442_v20 = vld [vmem:[#allocation4 + $0x10] sm:$0xff] }
 0x2ae   : > { %v1728_v18 = vpop.xlane.xlu0 %1727 }
 0x2af   : > { %v5430_v15 = vmax.f32 %v5427_v59, %v1728_v18 }
 0x2b1   : > { %3007 = vst.msk [vmem:[#allocation4] sm:$0xff] %vm1372_vm0, %v5430_v15  ;;  %1952 = vperm.xlu0 %4318, %v5430_v15  }
 0x2b2   : > { %v1731_v42 = vpop.xlane.xlu0 %1730 }
 0x2b3   : > { %v5440_v27 = vmax.f32 %v5432_v47, %v1731_v42 }
 0x2b5   : > { %3008 = vst.msk [vmem:[#allocation4 + $0x8] sm:$0xff] %vm1372_vm0, %v5440_v27  ;;  %1957 = vperm.xlu1 %4319, %v5440_v27  }
 0x2b6   : > { %v1734_v6 = vpop.xlane.xlu1 %1733 }
 0x2b7   : > { %v5450_v22 = vmax.f32 %v5442_v20, %v1734_v6 }
 0x2b9   : > { %3009 = vst.msk [vmem:[#allocation4 + $0x10] sm:$0xff] %vm1372_vm0, %v5450_v22  ;;  %1962 = vperm.xlu1 %4319, %v5450_v22  }
 0x2ba   : > { %v1737_v18 = vpop.xlane.xlu1 %1736 }
 0x2bb   : > { %v5460_v33 = vmax.f32 %v5452_v62, %v1737_v18  ;;  %v5489_v18 = vld [vmem:[#allocation4 + $0x38] sm:$0xff] }
 0x2bd   : > { %3010 = vst.msk [vmem:[#allocation4 + $0x18] sm:$0xff] %vm1372_vm0, %v5460_v33  ;;  %1967 = vperm.xlu1 %4319, %v5460_v33  }
 0x2be   : > { %v1740_v42 = vpop.xlane.xlu0 %1739 }
 0x2bf   : > { %v5472_v63 = vmax.f32 %v5462_v9, %v1740_v42  ;;  %v5486_v42 = vld [vmem:[#allocation4 + $0x30] sm:$0xff] }
 0x2c0   : > { %v1743_v55 = vpop.xlane.xlu1 %1742 }
 0x2c1   : > { %3011 = vst.msk [vmem:[#allocation4 + $0x20] sm:$0xff] %vm1372_vm0, %v5472_v63  ;;  %v5479_v6 = vmax.f32 %v5469_v7, %v1743_v55  ;;  %1972 = vperm.xlu1 %4319, %v5472_v63  }
 0x2c3   : > { %3012 = vst.msk [vmem:[#allocation4 + $0x28] sm:$0xff] %vm1372_vm0, %v5479_v6 }
 0x2c5   : > { %1977 = vperm.xlu1 %4319, %v5479_v6  }
 0x2c6   : > { %v1746_v54 = vpop.xlane.xlu0 %1745 }
 0x2c7   : > { %v5492_v41 = vmax.f32 %v5486_v42, %v1746_v54  ;;  %v5506_v54 = vld [vmem:[#allocation4 + $0x40] sm:$0xff] }
 0x2c8   : > { %v1749_v55 = vpop.xlane.xlu1 %1748 }
 0x2c9   : > { %3013 = vst.msk [vmem:[#allocation4 + $0x30] sm:$0xff] %vm1372_vm0, %v5492_v41  ;;  %v5499_v46 = vmax.f32 %v5489_v18, %v1749_v55  ;;  %1982 = vperm.xlu1 %4319, %v5492_v41  }
 0x2cb   : > { %3014 = vst.msk [vmem:[#allocation4 + $0x38] sm:$0xff] %vm1372_vm0, %v5499_v46 }
 0x2cd   : > { %1987 = vperm.xlu1 %4319, %v5499_v46  }
 0x2ce   : > { %v1752_v14 = vpop.xlane.xlu0 %1751 }
 0x2cf   : > { %v5512_v49 = vmax.f32 %v5506_v54, %v1752_v14  ;;  %v5527_v14 = vld [vmem:[#allocation4 + $0x50] sm:$0xff] }
 0x2d0   : > { %v1755_v55 = vpop.xlane.xlu1 %1754 }
 0x2d1   : > { %3015 = vst.msk [vmem:[#allocation4 + $0x40] sm:$0xff] %vm1372_vm0, %v5512_v49  ;;  %v5519_v31 = vmax.f32 %v5509_v40, %v1755_v55  ;;  %1992 = vperm.xlu1 %4319, %v5512_v49  }
 0x2d3   : > { %3016 = vst.msk [vmem:[#allocation4 + $0x48] sm:$0xff] %vm1372_vm0, %v5519_v31  ;;  %1997 = vperm.xlu0 %4318, %v5519_v31  }
 0x2d6   : > { %v1758_v53 = vpop.xlane.xlu0 %1757 }
 0x2d7   : > { %v5532_v10 = vmax.f32 %v5527_v14, %v1758_v53  ;;  %v5547_v53 = vld [vmem:[#allocation4 + $0x60] sm:$0xff] }
 0x2d8   : > { %v1761_v55 = vpop.xlane.xlu1 %1760 }
 0x2d9   : > { %3017 = vst.msk [vmem:[#allocation4 + $0x50] sm:$0xff] %vm1372_vm0, %v5532_v10  ;;  %v5539_v5 = vmax.f32 %v5529_v28, %v1761_v55  ;;  %2002 = vperm.xlu1 %4319, %v5532_v10  }
 0x2db   : > { %3018 = vst.msk [vmem:[#allocation4 + $0x58] sm:$0xff] %vm1372_vm0, %v5539_v5  ;;  %2007 = vperm.xlu0 %4318, %v5539_v5  }
 0x2de   : > { %v1764_v30 = vpop.xlane.xlu0 %1763 }
 0x2df   : > { %v5552_v26 = vmax.f32 %v5547_v53, %v1764_v30  ;;  %v5567_v30 = vld [vmem:[#allocation4 + $0x70] sm:$0xff] }
 0x2e0   : > { %v1767_v55 = vpop.xlane.xlu1 %1766 }
 0x2e1   : > { %3019 = vst.msk [vmem:[#allocation4 + $0x60] sm:$0xff] %vm1372_vm0, %v5552_v26  ;;  %v5559_v34 = vmax.f32 %v5549_v36, %v1767_v55  ;;  %2012 = vperm.xlu1 %4319, %v5552_v26  }
 0x2e3   : > { %3020 = vst.msk [vmem:[#allocation4 + $0x68] sm:$0xff] %vm1372_vm0, %v5559_v34  ;;  %2017 = vperm.xlu0 %4318, %v5559_v34  }
 0x2e6   : > { %v1770_v17 = vpop.xlane.xlu0 %1769 }
 0x2e7   : > { %v5572_v2 = vmax.f32 %v5567_v30, %v1770_v17  ;;  %v5587_v17 = vld [vmem:[#allocation4 + $0x80] sm:$0xff] }
 0x2e8   : > { %v1773_v55 = vpop.xlane.xlu1 %1772 }
 0x2e9   : > { %3021 = vst.msk [vmem:[#allocation4 + $0x70] sm:$0xff] %vm1372_vm0, %v5572_v2  ;;  %v5579_v23 = vmax.f32 %v5569_v24, %v1773_v55  ;;  %2022 = vperm.xlu1 %4319, %v5572_v2  }
 0x2eb   : > { %3022 = vst.msk [vmem:[#allocation4 + $0x78] sm:$0xff] %vm1372_vm0, %v5579_v23  ;;  %2027 = vperm.xlu0 %4318, %v5579_v23  }
 0x2ee   : > { %v1776_v12 = vpop.xlane.xlu0 %1775 }
 0x2ef   : > { %v5592_v4 = vmax.f32 %v5587_v17, %v1776_v12  ;;  %v5607_v12 = vld [vmem:[#allocation4 + $0x90] sm:$0xff] }
 0x2f0   : > { %v1779_v55 = vpop.xlane.xlu1 %1778 }
 0x2f1   : > { %3023 = vst.msk [vmem:[#allocation4 + $0x80] sm:$0xff] %vm1372_vm0, %v5592_v4  ;;  %v5599_v16 = vmax.f32 %v5589_v58, %v1779_v55  ;;  %2032 = vperm.xlu1 %4319, %v5592_v4  }
 0x2f3   : > { %3024 = vst.msk [vmem:[#allocation4 + $0x88] sm:$0xff] %vm1372_vm0, %v5599_v16  ;;  %2037 = vperm.xlu0 %4318, %v5599_v16  }
 0x2f6   : > { %v1782_v0 = vpop.xlane.xlu0 %1781 }
 0x2f7   : > { %v5612_v61 = vmax.f32 %v5607_v12, %v1782_v0  ;;  %v5627_v0 = vld [vmem:[#allocation4 + $0xa0] sm:$0xff] }
 0x2f8   : > { %v1785_v55 = vpop.xlane.xlu1 %1784 }
 0x2f9   : > { %3025 = vst.msk [vmem:[#allocation4 + $0x90] sm:$0xff] %vm1372_vm0, %v5612_v61  ;;  %v5619_v3 = vmax.f32 %v5609_v29, %v1785_v55  ;;  %2042 = vperm.xlu1 %4319, %v5612_v61  }
 0x2fb   : > { %3026 = vst.msk [vmem:[#allocation4 + $0x98] sm:$0xff] %vm1372_vm0, %v5619_v3  ;;  %2047 = vperm.xlu0 %4318, %v5619_v3  }
 0x2fe   : > { %v1788_v52 = vpop.xlane.xlu0 %1787 }
 0x2ff   : > { %v5632_v37 = vmax.f32 %v5627_v0, %v1788_v52  ;;  %v5647_v52 = vld [vmem:[#allocation4 + $0xb0] sm:$0xff] }
 0x300   : > { %v1791_v55 = vpop.xlane.xlu1 %1790  ;;  %6531 = vst [vmem:[#allocation62_spill] sm:$0xff] %v5647_v52 }
 0x301   : > { %3027 = vst.msk [vmem:[#allocation4 + $0xa0] sm:$0xff] %vm1372_vm0, %v5632_v37  ;;  %v5639_v57 = vmax.f32 %v5629_v60, %v1791_v55  ;;  %2052 = vperm.xlu1 %4319, %v5632_v37  }
 0x303   : > { %3028 = vst.msk [vmem:[#allocation4 + $0xa8] sm:$0xff] %vm1372_vm0, %v5639_v57  ;;  %2057 = vperm.xlu0 %4318, %v5639_v57  }
 0x306   : > { %v1794_v50 = vpop.xlane.xlu0 %1793 }
 0x307   : > { %v5652_v45 = vmax.f32 %v5647_v52, %v1794_v50  ;;  %v5667_v50 = vld [vmem:[#allocation4 + $0xc0] sm:$0xff] }
 0x308   : > { %v1797_v55 = vpop.xlane.xlu1 %1796  ;;  %6535 = vst [vmem:[#allocation66_spill] sm:$0xff] %v5667_v50 }
 0x309   : > { %6533 = vst [vmem:[#allocation64_spill] sm:$0xff] %v5652_v45  ;;  %3029 = vst.msk [vmem:[#allocation4 + $0xb0] sm:$0xff] %vm1372_vm0, %v5652_v45  ;;  %v5659_v1 = vmax.f32 %v5649_v32, %v1797_v55  ;;  %2062 = vperm.xlu1 %4319, %v5652_v45   ;;  %v5685_v32 = vld [vmem:[#allocation4 + $0xd8] sm:$0xff] }
 0x30a   : > { %6540 = vst [vmem:[#allocation71_spill] sm:$0xff] %v5685_v32 }
 0x30b   : > { %6534 = vst [vmem:[#allocation65_spill] sm:$0xff] %v5659_v1  ;;  %3030 = vst.msk [vmem:[#allocation4 + $0xb8] sm:$0xff] %vm1372_vm0, %v5659_v1  ;;  %2067 = vperm.xlu0 %4318, %v5659_v1  }
 0x30e   : > { %v1800_v35 = vpop.xlane.xlu0 %1799 }
 0x30f   : > { %v5672_v25 = vmax.f32 %v5667_v50, %v1800_v35 }
 0x310   : > { %v1803_v55 = vpop.xlane.xlu1 %1802 }
 0x311   : > { %6537 = vst [vmem:[#allocation68_spill] sm:$0xff] %v5672_v25  ;;  %3031 = vst.msk [vmem:[#allocation4 + $0xc0] sm:$0xff] %vm1372_vm0, %v5672_v25  ;;  %v5677_v45 = vmax.f32 %v5669_v44, %v1803_v55  ;;  %2072 = vperm.xlu1 %4319, %v5672_v25   ;;  %v5699_v44 = vld [vmem:[#allocation4 + $0xe0] sm:$0xff]  ;;  %v5704_v25 = vld [vmem:[#allocation4 + $0xe8] sm:$0xff] }
 0x313   : > { %6538 = vst [vmem:[#allocation69_spill] sm:$0xff] %v5677_v45  ;;  %3032 = vst.msk [vmem:[#allocation4 + $0xc8] sm:$0xff] %vm1372_vm0, %v5677_v45  ;;  %2077 = vperm.xlu0 %4318, %v5677_v45  }
 0x316   : > { %v1806_v1 = vpop.xlane.xlu0 %1805 }
 0x317   : > { %v5688_v35 = vmax.f32 %v5683_v43, %v1806_v1  ;;  %v6543_v1 = vsub.f32 %v5432_v47, %v5440_v27  ;;  %v6545_v47 = vsub.f32 %v5442_v20, %v5450_v22  ;;  %v5732_v22 = vld [vmem:[#allocation4 + $0xf8] sm:$0xff] }
 0x318   : > { %v1809_v50 = vpop.xlane.xlu1 %1808 }
 0x319   : > { %6541 = vst [vmem:[#allocation72_spill] sm:$0xff] %v5688_v35  ;;  %3033 = vst.msk [vmem:[#allocation4 + $0xd0] sm:$0xff] %vm1372_vm0, %v5688_v35  ;;  %v5693_v55 = vmax.f32 %v5685_v32, %v1809_v50  ;;  %2082 = vperm.xlu1 %4319, %v5688_v35   ;;  %v1888_v43 = vmul.f32 1.442695, %v6543_v1  ;;  %v6544_v50 = vsub.f32 %v5427_v59, %v5430_v15  ;;  %v1890_v27 = vmul.f32 1.442695, %v6545_v47 }
 0x31a   : > { %v5727_v15 = vld [vmem:[#allocation4 + $0xf0] sm:$0xff] }
 0x31b   : > { %6542 = vst [vmem:[#allocation73_spill] sm:$0xff] %v5693_v55  ;;  %3034 = vst.msk [vmem:[#allocation4 + $0xd8] sm:$0xff] %vm1372_vm0, %v5693_v55  ;;  %2087 = vperm.xlu0 %4318, %v5693_v55   ;;  %v1886_v32 = vmul.f32 1.442695, %v6544_v50  ;;  %4392 = vpow2.f32 %v1888_v43  ;;  %v6547_v43 = vsub.f32 %v5462_v9, %v5472_v63  ;;  %v6550_v9 = vsub.f32 %v5489_v18, %v5499_v46 }
 0x31d   : > { %4394 = vpow2.f32 %v1886_v32  ;;  %v6548_v32 = vsub.f32 %v5469_v7, %v5479_v6  ;;  %v6551_v7 = vsub.f32 %v5506_v54, %v5512_v49  ;;  %v6553_v49 = vsub.f32 %v5527_v14, %v5532_v10 }
 0x31e   : > { %v1812_v45 = vpop.xlane.xlu0 %1811  ;;  %4396 = vpow2.f32 %v1890_v27  ;;  %v1900_v27 = vmul.f32 1.442695, %v6550_v9  ;;  %v6556_v10 = vsub.f32 %v5549_v36, %v5559_v34  ;;  %v6559_v9 = vsub.f32 %v5587_v17, %v5592_v4 }
 0x31f   : > { %v5707_v52 = vmax.f32 %v5699_v44, %v1812_v45  ;;  %v6546_v45 = vsub.f32 %v5452_v62, %v5460_v33  ;;  %v1896_v50 = vmul.f32 1.442695, %v6548_v32  ;;  %v6549_v62 = vsub.f32 %v5486_v42, %v5492_v41 }
 0x320   : > { %v1815_v35 = vpop.xlane.xlu1 %1814  ;;  %v1902_v6 = vmul.f32 1.442695, %v6551_v7  ;;  %v1906_v18 = vmul.f32 1.442695, %v6553_v49  ;;  %v1912_v14 = vmul.f32 1.442695, %v6556_v10 }
 0x321   : > { %3035 = vst.msk [vmem:[#allocation4 + $0xe0] sm:$0xff] %vm1372_vm0, %v5707_v52  ;;  %v5715_v55 = vmax.f32 %v5704_v25, %v1815_v35  ;;  %2092 = vperm.xlu1 %4319, %v5707_v52   ;;  %v1892_v59 = vmul.f32 1.442695, %v6546_v45  ;;  %v1894_v35 = vmul.f32 1.442695, %v6547_v43  ;;  %v6552_v45 = vsub.f32 %v5509_v40, %v5519_v31 }
 0x322   : > { %v1898_v47 = vmul.f32 1.442695, %v6549_v62 }
 0x323   : > { %3036 = vst.msk [vmem:[#allocation4 + $0xe8] sm:$0xff] %vm1372_vm0, %v5715_v55  ;;  %2097 = vperm.xlu0 %4318, %v5715_v55   ;;  %4398 = vpow2.f32 %v1892_v59  ;;  %v1904_v46 = vmul.f32 1.442695, %v6552_v45  ;;  %v6554_v59 = vsub.f32 %v5529_v28, %v5539_v5 }
 0x324   : > { %4400 = vpow2.f32 %v1894_v35  ;;  %v6555_v35 = vsub.f32 %v5547_v53, %v5552_v26  ;;  %v6557_v26 = vsub.f32 %v5567_v30, %v5572_v2 }
 0x325   : > { %v5760_v42 = vpop.eup %4392  ;;  %4402 = vpow2.f32 %v1896_v50  ;;  %v1908_v43 = vmul.f32 1.442695, %v6554_v59 }
 0x326   : > { %v1818_v1 = vpop.xlane.xlu0 %1817  ;;  %4404 = vpow2.f32 %v1898_v47  ;;  %v1910_v31 = vmul.f32 1.442695, %v6555_v35  ;;  %v1914_v53 = vmul.f32 1.442695, %v6557_v26 }
 0x327   : > { %v5735_v20 = vmax.f32 %v5727_v15, %v1818_v1  ;;  %v5769_v54 = vpop.eup %4394  ;;  %4406 = vpow2.f32 %v1900_v27  ;;  %v1918_v27 = vmul.f32 1.442695, %v6559_v9  ;;  %v6569_v9 = vld [vmem:[#allocation66_spill] sm:$0xff] }
 0x328   : > { %v1821_v33 = vpop.xlane.xlu1 %1820  ;;  %4408 = vpow2.f32 %v1902_v6  ;;  %v5778_v40 = vpop.eup %4396 }
 0x329   : > { %3037 = vst.msk [vmem:[#allocation4 + $0xf0] sm:$0xff] %vm1372_vm0, %v5735_v20  ;;  %v5746_v63 = vmax.f32 %v5732_v22, %v1821_v33  ;;  %2102 = vperm.xlu1 %4319, %v5735_v20   ;;  %4410 = vpow2.f32 %v1904_v46 }
 0x32a   : > { %4412 = vpow2.f32 %v1906_v18 }
 0x32b   : > { %3038 = vst.msk [vmem:[#allocation4 + $0xf8] sm:$0xff] %vm1372_vm0, %v5746_v63  ;;  %2107 = vperm.xlu0 %4318, %v5746_v63   ;;  %4414 = vpow2.f32 %v1908_v43 }
 0x32c   : > { %4416 = vpow2.f32 %v1910_v31 }
 0x32d   : > { %2565 = vperm.xlu1 %4319, %v5760_v42   ;;  %v5786_v28 = vpop.eup %4398  ;;  %4418 = vpow2.f32 %v1912_v14 }
 0x32e   : > { %v5792_v34 = vpop.eup %4400 }
 0x32f   : > { %2560 = vperm.xlu0 %4318, %v5769_v54   ;;  %v5800_v2 = vpop.eup %4402 }
 0x330   : > { %v1953_v1 = vpop.permute.xlu0 %1952  ;;  %v5802_v30 = vpop.eup %4404 }
 0x331   : > { %v2110_v32 = vsub.f32 %v5203_v38, %v1953_v1  ;;  %v2111_v5 = vsub.f32 %v5205_v39, %v1953_v1  ;;  %2570 = vperm.xlu1 %4319, %v5778_v40   ;;  %v6558_v38 = vsub.f32 %v5569_v24, %v5579_v23  ;;  %v5808_v7 = vpop.eup %4406  ;;  %v6563_v1 = vsub.f32 %v5627_v0, %v5632_v37 }
 0x332   : > { %v5813_v45 = vpop.eup %4408 }
 0x333   : > { %v2174_v50 = vmul.f32 1.442695, %v2110_v32  ;;  %v2176_v33 = vmul.f32 1.442695, %v2111_v5  ;;  %2575 = vperm.xlu0 %4318, %v5786_v28   ;;  %v1916_v39 = vmul.f32 1.442695, %v6558_v38  ;;  %v5818_v17 = vpop.eup %4410 }
 0x334   : > { %v1958_v36 = vpop.permute.xlu1 %1957  ;;  %v5820_v49 = vpop.eup %4412 }
 0x335   : > { %4420 = vpow2.f32 %v2174_v50  ;;  %v2112_v62 = vsub.f32 %v5207_v48, %v1958_v36  ;;  %v2113_v47 = vsub.f32 %v5211_v51, %v1958_v36  ;;  %2580 = vperm.xlu1 %4319, %v5792_v34   ;;  %v6560_v48 = vsub.f32 %v5589_v58, %v5599_v16  ;;  %v5826_v43 = vpop.eup %4414  ;;  %v6565_v36 = vld [vmem:[#allocation62_spill] sm:$0xff] }
 0x336   : > { %4422 = vpow2.f32 %v2176_v33  ;;  %v6561_v16 = vsub.f32 %v5607_v12, %v5612_v61  ;;  %v5831_v31 = vpop.eup %4416 }
 0x337   : > { %4424 = vpow2.f32 %v1914_v53  ;;  %v2178_v23 = vmul.f32 1.442695, %v2112_v62  ;;  %v2180_v24 = vmul.f32 1.442695, %v2113_v47  ;;  %2585 = vperm.xlu0 %4318, %v5800_v2   ;;  %v1920_v51 = vmul.f32 1.442695, %v6560_v48  ;;  %v5836_v12 = vpop.eup %4418 }
 0x338   : > { %4426 = vpow2.f32 %v1916_v39  ;;  %v1963_v6 = vpop.permute.xlu1 %1962  ;;  %v1922_v58 = vmul.f32 1.442695, %v6561_v16  ;;  %v6566_v62 = vld [vmem:[#allocation64_spill] sm:$0xff] }
 0x339   : > { %4428 = vpow2.f32 %v2178_v23  ;;  %v2114_v46 = vsub.f32 %v5215_v8, %v1963_v6  ;;  %v2115_v4 = vsub.f32 %v5217_v11, %v1963_v6  ;;  %2590 = vperm.xlu1 %4319, %v5802_v30   ;;  %v6562_v8 = vsub.f32 %v5609_v29, %v5619_v3 }
 0x33a   : > { %4430 = vpow2.f32 %v2180_v24  ;;  %v1926_v3 = vmul.f32 1.442695, %v6563_v1 }
 0x33b   : > { %4432 = vpow2.f32 %v1918_v27  ;;  %v2182_v18 = vmul.f32 1.442695, %v2114_v46  ;;  %v2184_v59 = vmul.f32 1.442695, %v2115_v4  ;;  %2595 = vperm.xlu0 %4318, %v5808_v7   ;;  %v1924_v11 = vmul.f32 1.442695, %v6562_v8 }
 0x33c   : > { %4434 = vpow2.f32 %v1920_v51  ;;  %v1968_v35 = vpop.permute.xlu1 %1967  ;;  %v6570_v51 = vld [vmem:[#allocation8_spill] sm:$0xff]  ;;  %v6571_v46 = vld [vmem:[#allocation9_spill] sm:$0xff]  ;;  %v6572_v8 = vld [vmem:[#allocation63_spill] sm:$0xff] }
 0x33d   : > { %4436 = vpow2.f32 %v2182_v18  ;;  %v2116_v10 = vsub.f32 %v5219_v13, %v1968_v35  ;;  %v2117_v61 = vsub.f32 %v5223_v56, %v1968_v35  ;;  %2600 = vperm.xlu1 %4319, %v5813_v45   ;;  %v6564_v13 = vsub.f32 %v5629_v60, %v5639_v57 }
 0x33e   : > { %4438 = vpow2.f32 %v2184_v59 }
 0x33f   : > { %v4421_v14 = vpop.eup %4420  ;;  %4440 = vpow2.f32 %v1922_v58  ;;  %v2186_v29 = vmul.f32 1.442695, %v2116_v10  ;;  %v2188_v32 = vmul.f32 1.442695, %v2117_v61  ;;  %2605 = vperm.xlu0 %4318, %v5818_v17   ;;  %v1928_v56 = vmul.f32 1.442695, %v6564_v13 }
 0x340   : > { %v4423_v5 = vpop.eup %4422  ;;  %4442 = vpow2.f32 %v1924_v11  ;;  %v1973_v26 = vpop.permute.xlu1 %1972  ;;  %v6573_v11 = vld [vmem:[#allocation65_spill] sm:$0xff]  ;;  %v6577_v13 = vld [vmem:[#allocation72_spill] sm:$0xff] }
 0x341   : > { %v5845_v53 = vpop.eup %4424  ;;  %4444 = vpow2.f32 %v2186_v29  ;;  %v2118_v50 = vsub.f32 %v5227_v21, %v1973_v26  ;;  %v2119_v33 = vsub.f32 %v5229_v19, %v1973_v26  ;;  %2610 = vperm.xlu1 %4319, %v5820_v49   ;;  %v5850_v37 = vadd.f32 %v4423_v5, %v4421_v14  ;;  %v6568_v19 = vld [vmem:[#allocation68_spill] sm:$0xff]  ;;  %v6575_v61 = vld [vmem:[#allocation69_spill] sm:$0xff] }
 0x342   : > { %v5852_v0 = vpop.eup %4426  ;;  %4446 = vpow2.f32 %v2188_v32  ;;  %v6567_v21 = vsub.f32 %v6565_v36, %v6566_v62  ;;  %v1878_v27 = vsub.f32 %v6569_v9, %v6568_v19  ;;  %v6574_v35 = vsub.f32 %v6572_v8, %v6573_v11  ;;  %v6583_v8 = vld [vmem:[#allocation12_spill] sm:$0xff] }
 0x343   : > { %v4429_v38 = vpop.eup %4428  ;;  %4448 = vpow2.f32 %v1926_v3  ;;  %v2190_v39 = vmul.f32 1.442695, %v2118_v50  ;;  %v2192_v57 = vmul.f32 1.442695, %v2119_v33  ;;  %2615 = vperm.xlu0 %4318, %v5826_v43  }
 0x344   : > { %v4431_v60 = vpop.eup %4430  ;;  %4450 = vpow2.f32 %v1928_v56  ;;  %v1930_v47 = vmul.f32 1.442695, %v6567_v21  ;;  %v1978_v23 = vpop.permute.xlu1 %1977  ;;  %v2750_v24 = vpack.c.bf16 %v4429_v38, %v4421_v14  ;;  %v1932_v10 = vmul.f32 1.442695, %v6574_v35  ;;  %v6576_v14 = vld [vmem:[#allocation67_spill] sm:$0xff]  ;;  %v6578_v56 = vld [vmem:[#allocation70_spill] sm:$0xff] }
 0x345   : > { %v5860_v48 = vpop.eup %4432  ;;  %4452 = vpow2.f32 %v2190_v39  ;;  %v2120_v6 = vsub.f32 %v6570_v51, %v1978_v23  ;;  %v2121_v4 = vsub.f32 %v6571_v46, %v1978_v23  ;;  %2620 = vperm.xlu1 %4319, %v5831_v31   ;;  %v2751_v16 = vpack.c.bf16 %v4431_v60, %v4423_v5  ;;  %v6582_v51 = vld [vmem:[#allocation71_spill] sm:$0xff]  ;;  %v6584_v35 = vld [vmem:[#allocation13_spill] sm:$0xff] }
 0x346   : > { %v5865_v58 = vpop.eup %4434  ;;  %4454 = vpow2.f32 %v2192_v57  ;;  %v5867_v18 = vadd.f32 %v4431_v60, %v4429_v38  ;;  %v1879_v1 = vsub.f32 %v6576_v14, %v6575_v61  ;;  %v1934_v5 = vmul.f32 1.442695, %v1878_v27  ;;  %v6579_v38 = vld [vmem:[#allocation10_spill] sm:$0xff]  ;;  %v6580_v57 = vld [vmem:[#allocation11_spill] sm:$0xff] }
 0x347   : > { %v4437_v59 = vpop.eup %4436  ;;  %v2194_v3 = vmul.f32 1.442695, %v2120_v6  ;;  %v2196_v29 = vmul.f32 1.442695, %v2121_v4  ;;  %2814 = vmatprep.mubr.bf16.mxu0 %v2751_v16  ;;  %2625 = vperm.xlu0 %4318, %v5836_v12   ;;  %4456 = vpow2.f32 %v1930_v47  ;;  %v1880_v26 = vsub.f32 %v6578_v56, %v6577_v13 }
 0x348   : > { %v4439_v32 = vpop.eup %4438  ;;  %2815 = vmatmul.mubr.bf16.vlgmr.msra.gmra.mrb[48].mxu0 %v2750_v24  ;;  %v1983_v50 = vpop.permute.xlu1 %1982  ;;  %v1936_v47 = vmul.f32 1.442695, %v1879_v1  ;;  %v6581_v24 = vld [vmem:[#allocation73_spill] sm:$0xff]  ;;  %v1882_v56 = vsub.f32 %v5699_v44, %v5707_v52 }
 0x349   : > { %v5877_v33 = vpop.eup %4440  ;;  %4458 = vpow2.f32 %v2194_v3  ;;  %v2122_v39 = vsub.f32 %v6579_v38, %v1983_v50  ;;  %v2123_v60 = vsub.f32 %v6580_v57, %v1983_v50  ;;  %2630 = vperm.xlu1 %4319, %v5845_v53   ;;  %v5882_v36 = vadd.f32 %v4439_v32, %v4437_v59  ;;  %v6586_v38 = vld [vmem:[#allocation15_spill] sm:$0xff] }
 0x34a   : > { %v5884_v62 = vpop.eup %4442  ;;  %4460 = vpow2.f32 %v2196_v29  ;;  %v1938_v23 = vmul.f32 1.442695, %v1880_v26  ;;  %v1881_v6 = vsub.f32 %v6582_v51, %v6581_v24  ;;  %v6585_v26 = vld [vmem:[#allocation14_spill] sm:$0xff] }
 0x34b   : > { %v4445_v21 = vpop.eup %4444  ;;  %4462 = vpow2.f32 %v1932_v10  ;;  %v2198_v19 = vmul.f32 1.442695, %v2122_v39  ;;  %v2200_v9 = vmul.f32 1.442695, %v2123_v60  ;;  %2635 = vperm.xlu0 %4318, %v5852_v0  }
 0x34c   : > { %v4447_v27 = vpop.eup %4446  ;;  %4464 = vpow2.f32 %v1934_v5  ;;  %v1988_v46 = vpop.permute.xlu1 %1987  ;;  %v2752_v4 = vpack.c.bf16 %v4445_v21, %v4437_v59  ;;  %v1940_v13 = vmul.f32 1.442695, %v1881_v6  ;;  %v1942_v6 = vmul.f32 1.442695, %v1882_v56  ;;  %v6592_v56 = vld [vmem:[#allocation19_spill] sm:$0xff] }
 0x34d   : > { %v5889_v16 = vpop.eup %4448  ;;  %4466 = vpow2.f32 %v2198_v19  ;;  %v2124_v11 = vsub.f32 %v6583_v8, %v1988_v46  ;;  %v2125_v10 = vsub.f32 %v6584_v35, %v1988_v46  ;;  %2640 = vperm.xlu1 %4319, %v5860_v48   ;;  %v2753_v61 = vpack.c.bf16 %v4447_v27, %v4439_v32 }
 0x34e   : > { %v5894_v14 = vpop.eup %4450  ;;  %4468 = vpow2.f32 %v2200_v9  ;;  %v5896_v1 = vadd.f32 %v4447_v27, %v4445_v21  ;;  %v1883_v21 = vsub.f32 %v5704_v25, %v5715_v55  ;;  %v6587_v9 = vld [vmem:[#allocation16_spill] sm:$0xff]  ;;  %v1884_v46 = vsub.f32 %v5727_v15, %v5735_v20 }
 0x34f   : > { %v4453_v3 = vpop.eup %4452  ;;  %4470 = vpow2.f32 %v1936_v47  ;;  %v2202_v29 = vmul.f32 1.442695, %v2124_v11  ;;  %v2204_v5 = vmul.f32 1.442695, %v2125_v10  ;;  %2822 = vmatprep.mubr.bf16.mxu0 %v2753_v61  ;;  %2645 = vperm.xlu0 %4318, %v5865_v58  }
 0x350   : > { %v4455_v59 = vpop.eup %4454  ;;  %4472 = vpow2.f32 %v1938_v23  ;;  %2823 = vmatmul.mubr.bf16.gmra.mrb[52].mxu0 %v2752_v4  ;;  %v1993_v32 = vpop.permute.xlu1 %1992  ;;  %v6588_v23 = vld [vmem:[#allocation17_spill] sm:$0xff]  ;;  %v1944_v10 = vmul.f32 1.442695, %v1883_v21  ;;  %v1946_v20 = vmul.f32 1.442695, %v1884_v46 }
 0x351   : > { %4474 = vpow2.f32 %v2202_v29  ;;  %v2126_v50 = vsub.f32 %v6585_v26, %v1993_v32  ;;  %v2127_v39 = vsub.f32 %v6586_v38, %v1993_v32  ;;  %2650 = vperm.xlu1 %4319, %v5877_v33   ;;  %v5904_v57 = vadd.f32 %v4455_v59, %v4453_v3  ;;  %v5906_v60 = vpop.eup %4456 }
 0x352   : > { %4476 = vpow2.f32 %v2204_v5  ;;  %v1998_v47 = vpop.permute.xlu0 %1997 }
 0x353   : > { %v4459_v19 = vpop.eup %4458  ;;  %v2206_v44 = vmul.f32 1.442695, %v2126_v50  ;;  %v2208_v52 = vmul.f32 1.442695, %v2127_v39  ;;  %v2128_v27 = vsub.f32 %v6587_v9, %v1998_v47  ;;  %v2129_v24 = vsub.f32 %v6588_v23, %v1998_v47  ;;  %2655 = vperm.xlu0 %4318, %v5884_v62  }
 0x354   : > { %v4461_v51 = vpop.eup %4460  ;;  %4478 = vpow2.f32 %v1940_v13  ;;  %v2754_v4 = vpack.c.bf16 %v4459_v19, %v4453_v3 }
 0x355   : > { %v5915_v8 = vpop.eup %4462  ;;  %4480 = vpow2.f32 %v2206_v44  ;;  %v2210_v25 = vmul.f32 1.442695, %v2128_v27  ;;  %v2212_v55 = vmul.f32 1.442695, %v2129_v24  ;;  %2660 = vperm.xlu1 %4319, %v5889_v16   ;;  %v2755_v11 = vpack.c.bf16 %v4461_v51, %v4455_v59  ;;  %v6591_v59 = vld [vmem:[#allocation18_spill] sm:$0xff] }
 0x356   : > { %6589 = vst [vmem:[#allocation62_spill] sm:$0xff] %v5915_v8  ;;  %v5918_v35 = vpop.eup %4464  ;;  %4482 = vpow2.f32 %v2208_v52  ;;  %v5920_v61 = vadd.f32 %v4461_v51, %v4459_v19  ;;  %v6594_v19 = vld [vmem:[#allocation20_spill] sm:$0xff]  ;;  %v6595_v52 = vld [vmem:[#allocation21_spill] sm:$0xff] }
 0x357   : > { %v4467_v29 = vpop.eup %4466  ;;  %4484 = vpow2.f32 %v2210_v25  ;;  %2830 = vmatprep.mubr.bf16.mxu0 %v2755_v11  ;;  %2665 = vperm.xlu0 %4318, %v5894_v14  }
 0x358   : > { %v4469_v15 = vpop.eup %4468  ;;  %4486 = vpow2.f32 %v2212_v55  ;;  %2831 = vmatmul.mubr.bf16.gmra.mrb[56].mxu0 %v2754_v4  ;;  %v2003_v3 = vpop.permute.xlu1 %2002 }
 0x359   : > { %v5923_v5 = vpop.eup %4470  ;;  %4488 = vpow2.f32 %v1942_v6  ;;  %v2130_v13 = vsub.f32 %v6591_v59, %v2003_v3  ;;  %v2131_v32 = vsub.f32 %v6592_v56, %v2003_v3  ;;  %2670 = vperm.xlu1 %4319, %v5906_v60   ;;  %v5928_v26 = vadd.f32 %v4469_v15, %v4467_v29  ;;  %v6598_v3 = vld [vmem:[#allocation23_spill] sm:$0xff] }
 0x35a   : > { %6590 = vst [vmem:[#allocation64_spill] sm:$0xff] %v5923_v5  ;;  %v5930_v50 = vpop.eup %4472  ;;  %4490 = vpow2.f32 %v1944_v10  ;;  %v2008_v38 = vpop.permute.xlu0 %2007 }
 0x35b   : > { %6593 = vst [vmem:[#allocation68_spill] sm:$0xff] %v5930_v50  ;;  %v4475_v39 = vpop.eup %4474  ;;  %v2214_v21 = vmul.f32 1.442695, %v2130_v13  ;;  %v2216_v47 = vmul.f32 1.442695, %v2131_v32  ;;  %v2132_v44 = vsub.f32 %v6594_v19, %v2008_v38  ;;  %v2133_v9 = vsub.f32 %v6595_v52, %v2008_v38  ;;  %2675 = vperm.xlu0 %4318, %v5915_v8  }
 0x35c   : > { %v4477_v27 = vpop.eup %4476  ;;  %4492 = vpow2.f32 %v1946_v20  ;;  %v2756_v23 = vpack.c.bf16 %v4475_v39, %v4467_v29  ;;  %v6597_v29 = vld [vmem:[#allocation22_spill] sm:$0xff] }
 0x35d   : > { %4494 = vpow2.f32 %v2214_v21  ;;  %v2218_v24 = vmul.f32 1.442695, %v2132_v44  ;;  %v2220_v51 = vmul.f32 1.442695, %v2133_v9  ;;  %2680 = vperm.xlu1 %4319, %v5918_v35   ;;  %v2757_v6 = vpack.c.bf16 %v4477_v27, %v4469_v15  ;;  %v6601_v44 = vld [vmem:[#allocation25_spill] sm:$0xff] }
 0x35e   : > { %v5936_v46 = vpop.eup %4478  ;;  %4496 = vpow2.f32 %v2216_v47  ;;  %v5938_v4 = vadd.f32 %v4477_v27, %v4475_v39  ;;  %v6600_v47 = vld [vmem:[#allocation24_spill] sm:$0xff] }
 0x35f   : > { %6596 = vst [vmem:[#allocation66_spill] sm:$0xff] %v5936_v46  ;;  %v4481_v25 = vpop.eup %4480  ;;  %4498 = vpow2.f32 %v2218_v24  ;;  %2838 = vmatprep.mubr.bf16.mxu0 %v2757_v6  ;;  %2685 = vperm.xlu0 %4318, %v5923_v5  }
 0x360   : > { %v4483_v55 = vpop.eup %4482  ;;  %4500 = vpow2.f32 %v2220_v51  ;;  %2839 = vmatmul.mubr.bf16.gmra.mrb[60].mxu0 %v2756_v23  ;;  %v2013_v11 = vpop.permute.xlu1 %2012 }
 0x361   : > { %v4485_v10 = vpop.eup %4484  ;;  %v2134_v20 = vsub.f32 %v6597_v29, %v2013_v11  ;;  %v2135_v59 = vsub.f32 %v6598_v3, %v2013_v11  ;;  %2690 = vperm.xlu1 %4319, %v5930_v50   ;;  %v5944_v15 = vadd.f32 %v4483_v55, %v4481_v25  ;;  %v6605_v3 = vld [vmem:[#allocation27_spill] sm:$0xff] }
 0x362   : > { %v4487_v13 = vpop.eup %4486  ;;  %v2018_v56 = vpop.permute.xlu0 %2017  ;;  %v2758_v32 = vpack.c.bf16 %v4485_v10, %v4481_v25 }
 0x363   : > { %v5946_v38 = vpop.eup %4488  ;;  %v2222_v39 = vmul.f32 1.442695, %v2134_v20  ;;  %v2224_v21 = vmul.f32 1.442695, %v2135_v59  ;;  %v2136_v19 = vsub.f32 %v6600_v47, %v2018_v56  ;;  %v2137_v52 = vsub.f32 %v6601_v44, %v2018_v56  ;;  %2695 = vperm.xlu0 %4318, %v5936_v46   ;;  %v6606_v44 = vld [vmem:[#allocation28_spill] sm:$0xff] }
 0x364   : > { %6599 = vst [vmem:[#allocation8_spill] sm:$0xff] %v5946_v38  ;;  %v5951_v9 = vpop.eup %4490  ;;  %v2759_v27 = vpack.c.bf16 %v4487_v13, %v4483_v55  ;;  %v5953_v23 = vadd.f32 %v4487_v13, %v4485_v10  ;;  %v6604_v10 = vld [vmem:[#allocation26_spill] sm:$0xff] }
 0x365   : > { %6602 = vst [vmem:[#allocation9_spill] sm:$0xff] %v5951_v9  ;;  %4502 = vpow2.f32 %v2222_v39  ;;  %v2226_v24 = vmul.f32 1.442695, %v2136_v19  ;;  %v2228_v51 = vmul.f32 1.442695, %v2137_v52  ;;  %2700 = vperm.xlu1 %4319, %v5946_v38  }
 0x366   : > { %v5956_v6 = vpop.eup %4492  ;;  %4504 = vpow2.f32 %v2224_v21  ;;  %2846 = vmatprep.mubr.bf16.mxu0 %v2759_v27  ;;  %v6607_v27 = vld [vmem:[#allocation29_spill] sm:$0xff] }
 0x367   : > { %6603 = vst [vmem:[#allocation63_spill] sm:$0xff] %v5956_v6  ;;  %v4495_v25 = vpop.eup %4494  ;;  %4506 = vpow2.f32 %v2226_v24  ;;  %2705 = vperm.xlu0 %4318, %v5951_v9  }
 0x368   : > { %v4497_v11 = vpop.eup %4496  ;;  %4508 = vpow2.f32 %v2228_v51  ;;  %2847 = vmatmul.mubr.bf16.gmra.mrb[64].mxu0 %v2758_v32  ;;  %v2023_v29 = vpop.permute.xlu1 %2022 }
 0x369   : > { %v4499_v55 = vpop.eup %4498  ;;  %v2138_v20 = vsub.f32 %v6604_v10, %v2023_v29  ;;  %v2139_v59 = vsub.f32 %v6605_v3, %v2023_v29  ;;  %2710 = vperm.xlu1 %4319, %v5956_v6   ;;  %v5962_v13 = vadd.f32 %v4497_v11, %v4495_v25 }
 0x36a   : > { %v4501_v56 = vpop.eup %4500  ;;  %v2028_v39 = vpop.permute.xlu0 %2027  ;;  %v2760_v21 = vpack.c.bf16 %v4499_v55, %v4495_v25 }
 0x36b   : > { %v2230_v47 = vmul.f32 1.442695, %v2138_v20  ;;  %v2232_v19 = vmul.f32 1.442695, %v2139_v59  ;;  %v2140_v52 = vsub.f32 %v6606_v44, %v2028_v39  ;;  %v2141_v24 = vsub.f32 %v6607_v27, %v2028_v39  ;;  %v6608_v59 = vld [vmem:[#allocation30_spill] sm:$0xff]  ;;  %v6609_v44 = vld [vmem:[#allocation31_spill] sm:$0xff] }
 0x36c   : > { %v2761_v32 = vpack.c.bf16 %v4501_v56, %v4497_v11  ;;  %v5966_v51 = vadd.f32 %v4501_v56, %v4499_v55 }
 0x36d   : > { %4510 = vpow2.f32 %v2230_v47  ;;  %v2234_v10 = vmul.f32 1.442695, %v2140_v52  ;;  %v2236_v41 = vmul.f32 1.442695, %v2141_v24  ;;  %v6611_v24 = vld [vmem:[#allocation33_spill] sm:$0xff] }
 0x36e   : > { %4512 = vpow2.f32 %v2232_v19  ;;  %2854 = vmatprep.mubr.bf16.mxu0 %v2761_v32  ;;  %v6610_v19 = vld [vmem:[#allocation32_spill] sm:$0xff] }
 0x36f   : > { %v4503_v29 = vpop.eup %4502  ;;  %4514 = vpow2.f32 %v2234_v10 }
 0x370   : > { %v4505_v3 = vpop.eup %4504  ;;  %4516 = vpow2.f32 %v2236_v41  ;;  %2855 = vmatmul.mubr.bf16.gmra.mrb[68].mxu0 %v2760_v21  ;;  %v2033_v25 = vpop.permute.xlu1 %2032 }
 0x371   : > { %v4507_v20 = vpop.eup %4506  ;;  %v2142_v9 = vsub.f32 %v6608_v59, %v2033_v25  ;;  %v2143_v6 = vsub.f32 %v6609_v44, %v2033_v25  ;;  %v5970_v39 = vadd.f32 %v4505_v3, %v4503_v29 }
 0x372   : > { %v4509_v11 = vpop.eup %4508  ;;  %v2038_v55 = vpop.permute.xlu0 %2037  ;;  %v2762_v56 = vpack.c.bf16 %v4507_v20, %v4503_v29 }
 0x373   : > { %v2238_v47 = vmul.f32 1.442695, %v2142_v9  ;;  %v2240_v52 = vmul.f32 1.442695, %v2143_v6  ;;  %v2144_v27 = vsub.f32 %v6610_v19, %v2038_v55  ;;  %v2145_v32 = vsub.f32 %v6611_v24, %v2038_v55  ;;  %v6612_v6 = vld [vmem:[#allocation34_spill] sm:$0xff]  ;;  %v6613_v19 = vld [vmem:[#allocation35_spill] sm:$0xff] }
 0x374   : > { %v2763_v10 = vpack.c.bf16 %v4509_v11, %v4505_v3  ;;  %v5974_v41 = vadd.f32 %v4509_v11, %v4507_v20 }
 0x375   : > { %4518 = vpow2.f32 %v2238_v47  ;;  %v2242_v21 = vmul.f32 1.442695, %v2144_v27  ;;  %v2244_v46 = vmul.f32 1.442695, %v2145_v32  ;;  %v6615_v32 = vld [vmem:[#allocation37_spill] sm:$0xff] }
 0x376   : > { %4520 = vpow2.f32 %v2240_v52  ;;  %2862 = vmatprep.mubr.bf16.mxu0 %v2763_v10  ;;  %v6614_v52 = vld [vmem:[#allocation36_spill] sm:$0xff] }
 0x377   : > { %v4511_v25 = vpop.eup %4510  ;;  %4522 = vpow2.f32 %v2242_v21 }
 0x378   : > { %v4513_v59 = vpop.eup %4512  ;;  %4524 = vpow2.f32 %v2244_v46  ;;  %2863 = vmatmul.mubr.bf16.gmra.mrb[72].mxu0 %v2762_v56  ;;  %v2043_v29 = vpop.permute.xlu1 %2042 }
 0x379   : > { %v4515_v9 = vpop.eup %4514  ;;  %v2146_v44 = vsub.f32 %v6612_v6, %v2043_v29  ;;  %v2147_v38 = vsub.f32 %v6613_v19, %v2043_v29  ;;  %v5978_v55 = vadd.f32 %v4513_v59, %v4511_v25 }
 0x37a   : > { %v4517_v3 = vpop.eup %4516  ;;  %v2048_v20 = vpop.permute.xlu0 %2047  ;;  %v2764_v11 = vpack.c.bf16 %v4515_v9, %v4511_v25 }
 0x37b   : > { %v2246_v47 = vmul.f32 1.442695, %v2146_v44  ;;  %v2248_v27 = vmul.f32 1.442695, %v2147_v38  ;;  %v2148_v24 = vsub.f32 %v6614_v52, %v2048_v20  ;;  %v2149_v10 = vsub.f32 %v6615_v32, %v2048_v20  ;;  %v6616_v38 = vld [vmem:[#allocation38_spill] sm:$0xff]  ;;  %v6617_v52 = vld [vmem:[#allocation39_spill] sm:$0xff] }
 0x37c   : > { %v2765_v21 = vpack.c.bf16 %v4517_v3, %v4513_v59  ;;  %v5982_v46 = vadd.f32 %v4517_v3, %v4515_v9 }
 0x37d   : > { %4526 = vpow2.f32 %v2246_v47  ;;  %v2250_v56 = vmul.f32 1.442695, %v2148_v24  ;;  %v2252_v5 = vmul.f32 1.442695, %v2149_v10  ;;  %v6619_v10 = vld [vmem:[#allocation41_spill] sm:$0xff] }
 0x37e   : > { %4528 = vpow2.f32 %v2248_v27  ;;  %2870 = vmatprep.mubr.bf16.mxu0 %v2765_v21  ;;  %v6618_v27 = vld [vmem:[#allocation40_spill] sm:$0xff] }
 0x37f   : > { %v4519_v29 = vpop.eup %4518  ;;  %4530 = vpow2.f32 %v2250_v56 }
 0x380   : > { %v4521_v6 = vpop.eup %4520  ;;  %4532 = vpow2.f32 %v2252_v5  ;;  %2871 = vmatmul.mubr.bf16.gmra.mrb[76].mxu0 %v2764_v11  ;;  %v2053_v25 = vpop.permute.xlu1 %2052 }
 0x381   : > { %v4523_v44 = vpop.eup %4522  ;;  %v2150_v19 = vsub.f32 %v6616_v38, %v2053_v25  ;;  %v2151_v50 = vsub.f32 %v6617_v52, %v2053_v25  ;;  %v5986_v20 = vadd.f32 %v4521_v6, %v4519_v29 }
 0x382   : > { %v4525_v59 = vpop.eup %4524  ;;  %v2058_v9 = vpop.permute.xlu0 %2057  ;;  %v2766_v3 = vpack.c.bf16 %v4523_v44, %v4519_v29 }
 0x383   : > { %v2254_v47 = vmul.f32 1.442695, %v2150_v19  ;;  %v2256_v24 = vmul.f32 1.442695, %v2151_v50  ;;  %v2152_v32 = vsub.f32 %v6618_v27, %v2058_v9  ;;  %v2153_v21 = vsub.f32 %v6619_v10, %v2058_v9  ;;  %v6620_v19 = vld [vmem:[#allocation42_spill] sm:$0xff]  ;;  %v6621_v9 = vld [vmem:[#allocation43_spill] sm:$0xff] }
 0x384   : > { %v2767_v56 = vpack.c.bf16 %v4525_v59, %v4521_v6  ;;  %v5990_v5 = vadd.f32 %v4525_v59, %v4523_v44 }
 0x385   : > { %4534 = vpow2.f32 %v2254_v47  ;;  %v2258_v11 = vmul.f32 1.442695, %v2152_v32  ;;  %v2260_v8 = vmul.f32 1.442695, %v2153_v21  ;;  %v6622_v32 = vld [vmem:[#allocation44_spill] sm:$0xff]  ;;  %v6623_v21 = vld [vmem:[#allocation45_spill] sm:$0xff] }
 0x386   : > { %4536 = vpow2.f32 %v2256_v24  ;;  %2878 = vmatprep.mubr.bf16.mxu0 %v2767_v56  ;;  %2370 = vadd.xlane.f32.xlu0 %v5867_v18 }
 0x387   : > { %v4527_v25 = vpop.eup %4526  ;;  %4538 = vpow2.f32 %v2258_v11 }
 0x388   : > { %v4529_v38 = vpop.eup %4528  ;;  %4540 = vpow2.f32 %v2260_v8  ;;  %2879 = vmatmul.mubr.bf16.gmra.mrb[80].mxu0 %v2766_v3  ;;  %v2063_v50 = vpop.permute.xlu1 %2062 }
 0x389   : > { %v4531_v29 = vpop.eup %4530  ;;  %v2154_v52 = vsub.f32 %v6620_v19, %v2063_v50  ;;  %v2155_v6 = vsub.f32 %v6621_v9, %v2063_v50  ;;  %v5995_v44 = vadd.f32 %v4529_v38, %v4527_v25  ;;  %v6624_v9 = vld [vmem:[#allocation46_spill] sm:$0xff] }
 0x38a   : > { %v4533_v59 = vpop.eup %4532  ;;  %v2068_v47 = vpop.permute.xlu0 %2067  ;;  %2373 = vadd.xlane.f32.xlu0 %v5882_v36  ;;  %v2768_v24 = vpack.c.bf16 %v4531_v29, %v4527_v25 }
 0x38b   : > { %v2262_v27 = vmul.f32 1.442695, %v2154_v52  ;;  %v2264_v18 = vmul.f32 1.442695, %v2155_v6  ;;  %v2156_v10 = vsub.f32 %v6622_v32, %v2068_v47  ;;  %v2157_v8 = vsub.f32 %v6623_v21, %v2068_v47  ;;  %v6626_v32 = vld [vmem:[#allocation48_spill] sm:$0xff] }
 0x38c   : > { %v2769_v3 = vpack.c.bf16 %v4533_v59, %v4529_v38  ;;  %v6000_v56 = vadd.f32 %v4533_v59, %v4531_v29  ;;  %v6625_v29 = vld [vmem:[#allocation47_spill] sm:$0xff] }
 0x38d   : > { %4542 = vpow2.f32 %v2262_v27  ;;  %v2266_v11 = vmul.f32 1.442695, %v2156_v10  ;;  %v2268_v19 = vmul.f32 1.442695, %v2157_v8  ;;  %2367 = vadd.xlane.f32.xlu1 %v5850_v37 }
 0x38e   : > { %4544 = vpow2.f32 %v2264_v18  ;;  %2886 = vmatprep.mubr.bf16.mxu0 %v2769_v3  ;;  %2379 = vadd.xlane.f32.xlu0 %v5904_v57 }
 0x38f   : > { %v4535_v36 = vpop.eup %4534  ;;  %4546 = vpow2.f32 %v2266_v11 }
 0x390   : > { %v4537_v25 = vpop.eup %4536  ;;  %4548 = vpow2.f32 %v2268_v19  ;;  %2887 = vmatmul.mubr.bf16.gmra.mrb[84].mxu0 %v2768_v24  ;;  %v2073_v50 = vpop.permute.xlu1 %2072  ;;  %v6627_v24 = vld [vmem:[#allocation49_spill] sm:$0xff] }
 0x391   : > { %v4539_v52 = vpop.eup %4538  ;;  %v2158_v38 = vsub.f32 %v6624_v9, %v2073_v50  ;;  %v2159_v6 = vsub.f32 %v6625_v29, %v2073_v50  ;;  %2376 = vadd.xlane.f32.xlu1 %v5896_v1  ;;  %v6007_v59 = vadd.f32 %v4537_v25, %v4535_v36  ;;  %v6628_v9 = vld [vmem:[#allocation50_spill] sm:$0xff] }
 0x392   : > { %v4541_v37 = vpop.eup %4540  ;;  %v2078_v47 = vpop.permute.xlu0 %2077  ;;  %2385 = vadd.xlane.f32.xlu0 %v5928_v26  ;;  %v2770_v57 = vpack.c.bf16 %v4539_v52, %v4535_v36 }
 0x393   : > { %v2270_v27 = vmul.f32 1.442695, %v2158_v38  ;;  %v2272_v18 = vmul.f32 1.442695, %v2159_v6  ;;  %v2160_v10 = vsub.f32 %v6626_v32, %v2078_v47  ;;  %v2161_v21 = vsub.f32 %v6627_v24, %v2078_v47 }
 0x394   : > { %v2771_v8 = vpack.c.bf16 %v4541_v37, %v4537_v25  ;;  %v6012_v3 = vadd.f32 %v4541_v37, %v4539_v52  ;;  %v6629_v52 = vld [vmem:[#allocation51_spill] sm:$0xff] }
 0x395   : > { %4550 = vpow2.f32 %v2270_v27  ;;  %v2274_v11 = vmul.f32 1.442695, %v2160_v10  ;;  %v2276_v19 = vmul.f32 1.442695, %v2161_v21  ;;  %2382 = vadd.xlane.f32.xlu1 %v5920_v61  ;;  %v6630_v27 = vld [vmem:[#allocation52_spill] sm:$0xff] }
 0x396   : > { %4552 = vpow2.f32 %v2272_v18  ;;  %2894 = vmatprep.mubr.bf16.mxu0 %v2771_v8  ;;  %2391 = vadd.xlane.f32.xlu0 %v5944_v15 }
 0x397   : > { %v4543_v1 = vpop.eup %4542  ;;  %4554 = vpow2.f32 %v2274_v11 }
 0x398   : > { %v4545_v26 = vpop.eup %4544  ;;  %4556 = vpow2.f32 %v2276_v19  ;;  %2895 = vmatmul.mubr.bf16.gmra.mrb[88].mxu0 %v2770_v57  ;;  %v2083_v36 = vpop.permute.xlu1 %2082  ;;  %v6631_v57 = vld [vmem:[#allocation53_spill] sm:$0xff] }
 0x399   : > { %v4547_v50 = vpop.eup %4546  ;;  %v2162_v25 = vsub.f32 %v6628_v9, %v2083_v36  ;;  %v2163_v38 = vsub.f32 %v6629_v52, %v2083_v36  ;;  %2388 = vadd.xlane.f32.xlu1 %v5938_v4  ;;  %v6019_v29 = vadd.f32 %v4545_v26, %v4543_v1  ;;  %v6633_v36 = vld [vmem:[#allocation55_spill] sm:$0xff] }
 0x39a   : > { %v4549_v61 = vpop.eup %4548  ;;  %v2088_v6 = vpop.permute.xlu0 %2087  ;;  %2397 = vadd.xlane.f32.xlu0 %v5962_v13  ;;  %v2772_v15 = vpack.c.bf16 %v4547_v50, %v4543_v1  ;;  %v6632_v1 = vld [vmem:[#allocation54_spill] sm:$0xff] }
 0x39b   : > { %v2278_v37 = vmul.f32 1.442695, %v2162_v25  ;;  %v2280_v47 = vmul.f32 1.442695, %v2163_v38  ;;  %v2164_v18 = vsub.f32 %v6630_v27, %v2088_v6  ;;  %v2165_v32 = vsub.f32 %v6631_v57, %v2088_v6 }
 0x39c   : > { %v2773_v10 = vpack.c.bf16 %v4549_v61, %v4545_v26  ;;  %v6024_v24 = vadd.f32 %v4549_v61, %v4547_v50  ;;  %v6634_v61 = vld [vmem:[#allocation56_spill] sm:$0xff] }
 0x39d   : > { %4558 = vpow2.f32 %v2278_v37  ;;  %v2282_v21 = vmul.f32 1.442695, %v2164_v18  ;;  %v2284_v8 = vmul.f32 1.442695, %v2165_v32  ;;  %2394 = vadd.xlane.f32.xlu1 %v5953_v23  ;;  %v6635_v37 = vld [vmem:[#allocation57_spill] sm:$0xff] }
 0x39e   : > { %4560 = vpow2.f32 %v2280_v47  ;;  %2902 = vmatprep.mubr.bf16.mxu0 %v2773_v10  ;;  %2403 = vadd.xlane.f32.xlu0 %v5970_v39 }
 0x39f   : > { %v4551_v4 = vpop.eup %4550  ;;  %4562 = vpow2.f32 %v2282_v21  ;;  %v6636_v21 = vld [vmem:[#allocation58_spill] sm:$0xff] }
 0x3a0   : > { %v4553_v13 = vpop.eup %4552  ;;  %4564 = vpow2.f32 %v2284_v8  ;;  %2903 = vmatmul.mubr.bf16.gmra.mrb[92].mxu0 %v2772_v15  ;;  %v2093_v11 = vpop.permute.xlu1 %2092 }
 0x3a1   : > { %v4555_v19 = vpop.eup %4554  ;;  %v2166_v26 = vsub.f32 %v6632_v1, %v2093_v11  ;;  %v2167_v50 = vsub.f32 %v6633_v36, %v2093_v11  ;;  %2400 = vadd.xlane.f32.xlu1 %v5966_v51  ;;  %v2438_v9 = vadd.f32 %v4553_v13, %v4551_v4  ;;  %v6638_v36 = vld [vmem:[#allocation60_spill] sm:$0xff] }
 0x3a2   : > { %v4557_v25 = vpop.eup %4556  ;;  %v2098_v23 = vpop.permute.xlu0 %2097  ;;  %2409 = vadd.xlane.f32.xlu0 %v5978_v55  ;;  %v2774_v52 = vpack.c.bf16 %v4555_v19, %v4551_v4  ;;  %v6637_v4 = vld [vmem:[#allocation59_spill] sm:$0xff] }
 0x3a3   : > { %v2286_v39 = vmul.f32 1.442695, %v2166_v26  ;;  %v2288_v38 = vmul.f32 1.442695, %v2167_v50  ;;  %v2168_v6 = vsub.f32 %v6634_v61, %v2098_v23  ;;  %v2169_v15 = vsub.f32 %v6635_v37, %v2098_v23 }
 0x3a4   : > { %v2775_v47 = vpack.c.bf16 %v4557_v25, %v4553_v13  ;;  %v6034_v27 = vadd.f32 %v4557_v25, %v4555_v19  ;;  %v6639_v25 = vld [vmem:[#allocation61_spill] sm:$0xff] }
 0x3a5   : > { %4566 = vpow2.f32 %v2286_v39  ;;  %v2290_v18 = vmul.f32 1.442695, %v2168_v6  ;;  %v2292_v57 = vmul.f32 1.442695, %v2169_v15  ;;  %2406 = vadd.xlane.f32.xlu1 %v5974_v41 }
 0x3a6   : > { %4568 = vpow2.f32 %v2288_v38  ;;  %2910 = vmatprep.mubr.bf16.mxu0 %v2775_v47  ;;  %2415 = vadd.xlane.f32.xlu0 %v5986_v20 }
 0x3a7   : > { %v4559_v51 = vpop.eup %4558  ;;  %4570 = vpow2.f32 %v2290_v18 }
 0x3a8   : > { %v4561_v55 = vpop.eup %4560  ;;  %4572 = vpow2.f32 %v2292_v57  ;;  %2911 = vmatmul.mubr.bf16.gmra.mrb[96].mxu0 %v2774_v52  ;;  %v2103_v32 = vpop.permute.xlu1 %2102 }
 0x3a9   : > { %v4563_v10 = vpop.eup %4562  ;;  %v2170_v8 = vsub.f32 %v6636_v21, %v2103_v32  ;;  %v2171_v13 = vsub.f32 %v6637_v4, %v2103_v32  ;;  %2412 = vadd.xlane.f32.xlu1 %v5982_v46  ;;  %v2444_v11 = vadd.f32 %v4561_v55, %v4559_v51 }
 0x3aa   : > { %v4565_v19 = vpop.eup %4564  ;;  %v2108_v41 = vpop.permute.xlu0 %2107  ;;  %2421 = vadd.xlane.f32.xlu0 %v5995_v44  ;;  %v2776_v1 = vpack.c.bf16 %v4563_v10, %v4559_v51 }
 0x3ab   : > { %v2294_v20 = vmul.f32 1.442695, %v2170_v8  ;;  %v2296_v26 = vmul.f32 1.442695, %v2171_v13  ;;  %v2172_v50 = vsub.f32 %v6638_v36, %v2108_v41  ;;  %v2173_v23 = vsub.f32 %v6639_v25, %v2108_v41 }
 0x3ac   : > { %v2777_v52 = vpack.c.bf16 %v4565_v19, %v4561_v55  ;;  %v2447_v39 = vadd.f32 %v4565_v19, %v4563_v10  ;;  %v6052_v8 = vpop.permute.xlu1 %2565  ;;  %v6640_v13 = vsub.f32 %v5732_v22, %v5746_v63 }
 0x3ad   : > { %4574 = vpow2.f32 %v2294_v20  ;;  %v2298_v38 = vmul.f32 1.442695, %v2172_v50  ;;  %v2300_v61 = vmul.f32 1.442695, %v2173_v23  ;;  %2418 = vadd.xlane.f32.xlu1 %v5990_v5 }
 0x3ae   : > { %4576 = vpow2.f32 %v2296_v26  ;;  %2918 = vmatprep.mubr.bf16.mxu0 %v2777_v52  ;;  %2427 = vadd.xlane.f32.xlu0 %v6007_v59  ;;  %v6050_v10 = vpop.permute.xlu0 %2560 }
 0x3af   : > { %v4567_v46 = vpop.eup %4566  ;;  %4578 = vpow2.f32 %v2298_v38 }
 0x3b0   : > { %v4569_v44 = vpop.eup %4568  ;;  %4580 = vpow2.f32 %v2300_v61  ;;  %2919 = vmatmul.mubr.bf16.gmra.mrb[100].mxu0 %v2776_v1 }
 0x3b1   : > { %v4571_v6 = vpop.eup %4570  ;;  %2424 = vadd.xlane.f32.xlu1 %v6000_v56  ;;  %v2450_v37 = vadd.f32 %v4569_v44, %v4567_v46 }
 0x3b2   : > { %v4573_v15 = vpop.eup %4572  ;;  %2433 = vadd.xlane.f32.xlu0 %v6019_v29  ;;  %v2778_v47 = vpack.c.bf16 %v4571_v6, %v4567_v46 }
 0x3b3   : > { %v2779_v18 = vpack.c.bf16 %v4573_v15, %v4569_v44  ;;  %v2453_v57 = vadd.f32 %v4573_v15, %v4571_v6 }
 0x3b5   : > { %2926 = vmatprep.mubr.bf16.mxu0 %v2779_v18  ;;  %2430 = vadd.xlane.f32.xlu1 %v6012_v3  ;;  %v6055_v3 = vpop.permute.xlu0 %2575 }
 0x3b6   : > { %2439 = vadd.xlane.f32.xlu0 %v2438_v9  ;;  %v6057_v9 = vpop.permute.xlu1 %2570 }
 0x3b7   : > { %v4575_v5 = vpop.eup %4574 }
 0x3b8   : > { %v4577_v59 = vpop.eup %4576  ;;  %2927 = vmatmul.mubr.bf16.gmra.mrb[104].mxu0 %v2778_v47 }
 0x3b9   : > { %v4579_v51 = vpop.eup %4578  ;;  %2436 = vadd.xlane.f32.xlu1 %v6024_v24  ;;  %v2456_v55 = vadd.f32 %v4577_v59, %v4575_v5  ;;  %v6059_v24 = vpop.permute.xlu0 %2585 }
 0x3ba   : > { %v4581_v32 = vpop.eup %4580  ;;  %2445 = vadd.xlane.f32.xlu0 %v2444_v11  ;;  %v2780_v56 = vpack.c.bf16 %v4579_v51, %v4575_v5  ;;  %v6061_v4 = vpop.permute.xlu1 %2580  ;;  %v1948_v11 = vmul.f32 1.442695, %v6640_v13  ;;  %v2303_v5 = vld [vmem:[#allocation5 + $0x8] sm:$0xff]  ;;  %v2302_v13 = vld [vmem:[#allocation5] sm:$0xff] }
 0x3bb   : > { %v2781_v29 = vpack.c.bf16 %v4581_v32, %v4577_v59  ;;  %v2459_v21 = vadd.f32 %v4581_v32, %v4579_v51  ;;  %v2335_v51 = vmul.f32 %v5760_v42, %v2303_v5  ;;  %v2304_v32 = vld [vmem:[#allocation5 + $0x10] sm:$0xff]  ;;  %v2305_v5 = vld [vmem:[#allocation5 + $0x18] sm:$0xff] }
 0x3bc   : > { %4582 = vpow2.f32 %v1948_v11 }
 0x3bd   : > { %2934 = vmatprep.mubr.bf16.mxu0 %v2781_v29  ;;  %2442 = vadd.xlane.f32.xlu1 %v6034_v27  ;;  %v6066_v27 = vpop.permute.xlu0 %2595 }
 0x3be   : > { %2451 = vadd.xlane.f32.xlu0 %v2450_v37  ;;  %v6068_v19 = vpop.permute.xlu1 %2590 }
 0x3c0   : > { %2935 = vmatmul.mubr.bf16.gmra.mrb[108].mxu0 %v2780_v56 }
 0x3c1   : > { %2448 = vadd.xlane.f32.xlu1 %v2447_v39  ;;  %v6070_v41 = vpop.permute.xlu0 %2605 }
 0x3c2   : > { %2457 = vadd.xlane.f32.xlu0 %v2456_v55  ;;  %v6072_v1 = vpop.permute.xlu1 %2600 }
 0x3c5   : > { %2454 = vadd.xlane.f32.xlu1 %v2453_v57  ;;  %v6077_v26 = vpop.permute.xlu0 %2615 }
 0x3c6   : > { %v6074_v20 = vpop.eup %4582  ;;  %v6079_v36 = vpop.permute.xlu1 %2610 }
 0x3c9   : > { %2460 = vadd.xlane.f32.xlu1 %v2459_v21  ;;  %v6081_v22 = vpop.permute.xlu0 %2625  ;;  %v2336_v21 = vmul.f32 %v5778_v40, %v2304_v32  ;;  %v2718_v40 = vmul.f32 0.0, %v6050_v10 }
 0x3ca   : > { %v6083_v63 = vpop.permute.xlu1 %2620 }
 0x3cd   : > { %v6085_v50 = vpop.permute.xlu0 %2635 }
 0x3ce   : > { %v6087_v25 = vpop.permute.xlu1 %2630 }
 0x3d1   : > { %v6089_v23 = vpop.permute.xlu0 %2645 }
 0x3d2   : > { %v6091_v52 = vpop.permute.xlu1 %2640 }
 0x3d5   : > { %v6093_v39 = vpop.permute.xlu0 %2655 }
 0x3d6   : > { %v6095_v38 = vpop.permute.xlu1 %2650 }
 0x3d8   : > { %2715 = vperm.xlu0 %4318, %v6074_v20  }
 0x3d9   : > { %v6097_v61 = vpop.permute.xlu0 %2665 }
 0x3da   : > { %v6099_v46 = vpop.permute.xlu1 %2660 }
 0x3dd   : > { %v6101_v44 = vpop.permute.xlu0 %2675 }
 0x3de   : > { %6641 = vst [vmem:[#allocation65_spill] sm:$0xff] %v6101_v44  ;;  %v6103_v6 = vpop.permute.xlu1 %2670 }
 0x3e1   : > { %v6105_v37 = vpop.permute.xlu0 %2685 }
 0x3e2   : > { %6642 = vst [vmem:[#allocation69_spill] sm:$0xff] %v6105_v37  ;;  %v6107_v15 = vpop.permute.xlu1 %2680 }
 0x3e3   : > { %6643 = vst [vmem:[#allocation67_spill] sm:$0xff] %v6107_v15 }
 0x3e5   : > { %v6109_v47 = vpop.permute.xlu0 %2695 }
 0x3e6   : > { %6644 = vst [vmem:[#allocation72_spill] sm:$0xff] %v6109_v47  ;;  %v6111_v18 = vpop.permute.xlu1 %2690  ;;  %v2306_v47 = vld [vmem:[#allocation5 + $0x20] sm:$0xff] }
 0x3e7   : > { %6645 = vst [vmem:[#allocation70_spill] sm:$0xff] %v6111_v18  ;;  %v2338_v42 = vmul.f32 %v5792_v34, %v2306_v47 }
 0x3e9   : > { %v6113_v57 = vpop.permute.xlu0 %2705 }
 0x3ea   : > { %6646 = vst [vmem:[#allocation10_spill] sm:$0xff] %v6113_v57  ;;  %v6115_v59 = vpop.permute.xlu1 %2700  ;;  %v2334_v57 = vmul.f32 %v5769_v54, %v2302_v13  ;;  %v2337_v54 = vmul.f32 %v5786_v28, %v2305_v5 }
 0x3eb   : > { %6647 = vst [vmem:[#allocation11_spill] sm:$0xff] %v6115_v59 }
 0x3ee   : > { %v6118_v29 = vpop.permute.xlu1 %2710 }
 0x3ef   : > { %6648 = vst [vmem:[#allocation73_spill] sm:$0xff] %v6118_v29  ;;  %v2308_v29 = vld [vmem:[#allocation5 + $0x30] sm:$0xff] }
 0x413   : > { %v2371_v55 = vpop.xlane.xlu0 %2370 }
 0x414   : > { %v2463_v56 = vadd.f32 %v2371_v55, %v2335_v51 }
 0x416   : > { %2495 = vst.msk [vmem:[#allocation5 + $0x8] sm:$0xff] %vm1372_vm0, %v2463_v56 }
 0x417   : > { %v2374_v11 = vpop.xlane.xlu0 %2373 }
 0x418   : > { %v2464_v18 = vadd.f32 %v2374_v11, %v2336_v21 }
 0x41a   : > { %2496 = vst.msk [vmem:[#allocation5 + $0x10] sm:$0xff] %vm1372_vm0, %v2464_v18  ;;  %v2368_v59 = vpop.xlane.xlu1 %2367  ;;  %v2340_v18 = vmul.f32 %v5802_v30, %v2308_v29  ;;  %v2309_v29 = vld [vmem:[#allocation5 + $0x38] sm:$0xff] }
 0x41b   : > { %v4035_v37 = vpop.f32.mrb[48].mxu0  ;;  %v2462_v51 = vadd.f32 %v2368_v59, %v2334_v57  ;;  %v2380_v55 = vpop.xlane.xlu0 %2379  ;;  %v2307_v57 = vld [vmem:[#allocation5 + $0x28] sm:$0xff]  ;;  %v2719_v59 = vmul.f32 0.0, %v6052_v8 }
 0x41c   : > { %v4036_v15 = vpop.f32.mrb[49].mxu0  ;;  %v2466_v56 = vadd.f32 %v2380_v55, %v2338_v42  ;;  %v2310_v55 = vld [vmem:[#allocation5 + $0x40] sm:$0xff]  ;;  %v2339_v28 = vmul.f32 %v5800_v2, %v2307_v57 }
 0x41d   : > { %v3072_v32 = vld [vmem:[#allocation5 + $0x8] sm:$0xff]  ;;  %2494 = vst.msk [vmem:[#allocation5] sm:$0xff] %vm1372_vm0, %v2462_v51  ;;  %v4037_v21 = vadd.f32 %v4036_v15, %v4035_v37  ;;  %v4038_v11 = vpop.f32.mrb[50].mxu0  ;;  %v2342_v30 = vmul.f32 %v5813_v45, %v2310_v55 }
 0x41e   : > { %4584 = vrcp.f32 %v3072_v32  ;;  %2498 = vst.msk [vmem:[#allocation5 + $0x20] sm:$0xff] %vm1372_vm0, %v2466_v56  ;;  %v4039_v34 = vpop.f32.mrb[51].mxu0  ;;  %v2377_v47 = vpop.xlane.xlu1 %2376  ;;  %v2312_v32 = vld [vmem:[#allocation5 + $0x50] sm:$0xff] }
 0x41f   : > { %v4040_v13 = vadd.f32 %v4039_v34, %v4038_v11  ;;  %v2465_v42 = vadd.f32 %v2377_v47, %v2337_v54  ;;  %v2386_v10 = vpop.xlane.xlu0 %2385  ;;  %v6131_v44 = vadd.f32 %v4037_v21, %v2718_v40  ;;  %v2720_v54 = vmul.f32 0.0, %v6057_v9 }
 0x420   : > { %v2468_v37 = vadd.f32 %v2386_v10, %v2340_v18  ;;  %v2341_v18 = vmul.f32 %v5808_v7, %v2309_v29 }
 0x421   : > { %2497 = vst.msk [vmem:[#allocation5 + $0x18] sm:$0xff] %vm1372_vm0, %v2465_v42  ;;  %v6135_v15 = vadd.f32 %v4040_v13, %v2719_v59  ;;  %v3073_v34 = vld [vmem:[#allocation5 + $0x10] sm:$0xff]  ;;  %v2344_v59 = vmul.f32 %v5820_v49, %v2312_v32  ;;  %v2311_v13 = vld [vmem:[#allocation5 + $0x48] sm:$0xff]  ;;  %v2721_v42 = vmul.f32 0.0, %v6055_v3 }
 0x422   : > { %2500 = vst.msk [vmem:[#allocation5 + $0x30] sm:$0xff] %vm1372_vm0, %v2468_v37  ;;  %v2383_v5 = vpop.xlane.xlu1 %2382  ;;  %v2314_v37 = vld [vmem:[#allocation5 + $0x60] sm:$0xff]  ;;  %v2343_v49 = vmul.f32 %v5818_v17, %v2311_v13 }
 0x423   : > { %v4041_v8 = vpop.f32.mrb[52].mxu0  ;;  %v2467_v51 = vadd.f32 %v2383_v5, %v2339_v28  ;;  %v2392_v56 = vpop.xlane.xlu0 %2391 }
 0x424   : > { %v3071_v11 = vld [vmem:[#allocation5] sm:$0xff]  ;;  %v4042_v40 = vpop.f32.mrb[53].mxu0  ;;  %v2470_v21 = vadd.f32 %v2392_v56, %v2342_v30  ;;  %v2313_v56 = vld [vmem:[#allocation5 + $0x58] sm:$0xff] }
 0x425   : > { %4586 = vrcp.f32 %v3071_v11  ;;  %2499 = vst.msk [vmem:[#allocation5 + $0x28] sm:$0xff] %vm1372_vm0, %v2467_v51  ;;  %v4043_v2 = vadd.f32 %v4042_v40, %v4041_v8  ;;  %v4044_v47 = vpop.f32.mrb[54].mxu0  ;;  %v3075_v7 = vld [vmem:[#allocation5 + $0x20] sm:$0xff]  ;;  %v2346_v51 = vmul.f32 %v5831_v31, %v2314_v37 }
 0x426   : > { %2502 = vst.msk [vmem:[#allocation5 + $0x40] sm:$0xff] %vm1372_vm0, %v2470_v21  ;;  %v4045_v45 = vpop.f32.mrb[55].mxu0  ;;  %v2389_v57 = vpop.xlane.xlu1 %2388  ;;  %4588 = vrcp.f32 %v3073_v34  ;;  %v2316_v21 = vld [vmem:[#allocation5 + $0x70] sm:$0xff] }
 0x427   : > { %v4046_v10 = vadd.f32 %v4045_v45, %v4044_v47  ;;  %v2469_v55 = vadd.f32 %v2389_v57, %v2341_v18  ;;  %v2398_v9 = vpop.xlane.xlu0 %2397  ;;  %v6145_v28 = vadd.f32 %v4043_v2, %v2720_v54  ;;  %v2722_v47 = vmul.f32 0.0, %v6061_v4 }
 0x428   : > { %v4585_v5 = vpop.eup %4584  ;;  %v3074_v30 = vld [vmem:[#allocation5 + $0x18] sm:$0xff]  ;;  %v2472_v8 = vadd.f32 %v2398_v9, %v2344_v59  ;;  %v2345_v57 = vmul.f32 %v5826_v43, %v2313_v56  ;;  %v2348_v13 = vmul.f32 %v5845_v53, %v2316_v21 }
 0x429   : > { %4590 = vrcp.f32 %v3074_v30  ;;  %2501 = vst.msk [vmem:[#allocation5 + $0x38] sm:$0xff] %vm1372_vm0, %v2469_v55  ;;  %3142 = vperm.xlu0 %4318, %v4585_v5   ;;  %v6149_v29 = vadd.f32 %v4046_v10, %v2721_v42  ;;  %v3077_v18 = vld [vmem:[#allocation5 + $0x30] sm:$0xff]  ;;  %v2315_v42 = vld [vmem:[#allocation5 + $0x68] sm:$0xff]  ;;  %v2723_v55 = vmul.f32 0.0, %v6059_v24  ;;  %v2318_v5 = vld [vmem:[#allocation5 + $0x80] sm:$0xff] }
 0x42a   : > { %2504 = vst.msk [vmem:[#allocation5 + $0x50] sm:$0xff] %vm1372_vm0, %v2472_v8  ;;  %v2395_v3 = vpop.xlane.xlu1 %2394  ;;  %4592 = vrcp.f32 %v3075_v7  ;;  %v2347_v53 = vmul.f32 %v5836_v12, %v2315_v42  ;;  %v2317_v56 = vld [vmem:[#allocation5 + $0x78] sm:$0xff]  ;;  %v2724_v12 = vmul.f32 0.0, %v6068_v19  ;;  %v2319_v42 = vld [vmem:[#allocation5 + $0x88] sm:$0xff] }
 0x42b   : > { %v4047_v32 = vpop.f32.mrb[56].mxu0  ;;  %v2471_v11 = vadd.f32 %v2395_v3, %v2343_v49  ;;  %v2404_v40 = vpop.xlane.xlu0 %2403 }
 0x42c   : > { %v3076_v54 = vld [vmem:[#allocation5 + $0x28] sm:$0xff]  ;;  %v4048_v34 = vpop.f32.mrb[57].mxu0  ;;  %v2474_v2 = vadd.f32 %v2404_v40, %v2346_v51  ;;  %v2350_v51 = vmul.f32 %v5860_v48, %v2318_v5 }
 0x42d   : > { %4594 = vrcp.f32 %v3076_v54  ;;  %2503 = vst.msk [vmem:[#allocation5 + $0x48] sm:$0xff] %vm1372_vm0, %v2471_v11  ;;  %v4049_v17 = vadd.f32 %v4048_v34, %v4047_v32  ;;  %v4050_v45 = vpop.f32.mrb[58].mxu0  ;;  %v3079_v43 = vld [vmem:[#allocation5 + $0x40] sm:$0xff]  ;;  %v2320_v54 = vld [vmem:[#allocation5 + $0x90] sm:$0xff] }
 0x42e   : > { %2506 = vst.msk [vmem:[#allocation5 + $0x60] sm:$0xff] %vm1372_vm0, %v2474_v2  ;;  %v4051_v31 = vpop.f32.mrb[59].mxu0  ;;  %v2401_v59 = vpop.xlane.xlu1 %2400  ;;  %4596 = vrcp.f32 %v3077_v18 }
 0x42f   : > { %v4587_v10 = vpop.eup %4586  ;;  %v4052_v9 = vadd.f32 %v4051_v31, %v4050_v45  ;;  %v2473_v4 = vadd.f32 %v2401_v59, %v2345_v57  ;;  %v2410_v37 = vpop.xlane.xlu0 %2409  ;;  %v6159_v30 = vadd.f32 %v4049_v17, %v2722_v47  ;;  %v2349_v45 = vmul.f32 %v5852_v0, %v2317_v56 }
 0x430   : > { %v3078_v8 = vld [vmem:[#allocation5 + $0x38] sm:$0xff]  ;;  %v2476_v7 = vadd.f32 %v2410_v37, %v2348_v13  ;;  %3137 = vperm.xlu1 %4319, %v4587_v10   ;;  %v4589_v3 = vpop.eup %4588  ;;  %v2352_v13 = vmul.f32 %v5877_v33, %v2320_v54  ;;  %v2322_v37 = vld [vmem:[#allocation5 + $0xa0] sm:$0xff]  ;;  %v2351_v33 = vmul.f32 %v5865_v58, %v2319_v42  ;;  %v2726_v58 = vmul.f32 0.0, %v6072_v1 }
 0x431   : > { %4598 = vrcp.f32 %v3078_v8  ;;  %2505 = vst.msk [vmem:[#allocation5 + $0x58] sm:$0xff] %vm1372_vm0, %v2473_v4  ;;  %v6163_v49 = vadd.f32 %v4052_v9, %v2723_v55  ;;  %v3081_v18 = vld [vmem:[#allocation5 + $0x50] sm:$0xff]  ;;  %v2725_v55 = vmul.f32 0.0, %v6066_v27 }
 0x432   : > { %2508 = vst.msk [vmem:[#allocation5 + $0x70] sm:$0xff] %vm1372_vm0, %v2476_v7  ;;  %v2407_v24 = vpop.xlane.xlu1 %2406  ;;  %4600 = vrcp.f32 %v3079_v43 }
 0x433   : > { %v4591_v32 = vpop.eup %4590  ;;  %v4053_v11 = vpop.f32.mrb[60].mxu0  ;;  %v2475_v40 = vadd.f32 %v2407_v24, %v2347_v53  ;;  %v2321_v24 = vld [vmem:[#allocation5 + $0x98] sm:$0xff] }
 0x434   : > { %v2416_v21 = vpop.xlane.xlu0 %2415  ;;  %v3080_v34 = vld [vmem:[#allocation5 + $0x48] sm:$0xff]  ;;  %v4054_v2 = vpop.f32.mrb[61].mxu0  ;;  %3147 = vperm.xlu1 %4319, %v4589_v3   ;;  %3152 = vperm.xlu0 %4318, %v4591_v32   ;;  %v2354_v3 = vmul.f32 %v5889_v16, %v2322_v37 }
 0x435   : > { %v2478_v47 = vadd.f32 %v2416_v21, %v2350_v51  ;;  %4602 = vrcp.f32 %v3080_v34  ;;  %2507 = vst.msk [vmem:[#allocation5 + $0x68] sm:$0xff] %vm1372_vm0, %v2475_v40  ;;  %v4055_v17 = vadd.f32 %v4054_v2, %v4053_v11  ;;  %v4056_v48 = vpop.f32.mrb[62].mxu0  ;;  %v4593_v57 = vpop.eup %4592  ;;  %v3083_v7 = vld [vmem:[#allocation5 + $0x60] sm:$0xff]  ;;  %v2324_v40 = vld [vmem:[#allocation5 + $0xb0] sm:$0xff] }
 0x436   : > { %v4057_v31 = vpop.f32.mrb[63].mxu0  ;;  %v2413_v59 = vpop.xlane.xlu1 %2412  ;;  %4604 = vrcp.f32 %v3081_v18 }
 0x437   : > { %2510 = vst.msk [vmem:[#allocation5 + $0x80] sm:$0xff] %vm1372_vm0, %v2478_v47  ;;  %v4595_v10 = vpop.eup %4594  ;;  %v4058_v19 = vadd.f32 %v4057_v31, %v4056_v48  ;;  %v2477_v9 = vadd.f32 %v2413_v59, %v2349_v45  ;;  %v6173_v5 = vadd.f32 %v4055_v17, %v2724_v12  ;;  %v2353_v12 = vmul.f32 %v5884_v62, %v2321_v24 }
 0x438   : > { %v2422_v4 = vpop.xlane.xlu0 %2421  ;;  %v3082_v8 = vld [vmem:[#allocation5 + $0x58] sm:$0xff]  ;;  %3157 = vperm.xlu1 %4319, %v4593_v57   ;;  %3162 = vperm.xlu0 %4318, %v4595_v10   ;;  %v4597_v27 = vpop.eup %4596  ;;  %v2356_v45 = vmul.f32 %v5906_v60, %v2324_v40  ;;  %v2323_v57 = vld [vmem:[#allocation5 + $0xa8] sm:$0xff]  ;;  %v2727_v59 = vmul.f32 0.0, %v6070_v41  ;;  %v2326_v10 = vld [vmem:[#allocation5 + $0xc0] sm:$0xff] }
 0x439   : > { %v2480_v0 = vadd.f32 %v2422_v4, %v2352_v13  ;;  %4606 = vrcp.f32 %v3082_v8  ;;  %2509 = vst.msk [vmem:[#allocation5 + $0x78] sm:$0xff] %vm1372_vm0, %v2477_v9  ;;  %v6177_v43 = vadd.f32 %v4058_v19, %v2725_v55  ;;  %v3085_v2 = vld [vmem:[#allocation5 + $0x70] sm:$0xff]  ;;  %v2355_v60 = vmul.f32 %v5894_v14, %v2323_v57 }
 0x43a   : > { %v2419_v53 = vpop.xlane.xlu1 %2418  ;;  %4608 = vrcp.f32 %v3083_v7  ;;  %v2358_v8 = vmul.f32 %v5918_v35, %v2326_v10  ;;  %v2728_v14 = vmul.f32 0.0, %v6079_v36  ;;  %v6649_v40 = vld [vmem:[#allocation62_spill] sm:$0xff] }
 0x43b   : > { %2512 = vst.msk [vmem:[#allocation5 + $0x90] sm:$0xff] %vm1372_vm0, %v2480_v0  ;;  %v4599_v51 = vpop.eup %4598  ;;  %v4059_v56 = vpop.f32.mrb[64].mxu0  ;;  %v2479_v32 = vadd.f32 %v2419_v53, %v2351_v33  ;;  %v2325_v0 = vld [vmem:[#allocation5 + $0xb8] sm:$0xff] }
 0x43c   : > { %v2428_v11 = vpop.xlane.xlu0 %2427  ;;  %v3084_v21 = vld [vmem:[#allocation5 + $0x68] sm:$0xff]  ;;  %v4060_v54 = vpop.f32.mrb[65].mxu0  ;;  %3167 = vperm.xlu1 %4319, %v4597_v27   ;;  %3172 = vperm.xlu0 %4318, %v4599_v51  }
 0x43d   : > { %v2482_v34 = vadd.f32 %v2428_v11, %v2354_v3  ;;  %4610 = vrcp.f32 %v3084_v21  ;;  %2511 = vst.msk [vmem:[#allocation5 + $0x88] sm:$0xff] %vm1372_vm0, %v2479_v32  ;;  %v4061_v47 = vadd.f32 %v4060_v54, %v4059_v56  ;;  %v4062_v16 = vpop.f32.mrb[66].mxu0  ;;  %v4601_v18 = vpop.eup %4600  ;;  %v2328_v3 = vld [vmem:[#allocation5 + $0xd0] sm:$0xff]  ;;  %v2357_v21 = vmul.f32 %v6649_v40, %v2325_v0 }
 0x43e   : > { %v4063_v17 = vpop.f32.mrb[67].mxu0  ;;  %v2425_v48 = vpop.xlane.xlu1 %2424  ;;  %4612 = vrcp.f32 %v3085_v2  ;;  %v3087_v9 = vld [vmem:[#allocation5 + $0x80] sm:$0xff] }
 0x43f   : > { %2514 = vst.msk [vmem:[#allocation5 + $0xa0] sm:$0xff] %vm1372_vm0, %v2482_v34  ;;  %v4603_v31 = vpop.eup %4602  ;;  %v4064_v1 = vadd.f32 %v4063_v17, %v4062_v16  ;;  %v2481_v13 = vadd.f32 %v2425_v48, %v2353_v12  ;;  %v6187_v55 = vadd.f32 %v4061_v47, %v2726_v58  ;;  %v6650_v2 = vld [vmem:[#allocation68_spill] sm:$0xff]  ;;  %v2327_v16 = vld [vmem:[#allocation5 + $0xc8] sm:$0xff] }
 0x440   : > { %v2434_v42 = vpop.xlane.xlu0 %2433  ;;  %v3086_v19 = vld [vmem:[#allocation5 + $0x78] sm:$0xff]  ;;  %3177 = vperm.xlu1 %4319, %v4601_v18   ;;  %3182 = vperm.xlu0 %4318, %v4603_v31   ;;  %v4605_v41 = vpop.eup %4604  ;;  %v2360_v47 = vmul.f32 %v6650_v2, %v2328_v3  ;;  %v2729_v18 = vmul.f32 0.0, %v6077_v26  ;;  %v2730_v3 = vmul.f32 0.0, %v6083_v63  ;;  %v2731_v2 = vmul.f32 0.0, %v6081_v22 }
 0x441   : > { %v2484_v62 = vadd.f32 %v2434_v42, %v2356_v45  ;;  %4614 = vrcp.f32 %v3086_v19  ;;  %2513 = vst.msk [vmem:[#allocation5 + $0x98] sm:$0xff] %vm1372_vm0, %v2481_v13  ;;  %v6191_v4 = vadd.f32 %v4064_v1, %v2727_v59  ;;  %v2330_v45 = vld [vmem:[#allocation5 + $0xe0] sm:$0xff] }
 0x442   : > { %v2431_v37 = vpop.xlane.xlu1 %2430  ;;  %4616 = vrcp.f32 %v3087_v9  ;;  %v3089_v32 = vld [vmem:[#allocation5 + $0x90] sm:$0xff]  ;;  %v6651_v13 = vld [vmem:[#allocation64_spill] sm:$0xff] }
 0x443   : > { %2516 = vst.msk [vmem:[#allocation5 + $0xb0] sm:$0xff] %vm1372_vm0, %v2484_v62  ;;  %v4607_v7 = vpop.eup %4606  ;;  %v4065_v33 = vpop.f32.mrb[68].mxu0  ;;  %v2483_v27 = vadd.f32 %v2431_v37, %v2355_v60  ;;  %v2359_v42 = vmul.f32 %v6651_v13, %v2327_v16  ;;  %v6652_v62 = vld [vmem:[#allocation8_spill] sm:$0xff]  ;;  %v2329_v60 = vld [vmem:[#allocation5 + $0xd8] sm:$0xff] }
 0x444   : > { %v2440_v53 = vpop.xlane.xlu0 %2439  ;;  %v3088_v24 = vld [vmem:[#allocation5 + $0x88] sm:$0xff]  ;;  %v4066_v51 = vpop.f32.mrb[69].mxu0  ;;  %3187 = vperm.xlu1 %4319, %v4605_v41   ;;  %3192 = vperm.xlu0 %4318, %v4607_v7   ;;  %v2362_v9 = vmul.f32 %v6652_v62, %v2330_v45  ;;  %v2332_v7 = vld [vmem:[#allocation5 + $0xf0] sm:$0xff] }
 0x445   : > { %v2486_v56 = vadd.f32 %v2440_v53, %v2358_v8  ;;  %4618 = vrcp.f32 %v3088_v24  ;;  %2515 = vst.msk [vmem:[#allocation5 + $0xa8] sm:$0xff] %vm1372_vm0, %v2483_v27  ;;  %v4067_v11 = vadd.f32 %v4066_v51, %v4065_v33  ;;  %v4068_v35 = vpop.f32.mrb[70].mxu0  ;;  %v4609_v54 = vpop.eup %4608 }
 0x446   : > { %v4069_v34 = vpop.f32.mrb[71].mxu0  ;;  %v2437_v58 = vpop.xlane.xlu1 %2436  ;;  %4620 = vrcp.f32 %v3089_v32  ;;  %v3091_v1 = vld [vmem:[#allocation5 + $0xa0] sm:$0xff] }
 0x447   : > { %2518 = vst.msk [vmem:[#allocation5 + $0xc0] sm:$0xff] %vm1372_vm0, %v2486_v56  ;;  %v4611_v12 = vpop.eup %4610  ;;  %v4070_v36 = vadd.f32 %v4069_v34, %v4068_v35  ;;  %v2485_v17 = vadd.f32 %v2437_v58, %v2357_v21  ;;  %v6201_v57 = vadd.f32 %v4067_v11, %v2728_v14  ;;  %v6653_v14 = vld [vmem:[#allocation66_spill] sm:$0xff]  ;;  %v6654_v21 = vld [vmem:[#allocation63_spill] sm:$0xff]  ;;  %v2331_v34 = vld [vmem:[#allocation5 + $0xe8] sm:$0xff] }
 0x448   : > { %v2446_v48 = vpop.xlane.xlu0 %2445  ;;  %v3090_v31 = vld [vmem:[#allocation5 + $0x98] sm:$0xff]  ;;  %3197 = vperm.xlu1 %4319, %v4609_v54   ;;  %3202 = vperm.xlu0 %4318, %v4611_v12   ;;  %v4613_v26 = vpop.eup %4612  ;;  %v2361_v32 = vmul.f32 %v6653_v14, %v2329_v60  ;;  %v2364_v54 = vmul.f32 %v6654_v21, %v2332_v7 }
 0x449   : > { %v2488_v59 = vadd.f32 %v2446_v48, %v2360_v47  ;;  %4622 = vrcp.f32 %v3090_v31  ;;  %2517 = vst.msk [vmem:[#allocation5 + $0xb8] sm:$0xff] %vm1372_vm0, %v2485_v17  ;;  %v6205_v10 = vadd.f32 %v4070_v36, %v2729_v18  ;;  %v6655_v48 = vld [vmem:[#allocation9_spill] sm:$0xff] }
 0x44a   : > { %v2443_v19 = vpop.xlane.xlu1 %2442  ;;  %4624 = vrcp.f32 %v3091_v1  ;;  %v3093_v24 = vld [vmem:[#allocation5 + $0xb0] sm:$0xff]  ;;  %v2363_v45 = vmul.f32 %v6655_v48, %v2331_v34  ;;  %v2333_v1 = vld [vmem:[#allocation5 + $0xf8] sm:$0xff] }
 0x44b   : > { %2520 = vst.msk [vmem:[#allocation5 + $0xd0] sm:$0xff] %vm1372_vm0, %v2488_v59  ;;  %v4615_v41 = vpop.eup %4614  ;;  %v4071_v37 = vpop.f32.mrb[72].mxu0  ;;  %v2487_v8 = vadd.f32 %v2443_v19, %v2359_v42 }
 0x44c   : > { %v2452_v0 = vpop.xlane.xlu0 %2451  ;;  %v3092_v33 = vld [vmem:[#allocation5 + $0xa8] sm:$0xff]  ;;  %v4072_v27 = vpop.f32.mrb[73].mxu0  ;;  %3207 = vperm.xlu1 %4319, %v4613_v26   ;;  %3212 = vperm.xlu0 %4318, %v4615_v41  }
 0x44d   : > { %v2490_v53 = vadd.f32 %v2452_v0, %v2362_v9  ;;  %4626 = vrcp.f32 %v3092_v33  ;;  %2519 = vst.msk [vmem:[#allocation5 + $0xc8] sm:$0xff] %vm1372_vm0, %v2487_v8  ;;  %v4073_v51 = vadd.f32 %v4072_v27, %v4071_v37  ;;  %v4074_v56 = vpop.f32.mrb[74].mxu0  ;;  %v4617_v11 = vpop.eup %4616  ;;  %v2732_v9 = vmul.f32 0.0, %v6087_v25 }
 0x44e   : > { %v4075_v35 = vpop.f32.mrb[75].mxu0  ;;  %v2449_v40 = vpop.xlane.xlu1 %2448  ;;  %4628 = vrcp.f32 %v3093_v24  ;;  %v3095_v17 = vld [vmem:[#allocation5 + $0xc0] sm:$0xff]  ;;  %v2365_v8 = vmul.f32 %v6074_v20, %v2333_v1 }
 0x44f   : > { %2522 = vst.msk [vmem:[#allocation5 + $0xe0] sm:$0xff] %vm1372_vm0, %v2490_v53  ;;  %v4619_v58 = vpop.eup %4618  ;;  %v4076_v63 = vadd.f32 %v4075_v35, %v4074_v56  ;;  %v2489_v47 = vadd.f32 %v2449_v40, %v2361_v32  ;;  %v6215_v12 = vadd.f32 %v4073_v51, %v2730_v3  ;;  %v2733_v53 = vmul.f32 0.0, %v6085_v50 }
 0x450   : > { %v2458_v16 = vpop.xlane.xlu0 %2457  ;;  %v3094_v18 = vld [vmem:[#allocation5 + $0xb8] sm:$0xff]  ;;  %3217 = vperm.xlu1 %4319, %v4617_v11   ;;  %3222 = vperm.xlu0 %4318, %v4619_v58   ;;  %v4621_v59 = vpop.eup %4620  ;;  %v2734_v40 = vmul.f32 0.0, %v6091_v52 }
 0x451   : > { %v2492_v36 = vadd.f32 %v2458_v16, %v2364_v54  ;;  %4630 = vrcp.f32 %v3094_v18  ;;  %2521 = vst.msk [vmem:[#allocation5 + $0xd8] sm:$0xff] %vm1372_vm0, %v2489_v47  ;;  %v6219_v31 = vadd.f32 %v4076_v63, %v2731_v2  ;;  %v2735_v47 = vmul.f32 0.0, %v6089_v23 }
 0x452   : > { %v2455_v22 = vpop.xlane.xlu1 %2454  ;;  %4632 = vrcp.f32 %v3095_v17  ;;  %v3097_v60 = vld [vmem:[#allocation5 + $0xd0] sm:$0xff] }
 0x453   : > { %2524 = vst.msk [vmem:[#allocation5 + $0xf0] sm:$0xff] %vm1372_vm0, %v2492_v36  ;;  %v4623_v13 = vpop.eup %4622  ;;  %v4077_v42 = vpop.f32.mrb[76].mxu0  ;;  %v2491_v26 = vadd.f32 %v2455_v22, %v2363_v45  ;;  %v2736_v22 = vmul.f32 0.0, %v6095_v38  ;;  %v2738_v38 = vmul.f32 0.0, %v6099_v46 }
 0x454   : > { %v3096_v19 = vld [vmem:[#allocation5 + $0xc8] sm:$0xff]  ;;  %v4078_v62 = vpop.f32.mrb[77].mxu0  ;;  %3227 = vperm.xlu1 %4319, %v4621_v59   ;;  %3232 = vperm.xlu0 %4318, %v4623_v13   ;;  %v4625_v0 = vpop.eup %4624 }
 0x455   : > { %4634 = vrcp.f32 %v3096_v19  ;;  %2523 = vst.msk [vmem:[#allocation5 + $0xe8] sm:$0xff] %vm1372_vm0, %v2491_v26  ;;  %v4079_v41 = vadd.f32 %v4078_v62, %v4077_v42  ;;  %v4080_v37 = vpop.f32.mrb[78].mxu0  ;;  %v2737_v19 = vmul.f32 0.0, %v6093_v39  ;;  %v2739_v39 = vmul.f32 0.0, %v6097_v61 }
 0x456   : > { %v4081_v7 = vpop.f32.mrb[79].mxu0  ;;  %v2461_v33 = vpop.xlane.xlu1 %2460  ;;  %4636 = vrcp.f32 %v3097_v60  ;;  %v3099_v56 = vld [vmem:[#allocation5 + $0xe0] sm:$0xff] }
 0x457   : > { %v4627_v27 = vpop.eup %4626  ;;  %v4082_v3 = vadd.f32 %v4081_v7, %v4080_v37  ;;  %v2493_v24 = vadd.f32 %v2461_v33, %v2365_v8  ;;  %v6226_v51 = vadd.f32 %v4079_v41, %v2732_v9 }
 0x458   : > { %v3098_v25 = vld [vmem:[#allocation5 + $0xd8] sm:$0xff]  ;;  %3237 = vperm.xlu1 %4319, %v4625_v0   ;;  %3242 = vperm.xlu0 %4318, %v4627_v27   ;;  %v4629_v20 = vpop.eup %4628 }
 0x459   : > { %4638 = vrcp.f32 %v3098_v25  ;;  %2525 = vst.msk [vmem:[#allocation5 + $0xf8] sm:$0xff] %vm1372_vm0, %v2493_v24  ;;  %v6229_v14 = vadd.f32 %v4082_v3, %v2733_v53 }
 0x45a   : > { %4640 = vrcp.f32 %v3099_v56  ;;  %v3101_v21 = vld [vmem:[#allocation5 + $0xf0] sm:$0xff] }
 0x45b   : > { %v4631_v32 = vpop.eup %4630  ;;  %v4083_v11 = vpop.f32.mrb[80].mxu0 }
 0x45c   : > { %v3100_v35 = vld [vmem:[#allocation5 + $0xe8] sm:$0xff]  ;;  %v4084_v50 = vpop.f32.mrb[81].mxu0  ;;  %3247 = vperm.xlu1 %4319, %v4629_v20   ;;  %3252 = vperm.xlu0 %4318, %v4631_v32   ;;  %v4633_v58 = vpop.eup %4632  ;;  %v2740_v20 = vmul.f32 0.0, %v6103_v6 }
 0x45d   : > { %4642 = vrcp.f32 %v3100_v35  ;;  %v4085_v54 = vadd.f32 %v4084_v50, %v4083_v11  ;;  %v4086_v34 = vpop.f32.mrb[82].mxu0  ;;  %v6656_v50 = vld [vmem:[#allocation65_spill] sm:$0xff] }
 0x45e   : > { %v4087_v2 = vpop.f32.mrb[83].mxu0  ;;  %4644 = vrcp.f32 %v3101_v21 }
 0x45f   : > { %v4635_v63 = vpop.eup %4634  ;;  %v4088_v16 = vadd.f32 %v4087_v2, %v4086_v34  ;;  %v6233_v18 = vadd.f32 %v4085_v54, %v2734_v40  ;;  %v2741_v40 = vmul.f32 0.0, %v6656_v50 }
 0x460   : > { %v3102_v36 = vld [vmem:[#allocation5 + $0xf8] sm:$0xff]  ;;  %3257 = vperm.xlu1 %4319, %v4633_v58   ;;  %3262 = vperm.xlu0 %4318, %v4635_v63   ;;  %v4637_v52 = vpop.eup %4636 }
 0x461   : > { %4646 = vrcp.f32 %v3102_v36  ;;  %v6235_v17 = vadd.f32 %v4088_v16, %v2735_v47  ;;  %v6657_v58 = vld [vmem:[#allocation67_spill] sm:$0xff]  ;;  %v6658_v36 = vld [vmem:[#allocation69_spill] sm:$0xff] }
 0x462   : > { %v2742_v2 = vmul.f32 0.0, %v6657_v58 }
 0x463   : > { %v4639_v48 = vpop.eup %4638  ;;  %v4089_v45 = vpop.f32.mrb[84].mxu0 }
 0x464   : > { %v4090_v59 = vpop.f32.mrb[85].mxu0  ;;  %3267 = vperm.xlu1 %4319, %v4637_v52   ;;  %3272 = vperm.xlu0 %4318, %v4639_v48   ;;  %v4641_v13 = vpop.eup %4640  ;;  %v2743_v52 = vmul.f32 0.0, %v6658_v36 }
 0x465   : > { %v4091_v1 = vadd.f32 %v4090_v59, %v4089_v45  ;;  %v4092_v23 = vpop.f32.mrb[86].mxu0 }
 0x466   : > { %v4093_v42 = vpop.f32.mrb[87].mxu0 }
 0x467   : > { %v4643_v26 = vpop.eup %4642  ;;  %v4094_v62 = vadd.f32 %v4093_v42, %v4092_v23  ;;  %v6239_v9 = vadd.f32 %v4091_v1, %v2736_v22  ;;  %v6659_v1 = vld [vmem:[#allocation70_spill] sm:$0xff] }
 0x468   : > { %3277 = vperm.xlu1 %4319, %v4641_v13   ;;  %3282 = vperm.xlu0 %4318, %v4643_v26   ;;  %v4645_v41 = vpop.eup %4644  ;;  %v2744_v23 = vmul.f32 0.0, %v6659_v1 }
 0x469   : > { %v6241_v60 = vadd.f32 %v4094_v62, %v2737_v19  ;;  %v6660_v19 = vld [vmem:[#allocation72_spill] sm:$0xff] }
 0x46a   : > { %v2745_v62 = vmul.f32 0.0, %v6660_v19  ;;  %v4649_v19 = vld [vmem:[%s4774_s19 + $0x8] sm:$0xff]  }
 0x46b   : > { %v4647_v37 = vpop.eup %4646  ;;  %v4095_v8 = vpop.f32.mrb[88].mxu0 }
 0x46c   : > { %v4096_v0 = vpop.f32.mrb[89].mxu0  ;;  %3287 = vperm.xlu1 %4319, %v4645_v41   ;;  %3292 = vperm.xlu0 %4318, %v4647_v37  }
 0x46d   : > { %v4097_v7 = vadd.f32 %v4096_v0, %v4095_v8  ;;  %v4098_v33 = vpop.f32.mrb[90].mxu0 }
 0x46e   : > { %v4099_v27 = vpop.f32.mrb[91].mxu0 }
 0x46f   : > { %v4100_v53 = vadd.f32 %v4099_v27, %v4098_v33  ;;  %v6245_v3 = vadd.f32 %v4097_v7, %v2738_v38  ;;  %v6661_v7 = vld [vmem:[#allocation11_spill] sm:$0xff] }
 0x470   : > { %v2746_v33 = vmul.f32 0.0, %v6661_v7 }
 0x471   : > { %v6247_v24 = vadd.f32 %v4100_v53, %v2739_v39 }
 0x473   : > { %v4101_v25 = vpop.f32.mrb[92].mxu0 }
 0x474   : > { %v4102_v56 = vpop.f32.mrb[93].mxu0 }
 0x475   : > { %v4103_v32 = vadd.f32 %v4102_v56, %v4101_v25  ;;  %v4104_v11 = vpop.f32.mrb[94].mxu0  ;;  %v6662_v25 = vld [vmem:[#allocation10_spill] sm:$0xff] }
 0x476   : > { %v4105_v35 = vpop.f32.mrb[95].mxu0  ;;  %v2747_v56 = vmul.f32 0.0, %v6662_v25 }
 0x477   : > { %v4106_v46 = vadd.f32 %v4105_v35, %v4104_v11  ;;  %v6251_v21 = vadd.f32 %v4103_v32, %v2740_v20 }
 0x479   : > { %v6253_v54 = vadd.f32 %v4106_v46, %v2741_v40  ;;  %v6663_v40 = vld [vmem:[#allocation73_spill] sm:$0xff] }
 0x47a   : > { %v2748_v46 = vmul.f32 0.0, %v6663_v40 }
 0x47b   : > { %v4107_v61 = vpop.f32.mrb[96].mxu0 }
 0x47c   : > { %v4108_v34 = vpop.f32.mrb[97].mxu0 }
 0x47d   : > { %v4109_v63 = vadd.f32 %v4108_v34, %v4107_v61  ;;  %v4110_v47 = vpop.f32.mrb[98].mxu0 }
 0x47e   : > { %v4111_v16 = vpop.f32.mrb[99].mxu0 }
 0x47f   : > { %v4112_v6 = vadd.f32 %v4111_v16, %v4110_v47  ;;  %v6257_v48 = vadd.f32 %v4109_v63, %v2742_v2  ;;  %v6278_v47 = vpop.permute.xlu0 %2715  ;;  %v6280_v16 = vstv %s3327_s15 }
 0x481   : > { %v6259_v45 = vadd.f32 %v4112_v6, %v2743_v52  ;;  %v4648_v52 = vld [vmem:[%s4774_s19] sm:$0xff]  }
 0x482   : > { %v3362_v6 = vunpack.c.h.bf16 %v4648_v52 }
 0x483   : > { %v4113_v59 = vpop.f32.mrb[100].mxu0 }
 0x484   : > { %v4114_v22 = vpop.f32.mrb[101].mxu0 }
 0x485   : > { %v4115_v13 = vadd.f32 %v4114_v22, %v4113_v59  ;;  %v4116_v42 = vpop.f32.mrb[102].mxu0 }
 0x486   : > { %v4117_v26 = vpop.f32.mrb[103].mxu0 }
 0x487   : > { %v4118_v41 = vadd.f32 %v4117_v26, %v4116_v42  ;;  %v6263_v37 = vadd.f32 %v4115_v13, %v2744_v23  ;;  %v3361_v13 = vunpack.c.l.bf16 %v4648_v52 }
 0x489   : > { %v6265_v8 = vadd.f32 %v4118_v41, %v2745_v62  ;;  %v3364_v62 = vunpack.c.h.bf16 %v4649_v19 }
 0x48b   : > { %v4119_v0 = vpop.f32.mrb[104].mxu0 }
 0x48c   : > { %v4120_v38 = vpop.f32.mrb[105].mxu0 }
 0x48d   : > { %v4121_v27 = vadd.f32 %v4120_v38, %v4119_v0  ;;  %v4122_v39 = vpop.f32.mrb[106].mxu0 }
 0x48e   : > { %v4123_v53 = vpop.f32.mrb[107].mxu0 }
 0x48f   : > { %v4124_v20 = vadd.f32 %v4123_v53, %v4122_v39  ;;  %v6269_v32 = vadd.f32 %v4121_v27, %v2746_v33  ;;  %v3363_v33 = vunpack.c.l.bf16 %v4649_v19  ;;  %v4650_v53 = vld [vmem:[%s4774_s19 + $0x10] sm:$0xff]  }
 0x490   : > { %v3365_v25 = vunpack.c.l.bf16 %v4650_v53 }
 0x491   : > { %v6271_v11 = vadd.f32 %v4124_v20, %v2747_v56  ;;  %v3366_v56 = vunpack.c.h.bf16 %v4650_v53 }
 0x493   : > { %v4125_v35 = vpop.f32.mrb[108].mxu0 }
 0x494   : > { %v4126_v50 = vpop.f32.mrb[109].mxu0 }
 0x495   : > { %v4127_v61 = vadd.f32 %v4126_v50, %v4125_v35  ;;  %v4128_v34 = vpop.f32.mrb[110].mxu0 }
 0x496   : > { %v4129_v58 = vpop.f32.mrb[111].mxu0 }
 0x497   : > { %v6274_v2 = vadd.f32 %v4129_v58, %v4128_v34  ;;  %v6276_v63 = vadd.f32 %v4127_v61, %v2748_v46  ;;  %v4651_v58 = vld [vmem:[%s4774_s19 + $0x18] sm:$0xff]  }
 0x498   : > { %v3368_v52 = vunpack.c.h.bf16 %v4651_v58 }
 0x4a8   : > { %v3143_v36 = vpop.permute.xlu0 %3142 }
 0x4a9   : > { %v3296_v59 = vmul.f32 %v3143_v36, %v6135_v15  ;;  %v3367_v36 = vunpack.c.l.bf16 %v4651_v58 }
 0x4ab   : > { %v3330_v22 = vmul.f32 %v6280_v16, %v3296_v59 }
 0x4ad   : > { %v3394_v1 = vadd.f32 %v3362_v6, %v3330_v22 }
 0x4af   : > { %v3138_v23 = vpop.permute.xlu1 %3137 }
 0x4b0   : > { %v3295_v42 = vmul.f32 %v3138_v23, %v6131_v44 }
 0x4b2   : > { %v3329_v26 = vmul.f32 %v6280_v16, %v3295_v42 }
 0x4b3   : > { %v3153_v41 = vpop.permute.xlu0 %3152  ;;  %v3148_v0 = vpop.permute.xlu1 %3147 }
 0x4b4   : > { %v3393_v38 = vadd.f32 %v3361_v13, %v3329_v26  ;;  %v3298_v7 = vmul.f32 %v3153_v41, %v6149_v29  ;;  %v3297_v15 = vmul.f32 %v3148_v0, %v6145_v28  ;;  %v4652_v26 = vld [vmem:[%s4774_s19 + $0x20] sm:$0xff]  }
 0x4b5   : > { %v3369_v19 = vunpack.c.l.bf16 %v4652_v26 }
 0x4b6   : > { %v3807_v44 = vpack.c.bf16 %v3394_v1, %v3393_v38  ;;  %v3332_v27 = vmul.f32 %v6280_v16, %v3298_v7  ;;  %v3331_v39 = vmul.f32 %v6280_v16, %v3297_v15 }
 0x4b7   : > { %v3163_v29 = vpop.permute.xlu0 %3162  ;;  %v3158_v20 = vpop.permute.xlu1 %3157 }
 0x4b8   : > { %3808 = vst [vmem:[%s6295_s20] sm:$0xff] %v3807_v44   ;;  %v3396_v28 = vadd.f32 %v3364_v62, %v3332_v27  ;;  %v3395_v35 = vadd.f32 %v3363_v33, %v3331_v39  ;;  %v3300_v50 = vmul.f32 %v3163_v29, %v6163_v49  ;;  %v3299_v40 = vmul.f32 %v3158_v20, %v6159_v30  ;;  %v4653_v27 = vld [vmem:[%s4774_s19 + $0x28] sm:$0xff]  }
 0x4b9   : > { %v3370_v62 = vunpack.c.h.bf16 %v4652_v26  ;;  %v3371_v39 = vunpack.c.l.bf16 %v4653_v27  ;;  %v3372_v53 = vunpack.c.h.bf16 %v4653_v27 }
 0x4ba   : > { %v3812_v46 = vpack.c.bf16 %v3396_v28, %v3395_v35  ;;  %v3334_v61 = vmul.f32 %v6280_v16, %v3300_v50  ;;  %v3333_v34 = vmul.f32 %v6280_v16, %v3299_v40  ;;  %v4654_v40 = vld [vmem:[%s4774_s19 + $0x30] sm:$0xff]  }
 0x4bb   : > { %v3173_v6 = vpop.permute.xlu0 %3172  ;;  %v3168_v59 = vpop.permute.xlu1 %3167 }
 0x4bc   : > { %3884 = vst [vmem:[%s6295_s20 + $0x8] sm:$0xff] %v3812_v46   ;;  %v3398_v22 = vadd.f32 %v3366_v56, %v3334_v61  ;;  %v3397_v1 = vadd.f32 %v3365_v25, %v3333_v34  ;;  %v3302_v23 = vmul.f32 %v3173_v6, %v6177_v43  ;;  %v3301_v49 = vmul.f32 %v3168_v59, %v6173_v5 }
 0x4bd   : > { %v3373_v46 = vunpack.c.l.bf16 %v4654_v40  ;;  %v3374_v61 = vunpack.c.h.bf16 %v4654_v40  ;;  %v4658_v40 = vld [vmem:[%s4774_s19 + $0x50] sm:$0xff]  }
 0x4be   : > { %v3817_v30 = vpack.c.bf16 %v3398_v22, %v3397_v1  ;;  %v3336_v13 = vmul.f32 %v6280_v16, %v3302_v23  ;;  %v3335_v42 = vmul.f32 %v6280_v16, %v3301_v49  ;;  %v4655_v1 = vld [vmem:[%s4774_s19 + $0x38] sm:$0xff]  }
 0x4bf   : > { %v3183_v41 = vpop.permute.xlu0 %3182  ;;  %v3178_v0 = vpop.permute.xlu1 %3177  ;;  %v3375_v23 = vunpack.c.l.bf16 %v4655_v1  ;;  %v3376_v49 = vunpack.c.h.bf16 %v4655_v1 }
 0x4c0   : > { %3885 = vst [vmem:[%s6295_s20 + $0x10] sm:$0xff] %v3817_v30   ;;  %v3400_v38 = vadd.f32 %v3368_v52, %v3336_v13  ;;  %v3399_v7 = vadd.f32 %v3367_v36, %v3335_v42  ;;  %v3304_v33 = vmul.f32 %v3183_v41, %v6191_v4  ;;  %v3303_v43 = vmul.f32 %v3178_v0, %v6187_v55  ;;  %v4656_v0 = vld [vmem:[%s4774_s19 + $0x40] sm:$0xff]  }
 0x4c2   : > { %v3822_v5 = vpack.c.bf16 %v3400_v38, %v3399_v7  ;;  %v3338_v15 = vmul.f32 %v6280_v16, %v3304_v33  ;;  %v3337_v44 = vmul.f32 %v6280_v16, %v3303_v43  ;;  %v3377_v38 = vunpack.c.l.bf16 %v4656_v0 }
 0x4c3   : > { %v3193_v25 = vpop.permute.xlu0 %3192  ;;  %v3188_v56 = vpop.permute.xlu1 %3187  ;;  %v3378_v7 = vunpack.c.h.bf16 %v4656_v0 }
 0x4c4   : > { %3886 = vst [vmem:[%s6295_s20 + $0x18] sm:$0xff] %v3822_v5   ;;  %v3402_v29 = vadd.f32 %v3370_v62, %v3338_v15  ;;  %v3401_v20 = vadd.f32 %v3369_v19, %v3337_v44  ;;  %v3306_v28 = vmul.f32 %v3193_v25, %v6205_v10  ;;  %v3305_v4 = vmul.f32 %v3188_v56, %v6201_v57 }
 0x4c6   : > { %v3827_v55 = vpack.c.bf16 %v3402_v29, %v3401_v20  ;;  %v3340_v35 = vmul.f32 %v6280_v16, %v3306_v28  ;;  %v3339_v50 = vmul.f32 %v6280_v16, %v3305_v4 }
 0x4c7   : > { %v3203_v34 = vpop.permute.xlu0 %3202  ;;  %v3198_v58 = vpop.permute.xlu1 %3197 }
 0x4c8   : > { %3887 = vst [vmem:[%s6295_s20 + $0x20] sm:$0xff] %v3827_v55   ;;  %v3404_v36 = vadd.f32 %v3372_v53, %v3340_v35  ;;  %v3403_v52 = vadd.f32 %v3371_v39, %v3339_v50  ;;  %v3308_v6 = vmul.f32 %v3203_v34, %v6219_v31  ;;  %v3307_v10 = vmul.f32 %v3198_v58, %v6215_v12  ;;  %v4657_v53 = vld [vmem:[%s4774_s19 + $0x48] sm:$0xff]  }
 0x4c9   : > { %v3379_v25 = vunpack.c.l.bf16 %v4657_v53  ;;  %v3380_v56 = vunpack.c.h.bf16 %v4657_v53 }
 0x4ca   : > { %v3832_v57 = vpack.c.bf16 %v3404_v36, %v3403_v52  ;;  %v3342_v59 = vmul.f32 %v6280_v16, %v3308_v6  ;;  %v3341_v22 = vmul.f32 %v6280_v16, %v3307_v10 }
 0x4cb   : > { %v3213_v30 = vpop.permute.xlu0 %3212  ;;  %v3208_v13 = vpop.permute.xlu1 %3207 }
 0x4cc   : > { %3888 = vst [vmem:[%s6295_s20 + $0x28] sm:$0xff] %v3832_v57   ;;  %v3406_v42 = vadd.f32 %v3374_v61, %v3342_v59  ;;  %v3405_v26 = vadd.f32 %v3373_v46, %v3341_v22  ;;  %v3310_v19 = vmul.f32 %v3213_v30, %v6229_v14  ;;  %v3309_v31 = vmul.f32 %v3208_v13, %v6226_v51  ;;  %v4659_v59 = vld [vmem:[%s4774_s19 + $0x58] sm:$0xff]  }
 0x4cd   : > { %v3381_v46 = vunpack.c.l.bf16 %v4658_v40  ;;  %v3382_v61 = vunpack.c.h.bf16 %v4658_v40  ;;  %v3383_v22 = vunpack.c.l.bf16 %v4659_v59  ;;  %v3384_v1 = vunpack.c.h.bf16 %v4659_v59 }
 0x4ce   : > { %v3837_v12 = vpack.c.bf16 %v3406_v42, %v3405_v26  ;;  %v3344_v62 = vmul.f32 %v6280_v16, %v3310_v19  ;;  %v3343_v41 = vmul.f32 %v6280_v16, %v3309_v31  ;;  %v4660_v31 = vld [vmem:[%s4774_s19 + $0x60] sm:$0xff]  }
 0x4cf   : > { %v3223_v33 = vpop.permute.xlu0 %3222  ;;  %v3218_v43 = vpop.permute.xlu1 %3217 }
 0x4d0   : > { %3889 = vst [vmem:[%s6295_s20 + $0x30] sm:$0xff] %v3837_v12   ;;  %v3408_v5 = vadd.f32 %v3376_v49, %v3344_v62  ;;  %v3407_v15 = vadd.f32 %v3375_v23, %v3343_v41  ;;  %v3312_v44 = vmul.f32 %v3223_v33, %v6235_v17  ;;  %v3311_v14 = vmul.f32 %v3218_v43, %v6233_v18 }
 0x4d1   : > { %v3385_v12 = vunpack.c.l.bf16 %v4660_v31  ;;  %v3386_v62 = vunpack.c.h.bf16 %v4660_v31 }
 0x4d2   : > { %v3842_v51 = vpack.c.bf16 %v3408_v5, %v3407_v15  ;;  %v3346_v27 = vmul.f32 %v6280_v16, %v3312_v44  ;;  %v3345_v39 = vmul.f32 %v6280_v16, %v3311_v14  ;;  %v4661_v15 = vld [vmem:[%s4774_s19 + $0x68] sm:$0xff]  }
 0x4d3   : > { %v3233_v29 = vpop.permute.xlu0 %3232  ;;  %v3228_v20 = vpop.permute.xlu1 %3227  ;;  %v3387_v44 = vunpack.c.l.bf16 %v4661_v15  ;;  %v3388_v14 = vunpack.c.h.bf16 %v4661_v15 }
 0x4d4   : > { %3890 = vst [vmem:[%s6295_s20 + $0x38] sm:$0xff] %v3842_v51   ;;  %v3410_v28 = vadd.f32 %v3378_v7, %v3346_v27  ;;  %v3409_v4 = vadd.f32 %v3377_v38, %v3345_v39  ;;  %v3314_v55 = vmul.f32 %v3233_v29, %v6241_v60  ;;  %v3313_v17 = vmul.f32 %v3228_v20, %v6239_v9  ;;  %v4662_v20 = vld [vmem:[%s4774_s19 + $0x70] sm:$0xff]  }
 0x4d6   : > { %v3847_v18 = vpack.c.bf16 %v3410_v28, %v3409_v4  ;;  %v3348_v35 = vmul.f32 %v6280_v16, %v3314_v55  ;;  %v3347_v50 = vmul.f32 %v6280_v16, %v3313_v17  ;;  %v3389_v28 = vunpack.c.l.bf16 %v4662_v20 }
 0x4d7   : > { %v3243_v34 = vpop.permute.xlu0 %3242  ;;  %v3238_v58 = vpop.permute.xlu1 %3237  ;;  %v3390_v4 = vunpack.c.h.bf16 %v4662_v20  ;;  %v2749_v55 = vmul.f32 0.0, %v6278_v47 }
 0x4d8   : > { %3891 = vst [vmem:[%s6295_s20 + $0x40] sm:$0xff] %v3847_v18   ;;  %v3412_v36 = vadd.f32 %v3380_v56, %v3348_v35  ;;  %v3411_v52 = vadd.f32 %v3379_v25, %v3347_v50  ;;  %v3316_v6 = vmul.f32 %v3243_v34, %v6247_v24  ;;  %v3315_v60 = vmul.f32 %v3238_v58, %v6245_v3  ;;  %v4663_v58 = vld [vmem:[%s4774_s19 + $0x78] sm:$0xff]  }
 0x4d9   : > { %v2974_v34 = vadd.f32 %v6274_v2, %v2749_v55  ;;  %v3391_v47 = vunpack.c.l.bf16 %v4663_v58 }
 0x4da   : > { %v3852_v9 = vpack.c.bf16 %v3412_v36, %v3411_v52  ;;  %v3350_v10 = vmul.f32 %v6280_v16, %v3316_v6  ;;  %v3349_v57 = vmul.f32 %v6280_v16, %v3315_v60  ;;  %v3392_v36 = vunpack.c.h.bf16 %v4663_v58 }
 0x4db   : > { %v3253_v23 = vpop.permute.xlu0 %3252  ;;  %v3248_v49 = vpop.permute.xlu1 %3247 }
 0x4dc   : > { %3892 = vst [vmem:[%s6295_s20 + $0x48] sm:$0xff] %v3852_v9   ;;  %v3414_v30 = vadd.f32 %v3382_v61, %v3350_v10  ;;  %v3413_v13 = vadd.f32 %v3381_v46, %v3349_v57  ;;  %v3318_v42 = vmul.f32 %v3253_v23, %v6253_v54  ;;  %v3317_v24 = vmul.f32 %v3248_v49, %v6251_v21 }
 0x4de   : > { %v3857_v3 = vpack.c.bf16 %v3414_v30, %v3413_v13  ;;  %v3352_v26 = vmul.f32 %v6280_v16, %v3318_v42  ;;  %v3351_v19 = vmul.f32 %v6280_v16, %v3317_v24 }
 0x4df   : > { %v3263_v41 = vpop.permute.xlu0 %3262  ;;  %v3258_v0 = vpop.permute.xlu1 %3257 }
 0x4e0   : > { %3893 = vst [vmem:[%s6295_s20 + $0x50] sm:$0xff] %v3857_v3   ;;  %v3416_v38 = vadd.f32 %v3384_v1, %v3352_v26  ;;  %v3415_v7 = vadd.f32 %v3383_v22, %v3351_v19  ;;  %v3320_v33 = vmul.f32 %v3263_v41, %v6259_v45  ;;  %v3319_v54 = vmul.f32 %v3258_v0, %v6257_v48 }
 0x4e2   : > { %v3862_v21 = vpack.c.bf16 %v3416_v38, %v3415_v7  ;;  %v3354_v43 = vmul.f32 %v6280_v16, %v3320_v33  ;;  %v3353_v5 = vmul.f32 %v6280_v16, %v3319_v54 }
 0x4e3   : > { %v3273_v51 = vpop.permute.xlu0 %3272  ;;  %v3268_v27 = vpop.permute.xlu1 %3267 }
 0x4e4   : > { %3894 = vst [vmem:[%s6295_s20 + $0x58] sm:$0xff] %v3862_v21   ;;  %v3418_v39 = vadd.f32 %v3386_v62, %v3354_v43  ;;  %v3417_v53 = vadd.f32 %v3385_v12, %v3353_v5  ;;  %v3322_v25 = vmul.f32 %v3273_v51, %v6265_v8  ;;  %v3321_v45 = vmul.f32 %v3268_v27, %v6263_v37 }
 0x4e6   : > { %v3867_v48 = vpack.c.bf16 %v3418_v39, %v3417_v53  ;;  %v3356_v56 = vmul.f32 %v6280_v16, %v3322_v25  ;;  %v3355_v29 = vmul.f32 %v6280_v16, %v3321_v45 }
 0x4e7   : > { %v3283_v17 = vpop.permute.xlu0 %3282  ;;  %v3278_v18 = vpop.permute.xlu1 %3277 }
 0x4e8   : > { %3895 = vst [vmem:[%s6295_s20 + $0x60] sm:$0xff] %v3867_v48   ;;  %v3420_v35 = vadd.f32 %v3388_v14, %v3356_v56  ;;  %v3419_v50 = vadd.f32 %v3387_v44, %v3355_v29  ;;  %v3324_v8 = vmul.f32 %v3283_v17, %v6271_v11  ;;  %v3323_v37 = vmul.f32 %v3278_v18, %v6269_v32 }
 0x4ea   : > { %v3872_v40 = vpack.c.bf16 %v3420_v35, %v3419_v50  ;;  %v3358_v46 = vmul.f32 %v6280_v16, %v3324_v8  ;;  %v3357_v61 = vmul.f32 %v6280_v16, %v3323_v37 }
 0x4eb   : > { %v3293_v52 = vpop.permute.xlu0 %3292  ;;  %v3288_v6 = vpop.permute.xlu1 %3287 }
 0x4ec   : > { %3896 = vst [vmem:[%s6295_s20 + $0x68] sm:$0xff] %v3872_v40   ;;  %v3422_v60 = vadd.f32 %v3390_v4, %v3358_v46  ;;  %v3421_v9 = vadd.f32 %v3389_v28, %v3357_v61  ;;  %v3326_v11 = vmul.f32 %v3293_v52, %v2974_v34  ;;  %v3325_v32 = vmul.f32 %v3288_v6, %v6276_v63 }
 0x4ee   : > { %v3877_v10 = vpack.c.bf16 %v3422_v60, %v3421_v9  ;;  %v3360_v57 = vmul.f32 %v6280_v16, %v3326_v11  ;;  %v3359_v59 = vmul.f32 %v6280_v16, %v3325_v32 }
 0x4f0   : > { %3897 = vst [vmem:[%s6295_s20 + $0x70] sm:$0xff] %v3877_v10   ;;  %v3424_v22 = vadd.f32 %v3392_v36, %v3360_v57  ;;  %v3423_v2 = vadd.f32 %v3391_v47, %v3359_v59 }
 0x4f2   : > { %v3882_v1 = vpack.c.bf16 %v3424_v22, %v3423_v2 }
 0x4f4   : > { %3898 = vst [vmem:[%s6295_s20 + $0x78] sm:$0xff] %v3882_v1  }
 0x4f5 PF: > { %s19_s9 = sadd.s32 1, %s4686_s9   ;;  %s6664_s29 = smov %s4682_s30 }
 0x4f6   : > { %p16_p5 = scmp.ge.s32.totalorder %s19_s9, 4   ;;  %s6665_s30 = smov %s6667_s7 }
 0x4f8   :  { %18 = sbr.rel (!%p16_p5) target bundleno = 2 (0x2), region = 87 }

</bundles_post_ra>
